<compile_context>
chip_gen: v5e
topology: v5e:2x2
jax: 0.10.0
libtpu: 0.0.40
codegen_flags: <defaults>
</compile_context>

<pallas_src>
import jax
import jax.numpy as jnp
from jax.experimental import pallas as pl
from jax.experimental.pallas import tpu as pltpu

# ---- static config (small shapes consistent with the module) ----
BATCH       = 2
BATCH_PAD   = 8             # pad batch rows to the f32 sublane tile
SEQ         = 8
INPUT_SIZE  = 16
HIDDEN      = 32            # lstm1 hidden size
HIDDEN2     = HIDDEN // 2   # lstm2 hidden size = 16
LIN1        = HIDDEN // 4   # = 8
OUTPUT_SIZE = 4
LANES       = 128           # 4*HIDDEN == 128 exactly

# ---- packed parameter slab layout (every section starts on an 8-row boundary) ----
R_WIH1 = 0                          # (INPUT_SIZE, 4*HIDDEN)  = (16, 128)
R_WHH1 = R_WIH1 + INPUT_SIZE        # 16:  (HIDDEN, 4*HIDDEN) = (32, 128)
R_B1   = R_WHH1 + HIDDEN            # 48:  (1, 128)  b_ih1 + b_hh1
R_W2   = R_B1 + 8                   # 56:  (HIDDEN+HIDDEN2, 4*HIDDEN2) = (48, 64), cols 64: zero
R_B2   = R_W2 + HIDDEN + HIDDEN2    # 104: (1, 64)   b_ih2 + b_hh2
R_WL1  = R_B2 + 8                   # 112: (HIDDEN2, LIN1) = (16, 8), cols 8: zero
R_BL1  = R_WL1 + HIDDEN2            # 128: (1, 8)
R_WL2  = R_BL1 + 8                  # 136: (LANES, OUTPUT_SIZE) zero-padded to (128, 128)
R_BL2  = R_WL2 + LANES              # 264: (1, OUTPUT_SIZE)
SLAB_ROWS = R_BL2 + 8               # 272 rows total (~136 KiB in VMEM)


def transportation_lstm_kernel(x_ref, w_ref, o_ref):
    # x_ref : (SEQ*BATCH_PAD, INPUT_SIZE)  time-major rows [t0b0..t0b7, t1b0..]
    # w_ref : (SLAB_ROWS, 128)             packed parameter slab (see layout above)
    # o_ref : (BATCH_PAD, 128)             lane-dense output; real result in [:BATCH, :OUTPUT_SIZE]

    def sig(v):  # logistic via tanh: 1 EUP op + cheap VPU ops, no divide
        return 0.5 * (jnp.tanh(0.5 * v) + 1.0)

    # ---- hoisted, loop-invariant parameter loads ----
    W_ih1 = w_ref[R_WIH1:R_WIH1 + INPUT_SIZE, :]                  # (16, 128)
    W_hh1 = w_ref[R_WHH1:R_WHH1 + HIDDEN, :]                      # (32, 128)
    b1    = w_ref[R_B1:R_B1 + 1, :]                               # (1, 128)
    W2    = w_ref[R_W2:R_W2 + HIDDEN + HIDDEN2, :]                # (48, 128), cols>=64 zero
    b2    = jnp.broadcast_to(w_ref[R_B2:R_B2 + 1, :],
                             (BATCH_PAD, LANES))                  # broadcast once, not per step

    # ---- fused layer-1 input projection for ALL timesteps: one MXU matmul ----
    xproj1 = jnp.dot(x_ref[...], W_ih1,
                     preferred_element_type=jnp.float32) + b1     # (SEQ*8, 128)

    h1 = jnp.zeros((BATCH_PAD, HIDDEN), jnp.float32)
    c1 = jnp.zeros((BATCH_PAD, HIDDEN), jnp.float32)
    h2 = jnp.zeros((BATCH_PAD, HIDDEN2), jnp.float32)
    c2 = jnp.zeros((BATCH_PAD, HIDDEN2), jnp.float32)

    # Recurrence is inherently sequential; SEQ=8 -> static unroll (LLO visibility).
    for t in range(SEQ):
        # ---------- layer-1 LSTM cell ----------
        g1 = xproj1[t * BATCH_PAD:(t + 1) * BATCH_PAD, :] + jnp.dot(
            h1, W_hh1, preferred_element_type=jnp.float32)        # (8, 128), aligned slice
        s1 = sig(g1)            # full-width sigmoid: 1 vreg
        t1 = jnp.tanh(g1)       # full-width tanh:    1 vreg
        i1  = s1[:, 0 * HIDDEN:1 * HIDDEN]
        f1  = s1[:, 1 * HIDDEN:2 * HIDDEN]
        gg1 = t1[:, 2 * HIDDEN:3 * HIDDEN]
        o1  = s1[:, 3 * HIDDEN:4 * HIDDEN]
        c1 = f1 * c1 + i1 * gg1
        h1 = o1 * jnp.tanh(c1)

        # ---------- layer-2 LSTM cell (fused [W_ih2; W_hh2] matmul) ----------
        h12 = jnp.concatenate([h1, h2], axis=1)                   # (8, 48)
        g2 = jnp.dot(h12, W2, preferred_element_type=jnp.float32) + b2   # (8, 128)
        s2 = sig(g2)
        t2 = jnp.tanh(g2)
        i2  = s2[:, 0 * HIDDEN2:1 * HIDDEN2]
        f2  = s2[:, 1 * HIDDEN2:2 * HIDDEN2]
        gg2 = t2[:, 2 * HIDDEN2:3 * HIDDEN2]
        o2  = s2[:, 3 * HIDDEN2:4 * HIDDEN2]
        c2 = f2 * c2 + i2 * gg2
        h2 = o2 * jnp.tanh(c2)

    # ---------- head: lin1 -> sigmoid -> lin2 on last-timestep h2 ----------
    W_l1 = w_ref[R_WL1:R_WL1 + HIDDEN2, :]                        # (16, 128), cols>=8 zero
    b_l1 = w_ref[R_BL1:R_BL1 + 1, :]
    W_l2 = w_ref[R_WL2:R_WL2 + LANES, :]                          # (128, 128), rows>=8 zero
    b_l2 = w_ref[R_BL2:R_BL2 + 1, :]
    # padded z columns equal sigmoid(0)=0.5 and hit zero rows of W_l2 -> contribute 0
    z = sig(jnp.dot(h2, W_l1, preferred_element_type=jnp.float32) + b_l1)   # (8, 128)
    y = jnp.dot(z, W_l2, preferred_element_type=jnp.float32) + b_l2         # (8, 128)
    o_ref[...] = y.astype(o_ref.dtype)


def pack_params(p):
    """Pack all PyTorch-layout weights/biases into one (SLAB_ROWS, 128) f32 slab.
    Done once per model, NOT per forward call."""
    s = jnp.zeros((SLAB_ROWS, LANES), jnp.float32)
    s = s.at[R_WIH1:R_WIH1 + INPUT_SIZE, :4 * HIDDEN].set(p["w_ih1"].T)
    s = s.at[R_WHH1:R_WHH1 + HIDDEN, :4 * HIDDEN].set(p["w_hh1"].T)
    s = s.at[R_B1, :4 * HIDDEN].set(p["b_ih1"] + p["b_hh1"])
    w2 = jnp.concatenate([p["w_ih2"].T, p["w_hh2"].T], axis=0)      # (48, 64) fused
    s = s.at[R_W2:R_W2 + HIDDEN + HIDDEN2, :4 * HIDDEN2].set(w2)
    s = s.at[R_B2, :4 * HIDDEN2].set(p["b_ih2"] + p["b_hh2"])
    s = s.at[R_WL1:R_WL1 + HIDDEN2, :LIN1].set(p["w_lin1"].T)
    s = s.at[R_BL1, :LIN1].set(p["b_lin1"])
    s = s.at[R_WL2:R_WL2 + LIN1, :OUTPUT_SIZE].set(p["w_lin2"].T)
    s = s.at[R_BL2, :OUTPUT_SIZE].set(p["b_lin2"])
    return s


@jax.jit
def transportation_lstm_forward(x, slab):
    """x: (BATCH, SEQ, INPUT_SIZE) f32; slab: packed parameter slab from pack_params."""
    b, t, i = x.shape
    # Time-major, batch zero-padded to 8 rows so each per-step slice is sublane-aligned.
    x_tb = jnp.transpose(x, (1, 0, 2))
    x_tb = jnp.pad(x_tb, ((0, 0), (0, BATCH_PAD - b), (0, 0)))
    x_tb = x_tb.reshape(t * BATCH_PAD, i)
    vmem = pl.BlockSpec(memory_space=pltpu.MemorySpace.VMEM)
    y = pl.pallas_call(
        transportation_lstm_kernel,
        out_shape=jax.ShapeDtypeStruct((BATCH_PAD, LANES), jnp.float32),
        in_specs=[vmem, vmem],
        out_specs=vmem,
    )(x_tb, slab)
    return y[:b, :OUTPUT_SIZE].astype(x.dtype)


# ---------------- pure-JAX reference (mirrors PyTorch nn.LSTM / nn.Linear) ----------------
def _lstm_layer_ref(x, w_ih, w_hh, b_ih, b_hh):
    bsz, t, _ = x.shape
    hid = w_hh.shape[1]
    h = jnp.zeros((bsz, hid), jnp.float32)
    c = jnp.zeros((bsz, hid), jnp.float32)
    outs = []
    for s in range(t):
        g = x[:, s] @ w_ih.T + b_ih + h @ w_hh.T + b_hh
        i = jax.nn.sigmoid(g[:, :hid])
        f = jax.nn.sigmoid(g[:, hid:2 * hid])
        gg = jnp.tanh(g[:, 2 * hid:3 * hid])
        o = jax.nn.sigmoid(g[:, 3 * hid:])
        c = f * c + i * gg
        h = o * jnp.tanh(c)
        outs.append(h)
    return jnp.stack(outs, axis=1)


def reference_forward(x, p):
    o1 = _lstm_layer_ref(x, p["w_ih1"], p["w_hh1"], p["b_ih1"], p["b_hh1"])
    o2 = _lstm_layer_ref(o1, p["w_ih2"], p["w_hh2"], p["b_ih2"], p["b_hh2"])
    h_last = o2[:, -1, :]
    z = jax.nn.sigmoid(h_last @ p["w_lin1"].T + p["b_lin1"])
    return z @ p["w_lin2"].T + p["b_lin2"]


if __name__ == "__main__":
    jax.config.update("jax_default_matmul_precision", "highest")

    key = jax.random.PRNGKey(0)
    ks = jax.random.split(key, 13)

    def u(k, shape, fan):
        bound = 1.0 / (fan ** 0.5)
        return jax.random.uniform(k, shape, jnp.float32, -bound, bound)

    x = jax.random.normal(ks[0], (BATCH, SEQ, INPUT_SIZE), dtype=jnp.float32)
    params = {
        # PyTorch layouts: weight_ih (4H, in), weight_hh (4H, H), gates [i|f|g|o]
        "w_ih1": u(ks[1], (4 * HIDDEN, INPUT_SIZE), HIDDEN),
        "w_hh1": u(ks[2], (4 * HIDDEN, HIDDEN), HIDDEN),
        "b_ih1": u(ks[3], (4 * HIDDEN,), HIDDEN),
        "b_hh1": u(ks[4], (4 * HIDDEN,), HIDDEN),
        "w_ih2": u(ks[5], (4 * HIDDEN2, HIDDEN), HIDDEN2),
        "w_hh2": u(ks[6], (4 * HIDDEN2, HIDDEN2), HIDDEN2),
        "b_ih2": u(ks[7], (4 * HIDDEN2,), HIDDEN2),
        "b_hh2": u(ks[8], (4 * HIDDEN2,), HIDDEN2),
        "w_lin1": u(ks[9], (LIN1, HIDDEN2), HIDDEN2),
        "b_lin1": u(ks[10], (LIN1,), HIDDEN2),
        "w_lin2": u(ks[11], (OUTPUT_SIZE, LIN1), LIN1),
        "b_lin2": u(ks[12], (OUTPUT_SIZE,), LIN1),
    }

    slab = jax.block_until_ready(pack_params(params))   # one-time parameter packing

    out = jax.block_until_ready(transportation_lstm_forward(x, slab))
    ref = reference_forward(x, params)

    assert out.shape == (BATCH, OUTPUT_SIZE)
    assert jnp.allclose(out, ref, atol=1e-3, rtol=1e-3), "mismatch vs reference"
    print("KERNEL_OK")
</pallas_src>

<mosaic_0001>
module attributes {stable_mosaic.version = 11 : i64} {
  func.func @transportation_lstm_kernel(%arg0: memref<64x16xf32, #tpu.memory_space<vmem>>, %arg1: memref<272x128xf32, #tpu.memory_space<vmem>>, %arg2: memref<8x128xf32, #tpu.memory_space<vmem>>) attributes {dimension_semantics = [], scalar_prefetch = 0 : i64, scratch_operands = 0 : i64, tpu.core_type = #tpu.core_type<tc>} {
    %c0 = arith.constant 0 : index
    %c0_0 = arith.constant 0 : index
    %0 = vector.load %arg1[%c0, %c0_0] : memref<272x128xf32, #tpu.memory_space<vmem>>, vector<16x128xf32>
    %c16 = arith.constant 16 : index
    %c0_1 = arith.constant 0 : index
    %1 = vector.load %arg1[%c16, %c0_1] : memref<272x128xf32, #tpu.memory_space<vmem>>, vector<32x128xf32>
    %c48 = arith.constant 48 : index
    %c0_2 = arith.constant 0 : index
    %2 = vector.load %arg1[%c48, %c0_2] : memref<272x128xf32, #tpu.memory_space<vmem>>, vector<1x128xf32>
    %c56 = arith.constant 56 : index
    %c0_3 = arith.constant 0 : index
    %3 = vector.load %arg1[%c56, %c0_3] : memref<272x128xf32, #tpu.memory_space<vmem>>, vector<48x128xf32>
    %c104 = arith.constant 104 : index
    %c0_4 = arith.constant 0 : index
    %4 = vector.load %arg1[%c104, %c0_4] : memref<272x128xf32, #tpu.memory_space<vmem>>, vector<1x128xf32>
    %5 = vector.shape_cast %4 : vector<1x128xf32> to vector<1x128xf32>
    %6 = vector.broadcast %5 : vector<1x128xf32> to vector<8x128xf32>
    %c0_5 = arith.constant 0 : index
    %c0_6 = arith.constant 0 : index
    %7 = vector.load %arg0[%c0_5, %c0_6] : memref<64x16xf32, #tpu.memory_space<vmem>>, vector<64x16xf32>
    %cst = arith.constant dense<0.000000e+00> : vector<64x128xf32>
    %8 = tpu.matmul %7, %0, %cst {dimension_numbers = #tpu.dot_dimension_numbers<[1], [0], [0], [1], [0, 0, 1, 1], [], []>, precision = #tpu.contract_precision<fp32>} : vector<64x16xf32>, vector<16x128xf32>, vector<64x128xf32> -> vector<64x128xf32>
    %9 = vector.broadcast %2 : vector<1x128xf32> to vector<64x128xf32>
    %10 = arith.addf %8, %9 : vector<64x128xf32>
    %cst_7 = arith.constant 0.000000e+00 : f32
    %11 = vector.broadcast %cst_7 : f32 to vector<8x32xf32>
    %cst_8 = arith.constant 0.000000e+00 : f32
    %12 = vector.broadcast %cst_8 : f32 to vector<8x32xf32>
    %cst_9 = arith.constant 0.000000e+00 : f32
    %13 = vector.broadcast %cst_9 : f32 to vector<8x16xf32>
    %cst_10 = arith.constant 0.000000e+00 : f32
    %14 = vector.broadcast %cst_10 : f32 to vector<8x16xf32>
    %15 = vector.extract_strided_slice %10 {offsets = [0, 0], sizes = [8, 128], strides = [1, 1]} : vector<64x128xf32> to vector<8x128xf32>
    %cst_11 = arith.constant dense<0.000000e+00> : vector<8x128xf32>
    %16 = tpu.matmul %11, %1, %cst_11 {dimension_numbers = #tpu.dot_dimension_numbers<[1], [0], [0], [1], [0, 0, 1, 1], [], []>, precision = #tpu.contract_precision<fp32>} : vector<8x32xf32>, vector<32x128xf32>, vector<8x128xf32> -> vector<8x128xf32>
    %17 = arith.addf %15, %16 : vector<8x128xf32>
    %cst_12 = arith.constant 5.000000e-01 : f32
    %18 = vector.broadcast %cst_12 : f32 to vector<8x128xf32>
    %19 = arith.mulf %18, %17 : vector<8x128xf32>
    %20 = math.tanh %19 : vector<8x128xf32>
    %cst_13 = arith.constant 1.000000e+00 : f32
    %21 = vector.broadcast %cst_13 : f32 to vector<8x128xf32>
    %22 = arith.addf %20, %21 : vector<8x128xf32>
    %cst_14 = arith.constant 5.000000e-01 : f32
    %23 = vector.broadcast %cst_14 : f32 to vector<8x128xf32>
    %24 = arith.mulf %23, %22 : vector<8x128xf32>
    %25 = math.tanh %17 : vector<8x128xf32>
    %26 = vector.extract_strided_slice %24 {offsets = [0, 0], sizes = [8, 32], strides = [1, 1]} : vector<8x128xf32> to vector<8x32xf32>
    %27 = vector.extract_strided_slice %24 {offsets = [0, 32], sizes = [8, 32], strides = [1, 1]} : vector<8x128xf32> to vector<8x32xf32>
    %28 = vector.extract_strided_slice %25 {offsets = [0, 64], sizes = [8, 32], strides = [1, 1]} : vector<8x128xf32> to vector<8x32xf32>
    %29 = vector.extract_strided_slice %24 {offsets = [0, 96], sizes = [8, 32], strides = [1, 1]} : vector<8x128xf32> to vector<8x32xf32>
    %30 = arith.mulf %27, %12 : vector<8x32xf32>
    %31 = arith.mulf %26, %28 : vector<8x32xf32>
    %32 = arith.addf %30, %31 : vector<8x32xf32>
    %33 = math.tanh %32 : vector<8x32xf32>
    %34 = arith.mulf %29, %33 : vector<8x32xf32>
    %35 = tpu.concatenate %34, %13 in 1 : vector<8x32xf32>, vector<8x16xf32> -> vector<8x48xf32>
    %cst_15 = arith.constant dense<0.000000e+00> : vector<8x128xf32>
    %36 = tpu.matmul %35, %3, %cst_15 {dimension_numbers = #tpu.dot_dimension_numbers<[1], [0], [0], [1], [0, 0, 1, 1], [], []>, precision = #tpu.contract_precision<fp32>} : vector<8x48xf32>, vector<48x128xf32>, vector<8x128xf32> -> vector<8x128xf32>
    %37 = arith.addf %36, %6 : vector<8x128xf32>
    %cst_16 = arith.constant 5.000000e-01 : f32
    %38 = vector.broadcast %cst_16 : f32 to vector<8x128xf32>
    %39 = arith.mulf %38, %37 : vector<8x128xf32>
    %40 = math.tanh %39 : vector<8x128xf32>
    %cst_17 = arith.constant 1.000000e+00 : f32
    %41 = vector.broadcast %cst_17 : f32 to vector<8x128xf32>
    %42 = arith.addf %40, %41 : vector<8x128xf32>
    %cst_18 = arith.constant 5.000000e-01 : f32
    %43 = vector.broadcast %cst_18 : f32 to vector<8x128xf32>
    %44 = arith.mulf %43, %42 : vector<8x128xf32>
    %45 = math.tanh %37 : vector<8x128xf32>
    %46 = vector.extract_strided_slice %44 {offsets = [0, 0], sizes = [8, 16], strides = [1, 1]} : vector<8x128xf32> to vector<8x16xf32>
    %47 = vector.extract_strided_slice %44 {offsets = [0, 16], sizes = [8, 16], strides = [1, 1]} : vector<8x128xf32> to vector<8x16xf32>
    %48 = vector.extract_strided_slice %45 {offsets = [0, 32], sizes = [8, 16], strides = [1, 1]} : vector<8x128xf32> to vector<8x16xf32>
    %49 = vector.extract_strided_slice %44 {offsets = [0, 48], sizes = [8, 16], strides = [1, 1]} : vector<8x128xf32> to vector<8x16xf32>
    %50 = arith.mulf %47, %14 : vector<8x16xf32>
    %51 = arith.mulf %46, %48 : vector<8x16xf32>
    %52 = arith.addf %50, %51 : vector<8x16xf32>
    %53 = math.tanh %52 : vector<8x16xf32>
    %54 = arith.mulf %49, %53 : vector<8x16xf32>
    %55 = vector.extract_strided_slice %10 {offsets = [8, 0], sizes = [8, 128], strides = [1, 1]} : vector<64x128xf32> to vector<8x128xf32>
    %cst_19 = arith.constant dense<0.000000e+00> : vector<8x128xf32>
    %56 = tpu.matmul %34, %1, %cst_19 {dimension_numbers = #tpu.dot_dimension_numbers<[1], [0], [0], [1], [0, 0, 1, 1], [], []>, precision = #tpu.contract_precision<fp32>} : vector<8x32xf32>, vector<32x128xf32>, vector<8x128xf32> -> vector<8x128xf32>
    %57 = arith.addf %55, %56 : vector<8x128xf32>
    %cst_20 = arith.constant 5.000000e-01 : f32
    %58 = vector.broadcast %cst_20 : f32 to vector<8x128xf32>
    %59 = arith.mulf %58, %57 : vector<8x128xf32>
    %60 = math.tanh %59 : vector<8x128xf32>
    %cst_21 = arith.constant 1.000000e+00 : f32
    %61 = vector.broadcast %cst_21 : f32 to vector<8x128xf32>
    %62 = arith.addf %60, %61 : vector<8x128xf32>
    %cst_22 = arith.constant 5.000000e-01 : f32
    %63 = vector.broadcast %cst_22 : f32 to vector<8x128xf32>
    %64 = arith.mulf %63, %62 : vector<8x128xf32>
    %65 = math.tanh %57 : vector<8x128xf32>
    %66 = vector.extract_strided_slice %64 {offsets = [0, 0], sizes = [8, 32], strides = [1, 1]} : vector<8x128xf32> to vector<8x32xf32>
    %67 = vector.extract_strided_slice %64 {offsets = [0, 32], sizes = [8, 32], strides = [1, 1]} : vector<8x128xf32> to vector<8x32xf32>
    %68 = vector.extract_strided_slice %65 {offsets = [0, 64], sizes = [8, 32], strides = [1, 1]} : vector<8x128xf32> to vector<8x32xf32>
    %69 = vector.extract_strided_slice %64 {offsets = [0, 96], sizes = [8, 32], strides = [1, 1]} : vector<8x128xf32> to vector<8x32xf32>
    %70 = arith.mulf %67, %32 : vector<8x32xf32>
    %71 = arith.mulf %66, %68 : vector<8x32xf32>
    %72 = arith.addf %70, %71 : vector<8x32xf32>
    %73 = math.tanh %72 : vector<8x32xf32>
    %74 = arith.mulf %69, %73 : vector<8x32xf32>
    %75 = tpu.concatenate %74, %54 in 1 : vector<8x32xf32>, vector<8x16xf32> -> vector<8x48xf32>
    %cst_23 = arith.constant dense<0.000000e+00> : vector<8x128xf32>
    %76 = tpu.matmul %75, %3, %cst_23 {dimension_numbers = #tpu.dot_dimension_numbers<[1], [0], [0], [1], [0, 0, 1, 1], [], []>, precision = #tpu.contract_precision<fp32>} : vector<8x48xf32>, vector<48x128xf32>, vector<8x128xf32> -> vector<8x128xf32>
    %77 = arith.addf %76, %6 : vector<8x128xf32>
    %cst_24 = arith.constant 5.000000e-01 : f32
    %78 = vector.broadcast %cst_24 : f32 to vector<8x128xf32>
    %79 = arith.mulf %78, %77 : vector<8x128xf32>
    %80 = math.tanh %79 : vector<8x128xf32>
    %cst_25 = arith.constant 1.000000e+00 : f32
    %81 = vector.broadcast %cst_25 : f32 to vector<8x128xf32>
    %82 = arith.addf %80, %81 : vector<8x128xf32>
    %cst_26 = arith.constant 5.000000e-01 : f32
    %83 = vector.broadcast %cst_26 : f32 to vector<8x128xf32>
    %84 = arith.mulf %83, %82 : vector<8x128xf32>
    %85 = math.tanh %77 : vector<8x128xf32>
    %86 = vector.extract_strided_slice %84 {offsets = [0, 0], sizes = [8, 16], strides = [1, 1]} : vector<8x128xf32> to vector<8x16xf32>
    %87 = vector.extract_strided_slice %84 {offsets = [0, 16], sizes = [8, 16], strides = [1, 1]} : vector<8x128xf32> to vector<8x16xf32>
    %88 = vector.extract_strided_slice %85 {offsets = [0, 32], sizes = [8, 16], strides = [1, 1]} : vector<8x128xf32> to vector<8x16xf32>
    %89 = vector.extract_strided_slice %84 {offsets = [0, 48], sizes = [8, 16], strides = [1, 1]} : vector<8x128xf32> to vector<8x16xf32>
    %90 = arith.mulf %87, %52 : vector<8x16xf32>
    %91 = arith.mulf %86, %88 : vector<8x16xf32>
    %92 = arith.addf %90, %91 : vector<8x16xf32>
    %93 = math.tanh %92 : vector<8x16xf32>
    %94 = arith.mulf %89, %93 : vector<8x16xf32>
    %95 = vector.extract_strided_slice %10 {offsets = [16, 0], sizes = [8, 128], strides = [1, 1]} : vector<64x128xf32> to vector<8x128xf32>
    %cst_27 = arith.constant dense<0.000000e+00> : vector<8x128xf32>
    %96 = tpu.matmul %74, %1, %cst_27 {dimension_numbers = #tpu.dot_dimension_numbers<[1], [0], [0], [1], [0, 0, 1, 1], [], []>, precision = #tpu.contract_precision<fp32>} : vector<8x32xf32>, vector<32x128xf32>, vector<8x128xf32> -> vector<8x128xf32>
    %97 = arith.addf %95, %96 : vector<8x128xf32>
    %cst_28 = arith.constant 5.000000e-01 : f32
    %98 = vector.broadcast %cst_28 : f32 to vector<8x128xf32>
    %99 = arith.mulf %98, %97 : vector<8x128xf32>
    %100 = math.tanh %99 : vector<8x128xf32>
    %cst_29 = arith.constant 1.000000e+00 : f32
    %101 = vector.broadcast %cst_29 : f32 to vector<8x128xf32>
    %102 = arith.addf %100, %101 : vector<8x128xf32>
    %cst_30 = arith.constant 5.000000e-01 : f32
    %103 = vector.broadcast %cst_30 : f32 to vector<8x128xf32>
    %104 = arith.mulf %103, %102 : vector<8x128xf32>
    %105 = math.tanh %97 : vector<8x128xf32>
    %106 = vector.extract_strided_slice %104 {offsets = [0, 0], sizes = [8, 32], strides = [1, 1]} : vector<8x128xf32> to vector<8x32xf32>
    %107 = vector.extract_strided_slice %104 {offsets = [0, 32], sizes = [8, 32], strides = [1, 1]} : vector<8x128xf32> to vector<8x32xf32>
    %108 = vector.extract_strided_slice %105 {offsets = [0, 64], sizes = [8, 32], strides = [1, 1]} : vector<8x128xf32> to vector<8x32xf32>
    %109 = vector.extract_strided_slice %104 {offsets = [0, 96], sizes = [8, 32], strides = [1, 1]} : vector<8x128xf32> to vector<8x32xf32>
    %110 = arith.mulf %107, %72 : vector<8x32xf32>
    %111 = arith.mulf %106, %108 : vector<8x32xf32>
    %112 = arith.addf %110, %111 : vector<8x32xf32>
    %113 = math.tanh %112 : vector<8x32xf32>
    %114 = arith.mulf %109, %113 : vector<8x32xf32>
    %115 = tpu.concatenate %114, %94 in 1 : vector<8x32xf32>, vector<8x16xf32> -> vector<8x48xf32>
    %cst_31 = arith.constant dense<0.000000e+00> : vector<8x128xf32>
    %116 = tpu.matmul %115, %3, %cst_31 {dimension_numbers = #tpu.dot_dimension_numbers<[1], [0], [0], [1], [0, 0, 1, 1], [], []>, precision = #tpu.contract_precision<fp32>} : vector<8x48xf32>, vector<48x128xf32>, vector<8x128xf32> -> vector<8x128xf32>
    %117 = arith.addf %116, %6 : vector<8x128xf32>
    %cst_32 = arith.constant 5.000000e-01 : f32
    %118 = vector.broadcast %cst_32 : f32 to vector<8x128xf32>
    %119 = arith.mulf %118, %117 : vector<8x128xf32>
    %120 = math.tanh %119 : vector<8x128xf32>
    %cst_33 = arith.constant 1.000000e+00 : f32
    %121 = vector.broadcast %cst_33 : f32 to vector<8x128xf32>
    %122 = arith.addf %120, %121 : vector<8x128xf32>
    %cst_34 = arith.constant 5.000000e-01 : f32
    %123 = vector.broadcast %cst_34 : f32 to vector<8x128xf32>
    %124 = arith.mulf %123, %122 : vector<8x128xf32>
    %125 = math.tanh %117 : vector<8x128xf32>
    %126 = vector.extract_strided_slice %124 {offsets = [0, 0], sizes = [8, 16], strides = [1, 1]} : vector<8x128xf32> to vector<8x16xf32>
    %127 = vector.extract_strided_slice %124 {offsets = [0, 16], sizes = [8, 16], strides = [1, 1]} : vector<8x128xf32> to vector<8x16xf32>
    %128 = vector.extract_strided_slice %125 {offsets = [0, 32], sizes = [8, 16], strides = [1, 1]} : vector<8x128xf32> to vector<8x16xf32>
    %129 = vector.extract_strided_slice %124 {offsets = [0, 48], sizes = [8, 16], strides = [1, 1]} : vector<8x128xf32> to vector<8x16xf32>
    %130 = arith.mulf %127, %92 : vector<8x16xf32>
    %131 = arith.mulf %126, %128 : vector<8x16xf32>
    %132 = arith.addf %130, %131 : vector<8x16xf32>
    %133 = math.tanh %132 : vector<8x16xf32>
    %134 = arith.mulf %129, %133 : vector<8x16xf32>
    %135 = vector.extract_strided_slice %10 {offsets = [24, 0], sizes = [8, 128], strides = [1, 1]} : vector<64x128xf32> to vector<8x128xf32>
    %cst_35 = arith.constant dense<0.000000e+00> : vector<8x128xf32>
    %136 = tpu.matmul %114, %1, %cst_35 {dimension_numbers = #tpu.dot_dimension_numbers<[1], [0], [0], [1], [0, 0, 1, 1], [], []>, precision = #tpu.contract_precision<fp32>} : vector<8x32xf32>, vector<32x128xf32>, vector<8x128xf32> -> vector<8x128xf32>
    %137 = arith.addf %135, %136 : vector<8x128xf32>
    %cst_36 = arith.constant 5.000000e-01 : f32
    %138 = vector.broadcast %cst_36 : f32 to vector<8x128xf32>
    %139 = arith.mulf %138, %137 : vector<8x128xf32>
    %140 = math.tanh %139 : vector<8x128xf32>
    %cst_37 = arith.constant 1.000000e+00 : f32
    %141 = vector.broadcast %cst_37 : f32 to vector<8x128xf32>
    %142 = arith.addf %140, %141 : vector<8x128xf32>
    %cst_38 = arith.constant 5.000000e-01 : f32
    %143 = vector.broadcast %cst_38 : f32 to vector<8x128xf32>
    %144 = arith.mulf %143, %142 : vector<8x128xf32>
    %145 = math.tanh %137 : vector<8x128xf32>
    %146 = vector.extract_strided_slice %144 {offsets = [0, 0], sizes = [8, 32], strides = [1, 1]} : vector<8x128xf32> to vector<8x32xf32>
    %147 = vector.extract_strided_slice %144 {offsets = [0, 32], sizes = [8, 32], strides = [1, 1]} : vector<8x128xf32> to vector<8x32xf32>
    %148 = vector.extract_strided_slice %145 {offsets = [0, 64], sizes = [8, 32], strides = [1, 1]} : vector<8x128xf32> to vector<8x32xf32>
    %149 = vector.extract_strided_slice %144 {offsets = [0, 96], sizes = [8, 32], strides = [1, 1]} : vector<8x128xf32> to vector<8x32xf32>
    %150 = arith.mulf %147, %112 : vector<8x32xf32>
    %151 = arith.mulf %146, %148 : vector<8x32xf32>
    %152 = arith.addf %150, %151 : vector<8x32xf32>
    %153 = math.tanh %152 : vector<8x32xf32>
    %154 = arith.mulf %149, %153 : vector<8x32xf32>
    %155 = tpu.concatenate %154, %134 in 1 : vector<8x32xf32>, vector<8x16xf32> -> vector<8x48xf32>
    %cst_39 = arith.constant dense<0.000000e+00> : vector<8x128xf32>
    %156 = tpu.matmul %155, %3, %cst_39 {dimension_numbers = #tpu.dot_dimension_numbers<[1], [0], [0], [1], [0, 0, 1, 1], [], []>, precision = #tpu.contract_precision<fp32>} : vector<8x48xf32>, vector<48x128xf32>, vector<8x128xf32> -> vector<8x128xf32>
    %157 = arith.addf %156, %6 : vector<8x128xf32>
    %cst_40 = arith.constant 5.000000e-01 : f32
    %158 = vector.broadcast %cst_40 : f32 to vector<8x128xf32>
    %159 = arith.mulf %158, %157 : vector<8x128xf32>
    %160 = math.tanh %159 : vector<8x128xf32>
    %cst_41 = arith.constant 1.000000e+00 : f32
    %161 = vector.broadcast %cst_41 : f32 to vector<8x128xf32>
    %162 = arith.addf %160, %161 : vector<8x128xf32>
    %cst_42 = arith.constant 5.000000e-01 : f32
    %163 = vector.broadcast %cst_42 : f32 to vector<8x128xf32>
    %164 = arith.mulf %163, %162 : vector<8x128xf32>
    %165 = math.tanh %157 : vector<8x128xf32>
    %166 = vector.extract_strided_slice %164 {offsets = [0, 0], sizes = [8, 16], strides = [1, 1]} : vector<8x128xf32> to vector<8x16xf32>
    %167 = vector.extract_strided_slice %164 {offsets = [0, 16], sizes = [8, 16], strides = [1, 1]} : vector<8x128xf32> to vector<8x16xf32>
    %168 = vector.extract_strided_slice %165 {offsets = [0, 32], sizes = [8, 16], strides = [1, 1]} : vector<8x128xf32> to vector<8x16xf32>
    %169 = vector.extract_strided_slice %164 {offsets = [0, 48], sizes = [8, 16], strides = [1, 1]} : vector<8x128xf32> to vector<8x16xf32>
    %170 = arith.mulf %167, %132 : vector<8x16xf32>
    %171 = arith.mulf %166, %168 : vector<8x16xf32>
    %172 = arith.addf %170, %171 : vector<8x16xf32>
    %173 = math.tanh %172 : vector<8x16xf32>
    %174 = arith.mulf %169, %173 : vector<8x16xf32>
    %175 = vector.extract_strided_slice %10 {offsets = [32, 0], sizes = [8, 128], strides = [1, 1]} : vector<64x128xf32> to vector<8x128xf32>
    %cst_43 = arith.constant dense<0.000000e+00> : vector<8x128xf32>
    %176 = tpu.matmul %154, %1, %cst_43 {dimension_numbers = #tpu.dot_dimension_numbers<[1], [0], [0], [1], [0, 0, 1, 1], [], []>, precision = #tpu.contract_precision<fp32>} : vector<8x32xf32>, vector<32x128xf32>, vector<8x128xf32> -> vector<8x128xf32>
    %177 = arith.addf %175, %176 : vector<8x128xf32>
    %cst_44 = arith.constant 5.000000e-01 : f32
    %178 = vector.broadcast %cst_44 : f32 to vector<8x128xf32>
    %179 = arith.mulf %178, %177 : vector<8x128xf32>
    %180 = math.tanh %179 : vector<8x128xf32>
    %cst_45 = arith.constant 1.000000e+00 : f32
    %181 = vector.broadcast %cst_45 : f32 to vector<8x128xf32>
    %182 = arith.addf %180, %181 : vector<8x128xf32>
    %cst_46 = arith.constant 5.000000e-01 : f32
    %183 = vector.broadcast %cst_46 : f32 to vector<8x128xf32>
    %184 = arith.mulf %183, %182 : vector<8x128xf32>
    %185 = math.tanh %177 : vector<8x128xf32>
    %186 = vector.extract_strided_slice %184 {offsets = [0, 0], sizes = [8, 32], strides = [1, 1]} : vector<8x128xf32> to vector<8x32xf32>
    %187 = vector.extract_strided_slice %184 {offsets = [0, 32], sizes = [8, 32], strides = [1, 1]} : vector<8x128xf32> to vector<8x32xf32>
    %188 = vector.extract_strided_slice %185 {offsets = [0, 64], sizes = [8, 32], strides = [1, 1]} : vector<8x128xf32> to vector<8x32xf32>
    %189 = vector.extract_strided_slice %184 {offsets = [0, 96], sizes = [8, 32], strides = [1, 1]} : vector<8x128xf32> to vector<8x32xf32>
    %190 = arith.mulf %187, %152 : vector<8x32xf32>
    %191 = arith.mulf %186, %188 : vector<8x32xf32>
    %192 = arith.addf %190, %191 : vector<8x32xf32>
    %193 = math.tanh %192 : vector<8x32xf32>
    %194 = arith.mulf %189, %193 : vector<8x32xf32>
    %195 = tpu.concatenate %194, %174 in 1 : vector<8x32xf32>, vector<8x16xf32> -> vector<8x48xf32>
    %cst_47 = arith.constant dense<0.000000e+00> : vector<8x128xf32>
    %196 = tpu.matmul %195, %3, %cst_47 {dimension_numbers = #tpu.dot_dimension_numbers<[1], [0], [0], [1], [0, 0, 1, 1], [], []>, precision = #tpu.contract_precision<fp32>} : vector<8x48xf32>, vector<48x128xf32>, vector<8x128xf32> -> vector<8x128xf32>
    %197 = arith.addf %196, %6 : vector<8x128xf32>
    %cst_48 = arith.constant 5.000000e-01 : f32
    %198 = vector.broadcast %cst_48 : f32 to vector<8x128xf32>
    %199 = arith.mulf %198, %197 : vector<8x128xf32>
    %200 = math.tanh %199 : vector<8x128xf32>
    %cst_49 = arith.constant 1.000000e+00 : f32
    %201 = vector.broadcast %cst_49 : f32 to vector<8x128xf32>
    %202 = arith.addf %200, %201 : vector<8x128xf32>
    %cst_50 = arith.constant 5.000000e-01 : f32
    %203 = vector.broadcast %cst_50 : f32 to vector<8x128xf32>
    %204 = arith.mulf %203, %202 : vector<8x128xf32>
    %205 = math.tanh %197 : vector<8x128xf32>
    %206 = vector.extract_strided_slice %204 {offsets = [0, 0], sizes = [8, 16], strides = [1, 1]} : vector<8x128xf32> to vector<8x16xf32>
    %207 = vector.extract_strided_slice %204 {offsets = [0, 16], sizes = [8, 16], strides = [1, 1]} : vector<8x128xf32> to vector<8x16xf32>
    %208 = vector.extract_strided_slice %205 {offsets = [0, 32], sizes = [8, 16], strides = [1, 1]} : vector<8x128xf32> to vector<8x16xf32>
    %209 = vector.extract_strided_slice %204 {offsets = [0, 48], sizes = [8, 16], strides = [1, 1]} : vector<8x128xf32> to vector<8x16xf32>
    %210 = arith.mulf %207, %172 : vector<8x16xf32>
    %211 = arith.mulf %206, %208 : vector<8x16xf32>
    %212 = arith.addf %210, %211 : vector<8x16xf32>
    %213 = math.tanh %212 : vector<8x16xf32>
    %214 = arith.mulf %209, %213 : vector<8x16xf32>
    %215 = vector.extract_strided_slice %10 {offsets = [40, 0], sizes = [8, 128], strides = [1, 1]} : vector<64x128xf32> to vector<8x128xf32>
    %cst_51 = arith.constant dense<0.000000e+00> : vector<8x128xf32>
    %216 = tpu.matmul %194, %1, %cst_51 {dimension_numbers = #tpu.dot_dimension_numbers<[1], [0], [0], [1], [0, 0, 1, 1], [], []>, precision = #tpu.contract_precision<fp32>} : vector<8x32xf32>, vector<32x128xf32>, vector<8x128xf32> -> vector<8x128xf32>
    %217 = arith.addf %215, %216 : vector<8x128xf32>
    %cst_52 = arith.constant 5.000000e-01 : f32
    %218 = vector.broadcast %cst_52 : f32 to vector<8x128xf32>
    %219 = arith.mulf %218, %217 : vector<8x128xf32>
    %220 = math.tanh %219 : vector<8x128xf32>
    %cst_53 = arith.constant 1.000000e+00 : f32
    %221 = vector.broadcast %cst_53 : f32 to vector<8x128xf32>
    %222 = arith.addf %220, %221 : vector<8x128xf32>
    %cst_54 = arith.constant 5.000000e-01 : f32
    %223 = vector.broadcast %cst_54 : f32 to vector<8x128xf32>
    %224 = arith.mulf %223, %222 : vector<8x128xf32>
    %225 = math.tanh %217 : vector<8x128xf32>
    %226 = vector.extract_strided_slice %224 {offsets = [0, 0], sizes = [8, 32], strides = [1, 1]} : vector<8x128xf32> to vector<8x32xf32>
    %227 = vector.extract_strided_slice %224 {offsets = [0, 32], sizes = [8, 32], strides = [1, 1]} : vector<8x128xf32> to vector<8x32xf32>
    %228 = vector.extract_strided_slice %225 {offsets = [0, 64], sizes = [8, 32], strides = [1, 1]} : vector<8x128xf32> to vector<8x32xf32>
    %229 = vector.extract_strided_slice %224 {offsets = [0, 96], sizes = [8, 32], strides = [1, 1]} : vector<8x128xf32> to vector<8x32xf32>
    %230 = arith.mulf %227, %192 : vector<8x32xf32>
    %231 = arith.mulf %226, %228 : vector<8x32xf32>
    %232 = arith.addf %230, %231 : vector<8x32xf32>
    %233 = math.tanh %232 : vector<8x32xf32>
    %234 = arith.mulf %229, %233 : vector<8x32xf32>
    %235 = tpu.concatenate %234, %214 in 1 : vector<8x32xf32>, vector<8x16xf32> -> vector<8x48xf32>
    %cst_55 = arith.constant dense<0.000000e+00> : vector<8x128xf32>
    %236 = tpu.matmul %235, %3, %cst_55 {dimension_numbers = #tpu.dot_dimension_numbers<[1], [0], [0], [1], [0, 0, 1, 1], [], []>, precision = #tpu.contract_precision<fp32>} : vector<8x48xf32>, vector<48x128xf32>, vector<8x128xf32> -> vector<8x128xf32>
    %237 = arith.addf %236, %6 : vector<8x128xf32>
    %cst_56 = arith.constant 5.000000e-01 : f32
    %238 = vector.broadcast %cst_56 : f32 to vector<8x128xf32>
    %239 = arith.mulf %238, %237 : vector<8x128xf32>
    %240 = math.tanh %239 : vector<8x128xf32>
    %cst_57 = arith.constant 1.000000e+00 : f32
    %241 = vector.broadcast %cst_57 : f32 to vector<8x128xf32>
    %242 = arith.addf %240, %241 : vector<8x128xf32>
    %cst_58 = arith.constant 5.000000e-01 : f32
    %243 = vector.broadcast %cst_58 : f32 to vector<8x128xf32>
    %244 = arith.mulf %243, %242 : vector<8x128xf32>
    %245 = math.tanh %237 : vector<8x128xf32>
    %246 = vector.extract_strided_slice %244 {offsets = [0, 0], sizes = [8, 16], strides = [1, 1]} : vector<8x128xf32> to vector<8x16xf32>
    %247 = vector.extract_strided_slice %244 {offsets = [0, 16], sizes = [8, 16], strides = [1, 1]} : vector<8x128xf32> to vector<8x16xf32>
    %248 = vector.extract_strided_slice %245 {offsets = [0, 32], sizes = [8, 16], strides = [1, 1]} : vector<8x128xf32> to vector<8x16xf32>
    %249 = vector.extract_strided_slice %244 {offsets = [0, 48], sizes = [8, 16], strides = [1, 1]} : vector<8x128xf32> to vector<8x16xf32>
    %250 = arith.mulf %247, %212 : vector<8x16xf32>
    %251 = arith.mulf %246, %248 : vector<8x16xf32>
    %252 = arith.addf %250, %251 : vector<8x16xf32>
    %253 = math.tanh %252 : vector<8x16xf32>
    %254 = arith.mulf %249, %253 : vector<8x16xf32>
    %255 = vector.extract_strided_slice %10 {offsets = [48, 0], sizes = [8, 128], strides = [1, 1]} : vector<64x128xf32> to vector<8x128xf32>
    %cst_59 = arith.constant dense<0.000000e+00> : vector<8x128xf32>
    %256 = tpu.matmul %234, %1, %cst_59 {dimension_numbers = #tpu.dot_dimension_numbers<[1], [0], [0], [1], [0, 0, 1, 1], [], []>, precision = #tpu.contract_precision<fp32>} : vector<8x32xf32>, vector<32x128xf32>, vector<8x128xf32> -> vector<8x128xf32>
    %257 = arith.addf %255, %256 : vector<8x128xf32>
    %cst_60 = arith.constant 5.000000e-01 : f32
    %258 = vector.broadcast %cst_60 : f32 to vector<8x128xf32>
    %259 = arith.mulf %258, %257 : vector<8x128xf32>
    %260 = math.tanh %259 : vector<8x128xf32>
    %cst_61 = arith.constant 1.000000e+00 : f32
    %261 = vector.broadcast %cst_61 : f32 to vector<8x128xf32>
    %262 = arith.addf %260, %261 : vector<8x128xf32>
    %cst_62 = arith.constant 5.000000e-01 : f32
    %263 = vector.broadcast %cst_62 : f32 to vector<8x128xf32>
    %264 = arith.mulf %263, %262 : vector<8x128xf32>
    %265 = math.tanh %257 : vector<8x128xf32>
    %266 = vector.extract_strided_slice %264 {offsets = [0, 0], sizes = [8, 32], strides = [1, 1]} : vector<8x128xf32> to vector<8x32xf32>
    %267 = vector.extract_strided_slice %264 {offsets = [0, 32], sizes = [8, 32], strides = [1, 1]} : vector<8x128xf32> to vector<8x32xf32>
    %268 = vector.extract_strided_slice %265 {offsets = [0, 64], sizes = [8, 32], strides = [1, 1]} : vector<8x128xf32> to vector<8x32xf32>
    %269 = vector.extract_strided_slice %264 {offsets = [0, 96], sizes = [8, 32], strides = [1, 1]} : vector<8x128xf32> to vector<8x32xf32>
    %270 = arith.mulf %267, %232 : vector<8x32xf32>
    %271 = arith.mulf %266, %268 : vector<8x32xf32>
    %272 = arith.addf %270, %271 : vector<8x32xf32>
    %273 = math.tanh %272 : vector<8x32xf32>
    %274 = arith.mulf %269, %273 : vector<8x32xf32>
    %275 = tpu.concatenate %274, %254 in 1 : vector<8x32xf32>, vector<8x16xf32> -> vector<8x48xf32>
    %cst_63 = arith.constant dense<0.000000e+00> : vector<8x128xf32>
    %276 = tpu.matmul %275, %3, %cst_63 {dimension_numbers = #tpu.dot_dimension_numbers<[1], [0], [0], [1], [0, 0, 1, 1], [], []>, precision = #tpu.contract_precision<fp32>} : vector<8x48xf32>, vector<48x128xf32>, vector<8x128xf32> -> vector<8x128xf32>
    %277 = arith.addf %276, %6 : vector<8x128xf32>
    %cst_64 = arith.constant 5.000000e-01 : f32
    %278 = vector.broadcast %cst_64 : f32 to vector<8x128xf32>
    %279 = arith.mulf %278, %277 : vector<8x128xf32>
    %280 = math.tanh %279 : vector<8x128xf32>
    %cst_65 = arith.constant 1.000000e+00 : f32
    %281 = vector.broadcast %cst_65 : f32 to vector<8x128xf32>
    %282 = arith.addf %280, %281 : vector<8x128xf32>
    %cst_66 = arith.constant 5.000000e-01 : f32
    %283 = vector.broadcast %cst_66 : f32 to vector<8x128xf32>
    %284 = arith.mulf %283, %282 : vector<8x128xf32>
    %285 = math.tanh %277 : vector<8x128xf32>
    %286 = vector.extract_strided_slice %284 {offsets = [0, 0], sizes = [8, 16], strides = [1, 1]} : vector<8x128xf32> to vector<8x16xf32>
    %287 = vector.extract_strided_slice %284 {offsets = [0, 16], sizes = [8, 16], strides = [1, 1]} : vector<8x128xf32> to vector<8x16xf32>
    %288 = vector.extract_strided_slice %285 {offsets = [0, 32], sizes = [8, 16], strides = [1, 1]} : vector<8x128xf32> to vector<8x16xf32>
    %289 = vector.extract_strided_slice %284 {offsets = [0, 48], sizes = [8, 16], strides = [1, 1]} : vector<8x128xf32> to vector<8x16xf32>
    %290 = arith.mulf %287, %252 : vector<8x16xf32>
    %291 = arith.mulf %286, %288 : vector<8x16xf32>
    %292 = arith.addf %290, %291 : vector<8x16xf32>
    %293 = math.tanh %292 : vector<8x16xf32>
    %294 = arith.mulf %289, %293 : vector<8x16xf32>
    %295 = vector.extract_strided_slice %10 {offsets = [56, 0], sizes = [8, 128], strides = [1, 1]} : vector<64x128xf32> to vector<8x128xf32>
    %cst_67 = arith.constant dense<0.000000e+00> : vector<8x128xf32>
    %296 = tpu.matmul %274, %1, %cst_67 {dimension_numbers = #tpu.dot_dimension_numbers<[1], [0], [0], [1], [0, 0, 1, 1], [], []>, precision = #tpu.contract_precision<fp32>} : vector<8x32xf32>, vector<32x128xf32>, vector<8x128xf32> -> vector<8x128xf32>
    %297 = arith.addf %295, %296 : vector<8x128xf32>
    %cst_68 = arith.constant 5.000000e-01 : f32
    %298 = vector.broadcast %cst_68 : f32 to vector<8x128xf32>
    %299 = arith.mulf %298, %297 : vector<8x128xf32>
    %300 = math.tanh %299 : vector<8x128xf32>
    %cst_69 = arith.constant 1.000000e+00 : f32
    %301 = vector.broadcast %cst_69 : f32 to vector<8x128xf32>
    %302 = arith.addf %300, %301 : vector<8x128xf32>
    %cst_70 = arith.constant 5.000000e-01 : f32
    %303 = vector.broadcast %cst_70 : f32 to vector<8x128xf32>
    %304 = arith.mulf %303, %302 : vector<8x128xf32>
    %305 = math.tanh %297 : vector<8x128xf32>
    %306 = vector.extract_strided_slice %304 {offsets = [0, 0], sizes = [8, 32], strides = [1, 1]} : vector<8x128xf32> to vector<8x32xf32>
    %307 = vector.extract_strided_slice %304 {offsets = [0, 32], sizes = [8, 32], strides = [1, 1]} : vector<8x128xf32> to vector<8x32xf32>
    %308 = vector.extract_strided_slice %305 {offsets = [0, 64], sizes = [8, 32], strides = [1, 1]} : vector<8x128xf32> to vector<8x32xf32>
    %309 = vector.extract_strided_slice %304 {offsets = [0, 96], sizes = [8, 32], strides = [1, 1]} : vector<8x128xf32> to vector<8x32xf32>
    %310 = arith.mulf %307, %272 : vector<8x32xf32>
    %311 = arith.mulf %306, %308 : vector<8x32xf32>
    %312 = arith.addf %310, %311 : vector<8x32xf32>
    %313 = math.tanh %312 : vector<8x32xf32>
    %314 = arith.mulf %309, %313 : vector<8x32xf32>
    %315 = tpu.concatenate %314, %294 in 1 : vector<8x32xf32>, vector<8x16xf32> -> vector<8x48xf32>
    %cst_71 = arith.constant dense<0.000000e+00> : vector<8x128xf32>
    %316 = tpu.matmul %315, %3, %cst_71 {dimension_numbers = #tpu.dot_dimension_numbers<[1], [0], [0], [1], [0, 0, 1, 1], [], []>, precision = #tpu.contract_precision<fp32>} : vector<8x48xf32>, vector<48x128xf32>, vector<8x128xf32> -> vector<8x128xf32>
    %317 = arith.addf %316, %6 : vector<8x128xf32>
    %cst_72 = arith.constant 5.000000e-01 : f32
    %318 = vector.broadcast %cst_72 : f32 to vector<8x128xf32>
    %319 = arith.mulf %318, %317 : vector<8x128xf32>
    %320 = math.tanh %319 : vector<8x128xf32>
    %cst_73 = arith.constant 1.000000e+00 : f32
    %321 = vector.broadcast %cst_73 : f32 to vector<8x128xf32>
    %322 = arith.addf %320, %321 : vector<8x128xf32>
    %cst_74 = arith.constant 5.000000e-01 : f32
    %323 = vector.broadcast %cst_74 : f32 to vector<8x128xf32>
    %324 = arith.mulf %323, %322 : vector<8x128xf32>
    %325 = math.tanh %317 : vector<8x128xf32>
    %326 = vector.extract_strided_slice %324 {offsets = [0, 0], sizes = [8, 16], strides = [1, 1]} : vector<8x128xf32> to vector<8x16xf32>
    %327 = vector.extract_strided_slice %324 {offsets = [0, 16], sizes = [8, 16], strides = [1, 1]} : vector<8x128xf32> to vector<8x16xf32>
    %328 = vector.extract_strided_slice %325 {offsets = [0, 32], sizes = [8, 16], strides = [1, 1]} : vector<8x128xf32> to vector<8x16xf32>
    %329 = vector.extract_strided_slice %324 {offsets = [0, 48], sizes = [8, 16], strides = [1, 1]} : vector<8x128xf32> to vector<8x16xf32>
    %330 = arith.mulf %327, %292 : vector<8x16xf32>
    %331 = arith.mulf %326, %328 : vector<8x16xf32>
    %332 = arith.addf %330, %331 : vector<8x16xf32>
    %333 = math.tanh %332 : vector<8x16xf32>
    %334 = arith.mulf %329, %333 : vector<8x16xf32>
    %c112 = arith.constant 112 : index
    %c0_75 = arith.constant 0 : index
    %335 = vector.load %arg1[%c112, %c0_75] : memref<272x128xf32, #tpu.memory_space<vmem>>, vector<16x128xf32>
    %c128 = arith.constant 128 : index
    %c0_76 = arith.constant 0 : index
    %336 = vector.load %arg1[%c128, %c0_76] : memref<272x128xf32, #tpu.memory_space<vmem>>, vector<1x128xf32>
    %c136 = arith.constant 136 : index
    %c0_77 = arith.constant 0 : index
    %337 = vector.load %arg1[%c136, %c0_77] : memref<272x128xf32, #tpu.memory_space<vmem>>, vector<128x128xf32>
    %c264 = arith.constant 264 : index
    %c0_78 = arith.constant 0 : index
    %338 = vector.load %arg1[%c264, %c0_78] : memref<272x128xf32, #tpu.memory_space<vmem>>, vector<1x128xf32>
    %cst_79 = arith.constant dense<0.000000e+00> : vector<8x128xf32>
    %339 = tpu.matmul %334, %335, %cst_79 {dimension_numbers = #tpu.dot_dimension_numbers<[1], [0], [0], [1], [0, 0, 1, 1], [], []>, precision = #tpu.contract_precision<fp32>} : vector<8x16xf32>, vector<16x128xf32>, vector<8x128xf32> -> vector<8x128xf32>
    %340 = vector.broadcast %336 : vector<1x128xf32> to vector<8x128xf32>
    %341 = arith.addf %339, %340 : vector<8x128xf32>
    %cst_80 = arith.constant 5.000000e-01 : f32
    %342 = vector.broadcast %cst_80 : f32 to vector<8x128xf32>
    %343 = arith.mulf %342, %341 : vector<8x128xf32>
    %344 = math.tanh %343 : vector<8x128xf32>
    %cst_81 = arith.constant 1.000000e+00 : f32
    %345 = vector.broadcast %cst_81 : f32 to vector<8x128xf32>
    %346 = arith.addf %344, %345 : vector<8x128xf32>
    %cst_82 = arith.constant 5.000000e-01 : f32
    %347 = vector.broadcast %cst_82 : f32 to vector<8x128xf32>
    %348 = arith.mulf %347, %346 : vector<8x128xf32>
    %cst_83 = arith.constant dense<0.000000e+00> : vector<8x128xf32>
    %349 = tpu.matmul %348, %337, %cst_83 {dimension_numbers = #tpu.dot_dimension_numbers<[1], [0], [0], [1], [0, 0, 1, 1], [], []>, precision = #tpu.contract_precision<fp32>} : vector<8x128xf32>, vector<128x128xf32>, vector<8x128xf32> -> vector<8x128xf32>
    %350 = vector.broadcast %338 : vector<1x128xf32> to vector<8x128xf32>
    %351 = arith.addf %349, %350 : vector<8x128xf32>
    %c0_84 = arith.constant 0 : index
    %c0_85 = arith.constant 0 : index
    %352 = vector.load %arg2[%c0_84, %c0_85] : memref<8x128xf32, #tpu.memory_space<vmem>>, vector<8x128xf32>
    tpu.vector_store %arg2[%c0_84, %c0_85], %351 {strides = array<i32>} : memref<8x128xf32, #tpu.memory_space<vmem>>, vector<8x128xf32>,
    return
  }
}

</mosaic_0001>

<bundles_post_ra>
// kernel: transportation_lstm_forward.1
= control target key start
LH: loop header
LB: loop body
LE: loop exit
PB: predicated region body
PF: predicated region fallthrough
CT: control target
= control target key end

     0   :  { %7 = vsyncpa [#allocation3], 0  ;;  %s4773_s12 = smov [#allocation2]   ;;  %s4774_s14 = smov 128   ;;  %s6042_s0 = inlined_call_operand.vmem [shape: f32[64,16], index: 0, kind: input, shape index: {}]   ;;  %s6043_s1 = inlined_call_operand.hbm [shape: f32[272,128], index: 1, kind: input, shape index: {}]   ;;  %s6044_s2 = inlined_call_operand.vmem [shape: f32[8,128], index: 2, kind: output, shape index: {}]  }
   0x1   :  { %s14_s11 = sshll.u32 %s6043_s1, 4  ;;  %s16_s13 = sshll.u32 %s4773_s12, 4  ;;  %s15_s11 = int_to_ptr.hbm [resolvable:$true] %s14_s11  ;;  %s17_s13 = int_to_ptr.vmem [resolvable:$true] %s16_s13 }
   0x2   :  { %s4775_s15 = smov 8  }
   0x3   :  { %22 = dma.hbm_to_vmem [thread:$0]  %s15_s11, 4352, %s17_s13, [#allocation3], %s4774_s14, %s4774_s14, %s4775_s15  }
   0x4   :  { %4771 = dma.done.wait [#allocation3], 4352  }
   0x5   :  { %4772 = vsyncadd [#allocation3], 4294962944  ;;  %vm51_vm0 = vcmask 130048   ;;  %v28_v0 = vld [vmem:[#allocation2 + $0x8] sm:$0xff]  ;;  %v27_v1 = vld [vmem:[#allocation2] sm:$0xff]  ;;  %s4778_s3 = smov 32  }
   0x6   :  { %v42_v2 = vld [vmem:[%s6042_s0] sm:$0xff]  ;;  %v4804_v3 = vand.u32 4294901760, %v28_v0  ;;  %v4806_v4 = vand.u32 4294901760, %v27_v1  ;;  %v48_v6 = vld [vmem:[%s6042_s0 + $0x30] sm:$0xff]  ;;  %v43_v7 = vld [vmem:[%s6042_s0 + $0x8] sm:$0xff]  ;;  %vm452_vm1 = vcmask 261120  }
   0x7   :  { %v53_v5 = vsel %vm51_vm0, %v42_v2, 0  ;;  %v49_v8 = vld [vmem:[%s6042_s0 + $0x38] sm:$0xff]  ;;  %v71_v10 = vsel %vm51_vm0, %v48_v6, 0  ;;  %v56_v11 = vsel %vm51_vm0, %v43_v7, 0  ;;  %v44_v13 = vld [vmem:[%s6042_s0 + $0x10] sm:$0xff]  ;;  %v32_v14 = vld [vmem:[#allocation2 + $0x28] sm:$0xff] }
   0x8   :  { %v4818_v9 = vand.u32 4294901760, %v53_v5  ;;  %v74_v12 = vsel %vm51_vm0, %v49_v8, 0  ;;  %91 = vmatpush.msra.mxu0 %v4804_v3  ;;  %4628 = vmatpush.msra.mxu2 %v4804_v3  ;;  %v174_v15 = vsub.f32 %v28_v0, %v4804_v3  ;;  %v4829_v16 = vand.u32 4294901760, %v71_v10  ;;  %v45_v42 = vld [vmem:[%s6042_s0 + $0x18] sm:$0xff]  ;;  %v31_v49 = vld [vmem:[#allocation2 + $0x20] sm:$0xff]  ;;  %s4779_s4 = smov 96  }
   0x9   :  { %v180_v17 = vsub.f32 %v27_v1, %v4806_v4  ;;  %v4832_v18 = vand.u32 4294901760, %v56_v11  ;;  %v4837_v20 = vand.u32 4294901760, %v74_v12  ;;  %v59_v21 = vsel %vm51_vm0, %v44_v13, 0  ;;  %v46_v57 = vld [vmem:[%s6042_s0 + $0x20] sm:$0xff]  ;;  %v30_v7 = vld [vmem:[#allocation2 + $0x18] sm:$0xff]  ;;  %s4780_s5 = smov 16  }
   0xa   :  { %v4835_v19 = vsub.f32 %v53_v5, %v4818_v9  ;;  %v4840_v22 = vand.u32 4294901760, %v32_v14  ;;  %93 = vmatpush.msra.mxu0 %v4806_v4  ;;  %4629 = vmatpush.msra.mxu2 %v4806_v4  ;;  %v175_v23 = vand.u32 4294901760, %v174_v15  ;;  %v4845_v24 = vsub.f32 %v71_v10, %v4829_v16  ;;  %s4781_s6 = smov 112   ;;  %s4782_s7 = smov 80  }
   0xb   :  { %v181_v25 = vand.u32 4294901760, %v180_v17  ;;  %v4848_v26 = vsub.f32 %v56_v11, %v4832_v18  ;;  %v4852_v28 = vsub.f32 %v74_v12, %v4837_v20  ;;  %v4862_v35 = vand.u32 4294901760, %v59_v21 }
   0xc   :  { %v96_v27 = vand.u32 4294901760, %v4835_v19  ;;  %234 = vmatpush.msrb.mxu2 %v174_v15  ;;  %v4855_v29 = vsub.f32 %v32_v14, %v4840_v22  ;;  %v176_v30 = vsub.f32 %v174_v15, %v175_v23  ;;  %v144_v31 = vand.u32 4294901760, %v4845_v24  ;;  %363 = vmatpush.msrb.mxu0 %v175_v23 }
   0xd   :  { %v182_v32 = vsub.f32 %v180_v17, %v181_v25  ;;  %v104_v34 = vand.u32 4294901760, %v4848_v26  ;;  %v152_v40 = vand.u32 4294901760, %v4852_v28  ;;  %v4880_v46 = vsub.f32 %v59_v21, %v4862_v35 }
   0xe   :  { %v97_v33 = vsub.f32 %v4835_v19, %v96_v27  ;;  %237 = vmatpush.msrb.mxu2 %v180_v17  ;;  %v4865_v36 = vand.u32 4294901760, %v4855_v29  ;;  %v177_v37 = vand.u32 4294901760, %v176_v30  ;;  %v145_v38 = vsub.f32 %v4845_v24, %v144_v31  ;;  %367 = vmatpush.msrb.mxu0 %v181_v25  ;;  %v29_v30 = vld [vmem:[#allocation2 + $0x10] sm:$0xff] }
   0xf   :  { %v183_v39 = vand.u32 4294901760, %v182_v32  ;;  %v105_v45 = vsub.f32 %v4848_v26, %v104_v34  ;;  %v153_v47 = vsub.f32 %v4852_v28, %v152_v40  ;;  %v62_v48 = vsel %vm51_vm0, %v45_v42, 0 }
  0x10   :  { %v98_v41 = vand.u32 4294901760, %v97_v33  ;;  %178 = vmatpush.msra.mxu1 %v177_v37  ;;  %4630 = vmatpush.msra.mxu3 %v177_v37  ;;  %v146_v43 = vand.u32 4294901760, %v145_v38  ;;  %v500_v44 = vsub.f32 %v4855_v29, %v4865_v36  ;;  %v4887_v50 = vand.u32 4294901760, %v31_v49 }
  0x11   :  { %v106_v52 = vand.u32 4294901760, %v105_v45  ;;  %v112_v53 = vand.u32 4294901760, %v4880_v46  ;;  %v4895_v54 = vand.u32 4294901760, %v62_v48  ;;  %v154_v56 = vand.u32 4294901760, %v153_v47 }
  0x12   :  { %99 = vmatmul.f32.vlgmr.msra.gmra.mxu0 %v98_v41  ;;  %147 = vmatmul.f32.vlgmr.msra.gmra.mxu2 %v146_v43  ;;  %v4891_v51 = vand.u32 4294901760, %v500_v44  ;;  %v4898_v55 = vsub.f32 %v31_v49, %v4887_v50  ;;  %v65_v62 = vsel %vm51_vm0, %v46_v57, 0  ;;  %v4938_v8 = vand.u32 4294901760, %v30_v7 }
  0x13   :  { %184 = vmatpush.msra.mxu1 %v183_v39  ;;  %4631 = vmatpush.msra.mxu3 %v183_v39  ;;  %v113_v59 = vsub.f32 %v4880_v46, %v112_v53  ;;  %v4915_v60 = vsub.f32 %v62_v48, %v4895_v54  ;;  %v4927_v2 = vand.u32 4294901760, %v65_v62  ;;  %v4965_v32 = vand.u32 4294901760, %v29_v30 }
  0x14   :  { %186 = vmatmul.f32.vlgmr.msra.gmra.mxu1 %v4818_v9  ;;  %210 = vmatmul.f32.vlgmr.msra.gmra.mxu3 %v4829_v16  ;;  %v4908_v58 = vand.u32 4294901760, %v4898_v55  ;;  %v4946_v13 = vsub.f32 %v30_v7, %v4938_v8  ;;  %vm669_vm2 = vcmask 392192  }
  0x15   :  { %469 = vmatpush.msra.mxu2 %v4840_v22  ;;  %294 = vmatpush.msrb.mxu3 %v4804_v3  ;;  %v114_v0 = vand.u32 4294901760, %v113_v59  ;;  %v120_v1 = vand.u32 4294901760, %v4915_v60  ;;  %v127_v5 = vsub.f32 %v65_v62, %v4927_v2 }
  0x16   :  { %416 = vmatpush.msrb.mxu1 %v4804_v3  ;;  %992 = vmatpush.msra.mxu0 %v4855_v29  ;;  %v506_v61 = vsub.f32 %v4898_v55, %v4908_v58  ;;  %v47_v3 = vld [vmem:[%s6042_s0 + $0x28] sm:$0xff]  ;;  %v4950_v14 = vand.u32 4294901760, %v4946_v13  ;;  %s4777_s0 = smov 64  }
  0x17   :  { %471 = vmatpush.msra.mxu2 %v4887_v50  ;;  %296 = vmatpush.msrb.mxu3 %v4806_v4  ;;  %v68_v6 = vsel %vm51_vm0, %v47_v3, 0  ;;  %v128_v11 = vand.u32 4294901760, %v127_v5  ;;  %v5073_v3 = vld [vmem:[#allocation2 + $0x30] ss:$0 sm:$0xff] }
  0x18   :  { %418 = vmatpush.msrb.mxu1 %v4806_v4  ;;  %995 = vmatpush.msra.mxu0 %v4898_v55  ;;  %v4922_v63 = vand.u32 4294901760, %v506_v61  ;;  %v121_v4 = vsub.f32 %v4915_v60, %v120_v1  ;;  %v4942_v12 = vand.u32 4294901760, %v68_v6 }
  0x19   :  { %502 = vmatpush.msra.mxu3 %v4891_v51  ;;  %473 = vmatpush.msra.mxu2 %v4938_v8  ;;  %v129_v15 = vsub.f32 %v127_v5, %v128_v11 }
  0x1a   :  { %1021 = vmatpush.msra.mxu1 %v4840_v22  ;;  %107 = vmatmul.f32.gmra.mxu0 %v106_v52  ;;  %v122_v10 = vand.u32 4294901760, %v121_v4  ;;  %v135_v17 = vsub.f32 %v68_v6, %v4942_v12 }
  0x1b   :  { %155 = vmatmul.f32.gmra.mxu2 %v154_v56  ;;  %508 = vmatpush.msra.mxu3 %v4922_v63  ;;  %v130_v23 = vand.u32 4294901760, %v129_v15 }
  0x1c   :  { %190 = vmatmul.f32.gmra.mxu1 %v4832_v18  ;;  %214 = vmatmul.f32.gmra.mxu3 %v4837_v20  ;;  %v136_v25 = vand.u32 4294901760, %v135_v17 }
  0x1d   :  { %1023 = vmatpush.msra.mxu1 %v4887_v50  ;;  %998 = vmatpush.msra.mxu0 %v4946_v13 }
  0x1e   :  { %475 = vmatpush.msra.mxu2 %v4965_v32 }
  0x1f   :  { %1025 = vmatpush.msra.mxu1 %v4938_v8 }
  0x21   :  { %1027 = vmatpush.msra.mxu1 %v4965_v32 }
  0x22   :  { %115 = vmatmul.f32.gmra.mxu0 %v114_v0 }
  0x23   :  { %240 = vmatmul.f32.vlgmr.msrb.gmra.mxu2 %v4835_v19  ;;  %v512_v19 = vsub.f32 %v4946_v13, %v4950_v14 }
  0x24   :  { %194 = vmatmul.f32.gmra.mxu1 %v4862_v35  ;;  %300 = vmatmul.f32.vlgmr.msrb.gmra.mxu3 %v96_v27  ;;  %v137_v27 = vsub.f32 %v135_v17, %v136_v25 }
  0x25   :  { %v4958_v21 = vand.u32 4294901760, %v512_v19  ;;  %540 = vmatpush.msrb.mxu2 %v4855_v29 }
  0x26   :  { %v138_v33 = vand.u32 4294901760, %v137_v27 }
  0x27   :  { %6059 = vst [vmem:[#allocation5_spill] sm:$0xff] %v4958_v21  ;;  %514 = vmatpush.msra.mxu3 %v4958_v21  ;;  %543 = vmatpush.msrb.mxu2 %v4898_v55 }
  0x29   :  { %546 = vmatpush.msrb.mxu2 %v4946_v13 }
  0x2a   :  { %123 = vmatmul.f32.gmra.mxu0 %v122_v10 }
  0x2b   :  { %245 = vmatmul.f32.gmra.mxu2 %v4848_v26  ;;  %v4969_v26 = vsub.f32 %v29_v30, %v4965_v32 }
  0x2c   :  { %198 = vmatmul.f32.gmra.mxu1 %v4895_v54  ;;  %306 = vmatmul.f32.gmra.mxu3 %v104_v34 }
  0x2d   :  { %v4974_v34 = vand.u32 4294901760, %v4969_v26  ;;  %1001 = vmatpush.msra.mxu0 %v4969_v26  ;;  %549 = vmatpush.msrb.mxu2 %v4969_v26 }
  0x2f   :  { %v518_v37 = vsub.f32 %v4969_v26, %v4974_v34 }
  0x31   :  { %v4982_v38 = vand.u32 4294901760, %v518_v37 }
  0x32   :  { %131 = vmatmul.f32.gmra.mxu0 %v130_v23 }
  0x33   :  { %250 = vmatmul.f32.gmra.mxu2 %v4880_v46  ;;  %6060 = vst [vmem:[#allocation6_spill] sm:$0xff] %v4982_v38  ;;  %520 = vmatpush.msra.mxu3 %v4982_v38 }
  0x34   :  { %202 = vmatmul.f32.gmra.mxu1 %v4927_v2  ;;  %312 = vmatmul.f32.gmra.mxu3 %v112_v53 }
  0x35   :  { %569 = vmatpush.msrb.mxu3 %v4840_v22 }
  0x37   :  { %571 = vmatpush.msrb.mxu3 %v4887_v50 }
  0x39   :  { %573 = vmatpush.msrb.mxu3 %v4938_v8 }
  0x3a   :  { %139 = vmatmul.f32.gmra.mxu0 %v138_v33 }
  0x3b   :  { %255 = vmatmul.f32.gmra.mxu2 %v4915_v60  ;;  %575 = vmatpush.msrb.mxu3 %v4965_v32 }
  0x3c   :  { %206 = vmatmul.f32.gmra.mxu1 %v4942_v12  ;;  %318 = vmatmul.f32.gmra.mxu3 %v120_v1 }
  0x42   :  { %369 = vmatmul.f32.vlgmr.msrb.gmra.mxu0 %v4818_v9 }
  0x43   :  { %260 = vmatmul.f32.gmra.mxu2 %v127_v5 }
  0x44   :  { %420 = vmatmul.f32.vlgmr.msrb.gmra.mxu1 %v4818_v9  ;;  %324 = vmatmul.f32.gmra.mxu3 %v128_v11  ;;  %v4776_v9 = vmov 0.0  }
  0x4a   :  { %373 = vmatmul.f32.gmra.mxu0 %v4832_v18 }
  0x4b   :  { %265 = vmatmul.f32.gmra.mxu2 %v135_v17 }
  0x4c   :  { %424 = vmatmul.f32.gmra.mxu1 %v4832_v18  ;;  %330 = vmatmul.f32.gmra.mxu3 %v136_v25 }
  0x52   :  { %377 = vmatmul.f32.gmra.mxu0 %v4862_v35 }
  0x53   :  { %270 = vmatmul.f32.gmra.mxu2 %v4845_v24 }
  0x54   :  { %428 = vmatmul.f32.gmra.mxu1 %v4862_v35  ;;  %336 = vmatmul.f32.gmra.mxu3 %v144_v31 }
  0x5a   :  { %381 = vmatmul.f32.gmra.mxu0 %v4895_v54 }
  0x5b   :  { %275 = vmatmul.f32.gmra.mxu2 %v4852_v28 }
  0x5c   :  { %432 = vmatmul.f32.gmra.mxu1 %v4895_v54  ;;  %342 = vmatmul.f32.gmra.mxu3 %v152_v40 }
  0x62   :  { %385 = vmatmul.f32.gmra.mxu0 %v4927_v2 }
  0x63   :  { %481 = vmatmul.f32.vlgmr.msra.gmra.mxu2 %v4776_v9 }
  0x64   :  { %436 = vmatmul.f32.gmra.mxu1 %v4927_v2  ;;  %598 = vmatpush.msra.mxu2 %v4865_v36 }
  0x65   :  { %522 = vmatmul.f32.vlgmr.msra.gmra.mxu3 %v4776_v9 }
  0x66   :  { %602 = vmatpush.msra.mxu2 %v4908_v58  ;;  %629 = vmatpush.msra.mxu3 %v4840_v22 }
  0x68   :  { %606 = vmatpush.msra.mxu2 %v4950_v14  ;;  %631 = vmatpush.msra.mxu3 %v4887_v50 }
  0x6a   :  { %389 = vmatmul.f32.gmra.mxu0 %v4942_v12  ;;  %610 = vmatpush.msra.mxu2 %v4974_v34 }
  0x6b   :  { %552 = vmatmul.f32.vlgmr.msrb.gmra.mxu2 %v4776_v9  ;;  %633 = vmatpush.msra.mxu3 %v4938_v8 }
  0x6c   :  { %440 = vmatmul.f32.gmra.mxu1 %v4942_v12 }
  0x6d   :  { %579 = vmatmul.f32.vlgmr.msrb.gmra.mxu3 %v4776_v9 }
  0x6e   :  { %635 = vmatpush.msra.mxu3 %v4965_v32 }
  0x72   :  { %393 = vmatmul.f32.gmra.mxu0 %v4829_v16 }
  0x73   :  { %612 = vmatmul.f32.vlgmr.msra.gmra.mxu2 %v4776_v9 }
  0x74   :  { %444 = vmatmul.f32.gmra.mxu1 %v4829_v16 }
  0x75   :  { %637 = vmatmul.f32.vlgmr.msra.gmra.mxu3 %v4776_v9 }
  0x7a   :  { %397 = vmatmul.f32.gmra.mxu0 %v4837_v20 }
  0x7c   :  { %448 = vmatmul.f32.gmra.mxu1 %v4837_v20 }
  0x8f   :  { %v100_v16 = vpop.f32.mrf.mxu0 }
  0x90   :  { %v101_v5 = vadd.f32 %v5073_v3, %v100_v16 }
  0x91   :  { %v187_v20 = vpop.f32.mrf.mxu1 }
  0x92   :  { %v188_v10 = vadd.f32 %v187_v20, %v101_v5 }
  0x95   :  { %v5021_v18 = vpop.f32.mrf.mxu2 }
  0x96   :  { %6061 = vst [vmem:[#allocation7_spill] sm:$0xff] %v5021_v18 }
  0x97   :  { %v5023_v24 = vpop.f32.mrf.mxu3  ;;  %v5039_v45 = vpop.f32.mrf.mxu0 }
  0x98   :  { %6062 = vst [vmem:[#allocation8_spill] sm:$0xff] %v5023_v24 }
  0x99   :  { %v5043_v47 = vpop.f32.mrf.mxu1 }
  0x9e   :  { %v5025_v28 = vpop.f32.mrf.mxu2 }
  0x9f   :  { %6063 = vst [vmem:[#allocation9_spill] sm:$0xff] %v5025_v28  ;;  %v5027_v31 = vpop.f32.mrf.mxu3  ;;  %v5049_v52 = vpop.f32.mrf.mxu0 }
  0xa0   :  { %6064 = vst [vmem:[#allocation10_spill] sm:$0xff] %v5027_v31 }
  0xa1   :  { %6071 = vst [vmem:[#allocation17_spill] sm:$0xff] %v5049_v52  ;;  %v5051_v53 = vpop.f32.mrf.mxu1 }
  0xa2   :  { %6072 = vst [vmem:[#allocation18_spill] sm:$0xff] %v5051_v53 }
  0xa6   :  { %v241_v35 = vpop.f32.mrf.mxu2 }
  0xa7   :  { %v301_v39 = vpop.f32.mrf.mxu3  ;;  %v5057_v57 = vpop.f32.mrf.mxu0  ;;  %v242_v15 = vadd.f32 %v241_v35, %v188_v10 }
  0xa8   :  { %6075 = vst [vmem:[#allocation21_spill] sm:$0xff] %v5057_v57 }
  0xa9   :  { %v5061_v60 = vpop.f32.mrf.mxu1  ;;  %v302_v27 = vadd.f32 %v301_v39, %v242_v15  ;;  %v38_v15 = vld [vmem:[#allocation2 + $0x58] sm:$0xff] }
  0xaa   :  { %6077 = vst [vmem:[#allocation23_spill] sm:$0xff] %v5061_v60 }
  0xae   :  { %v5029_v40 = vpop.f32.mrf.mxu2 }
  0xaf   :  { %v5031_v41 = vpop.f32.mrf.mxu3  ;;  %v5065_v62 = vpop.f32.mrf.mxu0 }
  0xb0   :  { %6079 = vst [vmem:[#allocation25_spill] sm:$0xff] %v5065_v62 }
  0xb1   :  { %v5071_v2 = vpop.f32.mrf.mxu1 }
  0xb2   :  { %6082 = vst [vmem:[#allocation28_spill] sm:$0xff] %v5071_v2 }
  0xb6   :  { %v5033_v42 = vpop.f32.mrf.mxu2 }
  0xb7   :  { %6065 = vst [vmem:[#allocation11_spill] sm:$0xff] %v5033_v42  ;;  %v5035_v43 = vpop.f32.mrf.mxu3  ;;  %v5076_v6 = vpop.f32.mrf.mxu0 }
  0xb8   :  { %6066 = vst [vmem:[#allocation12_spill] sm:$0xff] %v5035_v43 }
  0xb9   :  { %6083 = vst [vmem:[#allocation29_spill] sm:$0xff] %v5076_v6  ;;  %v5078_v11 = vpop.f32.mrf.mxu1 }
  0xba   :  { %6084 = vst [vmem:[#allocation30_spill] sm:$0xff] %v5078_v11 }
  0xbe   :  { %v5037_v44 = vpop.f32.mrf.mxu2 }
  0xbf   :  { %6067 = vst [vmem:[#allocation13_spill] sm:$0xff] %v5037_v44  ;;  %v5041_v46 = vpop.f32.mrf.mxu3  ;;  %v370_v25 = vpop.f32.mrf.mxu0  ;;  %v5283_v44 = vld [vmem:[#allocation2 + $0x68] ss:$0 sm:$0xff] }
  0xc0   :  { %6068 = vst [vmem:[#allocation14_spill] sm:$0xff] %v5041_v46  ;;  %v371_v30 = vadd.f32 %v370_v25, %v302_v27  ;;  %v36_v27 = vld [vmem:[#allocation2 + $0x48] sm:$0xff] }
  0xc1   :  { %v421_v37 = vpop.f32.mrf.mxu1  ;;  %6095 = vst [vmem:[#allocation41_spill] sm:$0xff] %v5283_v44 }
  0xc2   :  { %v422_v16 = vadd.f32 %v421_v37, %v371_v30  ;;  %v35_v30 = vld [vmem:[#allocation2 + $0x40] sm:$0xff]  ;;  %v5096_v37 = vand.u32 4294901760, %v36_v27 }
  0xc6   :  { %v5045_v48 = vpop.f32.mrf.mxu2 }
  0xc7   :  { %6069 = vst [vmem:[#allocation15_spill] sm:$0xff] %v5045_v48  ;;  %v5047_v49 = vpop.f32.mrf.mxu3 }
  0xc8   :  { %6070 = vst [vmem:[#allocation16_spill] sm:$0xff] %v5047_v49 }
  0xce   :  { %v5053_v54 = vpop.f32.mrf.mxu2 }
  0xcf   :  { %6073 = vst [vmem:[#allocation19_spill] sm:$0xff] %v5053_v54  ;;  %v5055_v56 = vpop.f32.mrf.mxu3 }
  0xd0   :  { %6074 = vst [vmem:[#allocation20_spill] sm:$0xff] %v5055_v56 }
  0xd6   :  { %v5059_v59 = vpop.f32.mrf.mxu2 }
  0xd7   :  { %6076 = vst [vmem:[#allocation22_spill] sm:$0xff] %v5059_v59  ;;  %v5063_v61 = vpop.f32.mrf.mxu3 }
  0xd8   :  { %6078 = vst [vmem:[#allocation24_spill] sm:$0xff] %v5063_v61 }
  0xde   :  { %v5067_v0 = vpop.f32.mrf.mxu2 }
  0xdf   :  { %6080 = vst [vmem:[#allocation26_spill] sm:$0xff] %v5067_v0  ;;  %v5069_v1 = vpop.f32.mrf.mxu3 }
  0xe0   :  { %6081 = vst [vmem:[#allocation27_spill] sm:$0xff] %v5069_v1 }
  0xe6   :  { %v482_v4 = vpop.f32.mrf.mxu2 }
  0xe8   :  { %v523_v7 = vpop.f32.mrf.mxu3 }
  0xe9   :  { %v524_v17 = vadd.f32 %v523_v7, %v482_v4 }
  0xee   :  { %v553_v12 = vpop.f32.mrf.mxu2 }
  0xef   :  { %v554_v23 = vadd.f32 %v553_v12, %v524_v17  ;;  %v37_v17 = vld [vmem:[#allocation2 + $0x50] sm:$0xff] }
  0xf0   :  { %v580_v19 = vpop.f32.mrf.mxu3  ;;  %v5094_v25 = vand.u32 4294901760, %v37_v17 }
  0xf1   :  { %v581_v33 = vadd.f32 %v580_v19, %v554_v23  ;;  %v5092_v23 = vand.u32 4294901760, %v38_v15 }
  0xf6   :  { %v613_v9 = vpop.f32.mrf.mxu2 }
  0xf7   :  { %v614_v1 = vadd.f32 %v613_v9, %v581_v33  ;;  %v34_v33 = vld [vmem:[#allocation2 + $0x38] sm:$0xff]  ;;  %v5098_v9 = vand.u32 4294901760, %v35_v30 }
  0xf8   :  { %v638_v0 = vpop.f32.mrf.mxu3 }
  0xf9   :  { %v639_v31 = vadd.f32 %v638_v0, %v614_v1 }
  0xfb   :  { %v641_v28 = vadd.f32 %v639_v31, %v422_v16  ;;  %v5100_v16 = vand.u32 4294901760, %v34_v33 }
  0xfd   :  { %4646 = vtanh.f32 %v641_v28  ;;  %v642_v35 = vmul.f32 0.5, %v641_v28  ;;  %v39_v28 = vld [vmem:[#allocation2 + $0x60] sm:$0xff] }
  0xfe   :  { %v5090_v19 = vand.u32 4294901760, %v39_v28 }
  0xff   :  { %4648 = vtanh.f32 %v642_v35  ;;  %v5106_v35 = vsub.f32 %v38_v15, %v5092_v23 }
 0x100   :  { %684 = vmatpush.msrb.mxu2 %v5090_v19  ;;  %1139 = vmatpush.msrb.mxu0 %v5090_v19 }
 0x102   :  { %686 = vmatpush.msrb.mxu2 %v5092_v23  ;;  %1141 = vmatpush.msrb.mxu0 %v5092_v23 }
 0x103   :  { %v4647_v20 = vpop.eup %4646 }
 0x104   :  { %649 = vrot.lane.b32.xlu0 %v4647_v20, %s4777_s0  ;;  %v5103_v20 = vsub.f32 %v39_v28, %v5090_v19  ;;  %688 = vmatpush.msrb.mxu2 %v5094_v25 }
 0x105   :  { %v4649_v4 = vpop.eup %4648  ;;  %1143 = vmatpush.msrb.mxu0 %v5094_v25 }
 0x106   :  { %v644_v5 = vadd.f32 1.0, %v4649_v4  ;;  %v5109_v4 = vsub.f32 %v37_v17, %v5094_v25  ;;  %690 = vmatpush.msrb.mxu2 %v5096_v37 }
 0x107   :  { %1145 = vmatpush.msrb.mxu0 %v5096_v37 }
 0x108   :  { %v5081_v7 = vmul.f32 0.5, %v644_v5  ;;  %v5114_v5 = vsub.f32 %v36_v27, %v5096_v37  ;;  %692 = vmatpush.msrb.mxu2 %v5098_v9 }
 0x109   :  { %1147 = vmatpush.msrb.mxu0 %v5098_v9 }
 0x10a   :  { %v647_v0 = vmul.f32 0.0, %v5081_v7  ;;  %v5134_v28 = vand.u32 4294901760, %v5114_v5  ;;  %694 = vmatpush.msrb.mxu2 %v5100_v16 }
 0x10b   :  { %1149 = vmatpush.msrb.mxu0 %v5100_v16 }
 0x10c   :  { %6085 = vst [vmem:[#allocation31_spill] sm:$0xff] %v5134_v28  ;;  %v735_v59 = vsub.f32 %v5114_v5, %v5134_v28  ;;  %767 = vmatpush.msra.mxu2 %v5103_v20 }
 0x10e   :  { %770 = vmatpush.msra.mxu2 %v5106_v35 }
 0x110   :  { %773 = vmatpush.msra.mxu2 %v5109_v4 }
 0x112   :  { %776 = vmatpush.msra.mxu2 %v5114_v5 }
 0x176   :  { %v650_v39 = vpop.permute.xlu0 %649 }
 0x177   :  { %v652_v10 = vmul.f32 %v650_v39, %v5081_v7  ;;  %v5117_v39 = vsub.f32 %v35_v30, %v5098_v9 }
 0x179   :  { %654 = vrot.lane.b32.xlu0 %v652_v10, %s4778_s3  ;;  %v5120_v10 = vand.u32 4294901760, %v5103_v20  ;;  %v5143_v30 = vand.u32 4294901760, %v5117_v39  ;;  %779 = vmatpush.msra.mxu2 %v5117_v39 }
 0x17b   :  { %v717_v15 = vsub.f32 %v5103_v20, %v5120_v10  ;;  %6086 = vst [vmem:[#allocation32_spill] sm:$0xff] %v5143_v30 }
 0x1eb   :  { %v655_v31 = vpop.permute.xlu0 %654 }
 0x1ec   :  { %v5086_v1 = vadd.f32 %v655_v31, %v647_v0  ;;  %v5123_v0 = vand.u32 4294901760, %v5106_v35  ;;  %v5126_v31 = vand.u32 4294901760, %v5109_v4 }
 0x1ee   :  { %4650 = vtanh.f32 %v5086_v1  ;;  %v723_v17 = vsub.f32 %v5106_v35, %v5123_v0  ;;  %v729_v27 = vsub.f32 %v5109_v4, %v5126_v31 }
 0x1f0   :  { %v5149_v61 = vand.u32 4294901760, %v723_v17  ;;  %v5159_v18 = vand.u32 4294901760, %v729_v27  ;;  %v5167_v17 = vand.u32 4294901760, %v735_v59 }
 0x1f4   :  { %v4651_v12 = vpop.eup %4650 }
 0x1f5   :  { %660 = vrot.lane.b32.xlu1 %v4651_v12, %s4777_s0  ;;  %v5130_v12 = vsub.f32 %v34_v33, %v5100_v16  ;;  %v5147_v33 = vand.u32 4294901760, %v717_v15  ;;  %v741_v15 = vsub.f32 %v5117_v39, %v5143_v30 }
 0x1f7   :  { %v5154_v24 = vand.u32 4294901760, %v5130_v12  ;;  %719 = vmatpush.msrb.mxu3 %v5147_v33  ;;  %1174 = vmatpush.msrb.mxu1 %v5147_v33  ;;  %v5175_v27 = vand.u32 4294901760, %v741_v15 }
 0x1f8   :  { %782 = vmatpush.msra.mxu2 %v5130_v12 }
 0x1f9   :  { %6087 = vst [vmem:[#allocation33_spill] sm:$0xff] %v5154_v24  ;;  %725 = vmatpush.msrb.mxu3 %v5149_v61  ;;  %v747_v56 = vsub.f32 %v5130_v12, %v5154_v24  ;;  %1180 = vmatpush.msrb.mxu1 %v5149_v61 }
 0x1fb   :  { %731 = vmatpush.msrb.mxu3 %v5159_v18  ;;  %1186 = vmatpush.msrb.mxu1 %v5159_v18  ;;  %v5181_v59 = vand.u32 4294901760, %v747_v56 }
 0x1fd   :  { %737 = vmatpush.msrb.mxu3 %v5167_v17  ;;  %1192 = vmatpush.msrb.mxu1 %v5167_v17 }
 0x1ff   :  { %743 = vmatpush.msrb.mxu3 %v5175_v27  ;;  %1198 = vmatpush.msrb.mxu1 %v5175_v27 }
 0x201   :  { %749 = vmatpush.msrb.mxu3 %v5181_v59  ;;  %1204 = vmatpush.msrb.mxu1 %v5181_v59 }
 0x203   :  { %800 = vmatpush.msra.mxu3 %v5090_v19 }
 0x205   :  { %802 = vmatpush.msra.mxu3 %v5092_v23 }
 0x207   :  { %804 = vmatpush.msra.mxu3 %v5094_v25 }
 0x209   :  { %806 = vmatpush.msra.mxu3 %v5096_v37 }
 0x20b   :  { %808 = vmatpush.msra.mxu3 %v5098_v9 }
 0x20d   :  { %810 = vmatpush.msra.mxu3 %v5100_v16 }
 0x267   :  { %v661_v56 = vpop.permute.xlu1 %660 }
 0x268   :  { %v663_v15 = vmul.f32 %v661_v56, %v5081_v7 }
 0x26a   :  { %665 = vrot.lane.b32.xlu1 %v663_v15, %s4778_s3 }
 0x2dc   :  { %v666_v54 = vpop.permute.xlu1 %665 }
 0x2dd   :  { %v668_v11 = vsel %vm452_vm1, %v666_v54, 0.0  ;;  %v906_v6 = vsel %vm452_vm1, %v666_v54, 0 }
 0x2de   :  { %v671_v49 = vsel %vm669_vm2, %v668_v11, 0  ;;  %v5203_v48 = vand.u32 4294901760, %v906_v6 }
 0x2df   :  { %v695_v2 = vand.u32 4294901760, %v671_v49 }
 0x2e0   :  { %v929_v7 = vsub.f32 %v906_v6, %v5203_v48 }
 0x2e1   :  { %v696_v56 = vsub.f32 %v671_v49, %v695_v2  ;;  %751 = vmatmul.f32.vlgmr.msrb.gmra.mxu3 %v695_v2 }
 0x2e2   :  { %v930_v62 = vand.u32 4294901760, %v929_v7  ;;  %1004 = vmatmul.f32.vlgmr.msra.gmra.mxu0 %v929_v7  ;;  %868 = vmatpush.msrb.mxu3 %v5090_v19 }
 0x2e3   :  { %v697_v15 = vand.u32 4294901760, %v696_v56  ;;  %1286 = vmatpush.msra.mxu0 %v5120_v10 }
 0x2e4   :  { %1031 = vmatmul.f32.vlgmr.msra.gmra.mxu1 %v930_v62  ;;  %870 = vmatpush.msrb.mxu3 %v5092_v23  ;;  %v931_v49 = vsub.f32 %v929_v7, %v930_v62  ;;  %v425_v62 = vpop.f32.mrf.mxu1 }
 0x2e5   :  { %v698_v54 = vsub.f32 %v696_v56, %v697_v15  ;;  %1323 = vmatpush.msra.mxu1 %v5090_v19  ;;  %1290 = vmatpush.msra.mxu0 %v5123_v0 }
 0x2e6   :  { %872 = vmatpush.msrb.mxu3 %v5094_v25  ;;  %v932_v11 = vand.u32 4294901760, %v931_v49 }
 0x2e7   :  { %v699_v6 = vand.u32 4294901760, %v698_v54  ;;  %1325 = vmatpush.msra.mxu1 %v5092_v23  ;;  %1294 = vmatpush.msra.mxu0 %v5126_v31 }
 0x2e8   :  { %874 = vmatpush.msrb.mxu3 %v5096_v37 }
 0x2e9   :  { %700 = vmatmul.f32.vlgmr.msrb.gmra.mxu2 %v699_v6  ;;  %814 = vmatmul.f32.vlgmr.msra.gmra.mxu3 %v697_v15 }
 0x2ea   :  { %831 = vmatpush.msrb.mxu2 %v5120_v10  ;;  %876 = vmatpush.msrb.mxu3 %v5098_v9 }
 0x2eb   :  { %1327 = vmatpush.msra.mxu1 %v5094_v25  ;;  %1298 = vmatpush.msra.mxu0 %v5134_v28 }
 0x2ec   :  { %835 = vmatpush.msrb.mxu2 %v5123_v0  ;;  %878 = vmatpush.msrb.mxu3 %v5100_v16  ;;  %v5271_v7 = vpop.f32.mrf.mxu1 }
 0x2ed   :  { %1329 = vmatpush.msra.mxu1 %v5096_v37  ;;  %1302 = vmatpush.msra.mxu0 %v5143_v30  ;;  %6089 = vst [vmem:[#allocation35_spill] sm:$0xff] %v5271_v7 }
 0x2ee   :  { %954 = vmatpush.msra.mxu3 %v4891_v51  ;;  %839 = vmatpush.msrb.mxu2 %v5126_v31 }
 0x2ef   :  { %1331 = vmatpush.msra.mxu1 %v5098_v9  ;;  %1306 = vmatpush.msra.mxu0 %v5154_v24 }
 0x2f0   :  { %960 = vmatpush.msra.mxu3 %v4922_v63  ;;  %843 = vmatpush.msrb.mxu2 %v5134_v28 }
 0x2f1   :  { %785 = vmatmul.f32.vlgmr.msra.gmra.mxu2 %v696_v56  ;;  %880 = vmatmul.f32.vlgmr.msrb.gmra.mxu3 %v695_v2 }
 0x2f2   :  { %847 = vmatpush.msrb.mxu2 %v5143_v30  ;;  %966 = vmatpush.msra.mxu3 %v4958_v21 }
 0x2f3   :  { %1333 = vmatpush.msra.mxu1 %v5100_v16 }
 0x2f4   :  { %851 = vmatpush.msrb.mxu2 %v5154_v24  ;;  %972 = vmatpush.msra.mxu3 %v4982_v38  ;;  %v5275_v15 = vpop.f32.mrf.mxu1 }
 0x2f5   :  { %6091 = vst [vmem:[#allocation37_spill] sm:$0xff] %v5275_v15 }
 0x2f6   :  { %921 = vmatpush.msra.mxu2 %v4840_v22  ;;  %1081 = vmatpush.msrb.mxu3 %v4840_v22 }
 0x2f8   :  { %923 = vmatpush.msra.mxu2 %v4887_v50  ;;  %1083 = vmatpush.msrb.mxu3 %v4887_v50 }
 0x2f9   :  { %853 = vmatmul.f32.vlgmr.msrb.gmra.mxu2 %v695_v2  ;;  %974 = vmatmul.f32.vlgmr.msra.gmra.mxu3 %v5203_v48 }
 0x2fa   :  { %925 = vmatpush.msra.mxu2 %v4938_v8  ;;  %1085 = vmatpush.msrb.mxu3 %v4938_v8 }
 0x2fc   :  { %927 = vmatpush.msra.mxu2 %v4965_v32  ;;  %1087 = vmatpush.msrb.mxu3 %v4965_v32  ;;  %v5279_v6 = vpop.f32.mrf.mxu1 }
 0x2fd   :  { %6093 = vst [vmem:[#allocation39_spill] sm:$0xff] %v5279_v6 }
 0x2fe   :  { %1050 = vmatpush.msrb.mxu2 %v4865_v36  ;;  %1255 = vmatpush.msra.mxu3 %v5090_v19 }
 0x300   :  { %1054 = vmatpush.msrb.mxu2 %v4908_v58  ;;  %1257 = vmatpush.msra.mxu3 %v5092_v23 }
 0x301   :  { %933 = vmatmul.f32.vlgmr.msra.gmra.mxu2 %v932_v11  ;;  %1089 = vmatmul.f32.vlgmr.msrb.gmra.mxu3 %v5203_v48 }
 0x302   :  { %1058 = vmatpush.msrb.mxu2 %v4950_v14  ;;  %1259 = vmatpush.msra.mxu3 %v5094_v25 }
 0x304   :  { %1062 = vmatpush.msrb.mxu2 %v4974_v34  ;;  %1261 = vmatpush.msra.mxu3 %v5096_v37  ;;  %v5285_v60 = vpop.f32.mrf.mxu1 }
 0x305   :  { %6096 = vst [vmem:[#allocation42_spill] sm:$0xff] %v5285_v60 }
 0x306   :  { %1222 = vmatpush.msra.mxu2 %v5103_v20  ;;  %1263 = vmatpush.msra.mxu3 %v5098_v9 }
 0x308   :  { %1225 = vmatpush.msra.mxu2 %v5106_v35  ;;  %1265 = vmatpush.msra.mxu3 %v5100_v16 }
 0x309   :  { %1064 = vmatmul.f32.vlgmr.msrb.gmra.mxu2 %v5203_v48  ;;  %v374_v48 = vpop.f32.mrf.mxu0 }
 0x30a   :  { %1409 = vmatpush.msrb.mxu3 %v4891_v51  ;;  %1228 = vmatpush.msra.mxu2 %v5109_v4 }
 0x30c   :  { %1415 = vmatpush.msrb.mxu3 %v4922_v63  ;;  %1231 = vmatpush.msra.mxu2 %v5114_v5  ;;  %v5290_v42 = vpop.f32.mrf.mxu1 }
 0x30d   :  { %6098 = vst [vmem:[#allocation44_spill] sm:$0xff] %v5290_v42 }
 0x30e   :  { %1421 = vmatpush.msrb.mxu3 %v4958_v21  ;;  %1234 = vmatpush.msra.mxu2 %v5117_v39 }
 0x310   :  { %1427 = vmatpush.msrb.mxu3 %v4982_v38  ;;  %1237 = vmatpush.msra.mxu2 %v5130_v12 }
 0x311   :  { %v5269_v2 = vpop.f32.mrf.mxu0 }
 0x312   :  { %1376 = vmatpush.msrb.mxu2 %v4840_v22  ;;  %6088 = vst [vmem:[#allocation34_spill] sm:$0xff] %v5269_v2 }
 0x314   :  { %1378 = vmatpush.msrb.mxu2 %v4887_v50 }
 0x316   :  { %1380 = vmatpush.msrb.mxu2 %v4938_v8 }
 0x318   :  { %1382 = vmatpush.msrb.mxu2 %v4965_v32 }
 0x319   :  { %v5273_v56 = vpop.f32.mrf.mxu0 }
 0x31a   :  { %6090 = vst [vmem:[#allocation36_spill] sm:$0xff] %v5273_v56 }
 0x321   :  { %v5277_v54 = vpop.f32.mrf.mxu0 }
 0x322   :  { %6092 = vst [vmem:[#allocation38_spill] sm:$0xff] %v5277_v54 }
 0x329   :  { %v5281_v11 = vpop.f32.mrf.mxu0 }
 0x32a   :  { %6094 = vst [vmem:[#allocation40_spill] sm:$0xff] %v5281_v11  ;;  %v109_v11 = vadd.f32 %v5073_v3, %v5039_v45 }
 0x32c   :  { %v192_v30 = vadd.f32 %v5043_v47, %v109_v11 }
 0x331   :  { %v5288_v7 = vpop.f32.mrf.mxu0 }
 0x332   :  { %6097 = vst [vmem:[#allocation43_spill] sm:$0xff] %v5288_v7 }
 0x339   :  { %v5294_v24 = vpop.f32.mrf.mxu0 }
 0x33a   :  { %6099 = vst [vmem:[#allocation45_spill] sm:$0xff] %v5294_v24 }
 0x364   :  { %v752_v49 = vpop.f32.mrf.mxu3 }
 0x36c   :  { %v701_v46 = vpop.f32.mrf.mxu2  ;;  %v815_v57 = vpop.f32.mrf.mxu3 }
 0x36d   :  { %v702_v2 = vadd.f32 %v5283_v44, %v701_v46  ;;  %v5297_v46 = vpop.f32.mrf.mxu1 }
 0x36e   :  { %6100 = vst [vmem:[#allocation46_spill] sm:$0xff] %v5297_v46 }
 0x36f   :  { %v753_v43 = vadd.f32 %v752_v49, %v702_v2  ;;  %v1005_v49 = vpop.f32.mrf.mxu0 }
 0x374   :  { %v786_v56 = vpop.f32.mrf.mxu2  ;;  %v881_v54 = vpop.f32.mrf.mxu3 }
 0x375   :  { %v787_v15 = vadd.f32 %v786_v56, %v753_v43  ;;  %v247_v43 = vadd.f32 %v5029_v40, %v192_v30 }
 0x377   :  { %v816_v6 = vadd.f32 %v815_v57, %v787_v15  ;;  %v308_v45 = vadd.f32 %v5031_v41, %v247_v43 }
 0x37c   :  { %v854_v53 = vpop.f32.mrf.mxu2  ;;  %v975_v7 = vpop.f32.mrf.mxu3 }
 0x37d   :  { %v855_v52 = vadd.f32 %v854_v53, %v816_v6  ;;  %v1032_v53 = vpop.f32.mrf.mxu1 }
 0x37f   :  { %v882_v60 = vadd.f32 %v881_v54, %v855_v52  ;;  %v375_v52 = vadd.f32 %v374_v48, %v308_v45 }
 0x381   :  { %4652 = vtanh.f32 %v882_v60  ;;  %v426_v46 = vadd.f32 %v425_v62, %v375_v52  ;;  %v884_v30 = vmul.f32 0.5, %v882_v60 }
 0x384   :  { %v934_v2 = vpop.f32.mrf.mxu2  ;;  %v1090_v11 = vpop.f32.mrf.mxu3 }
 0x385   :  { %v976_v56 = vadd.f32 %v975_v7, %v934_v2 }
 0x387   :  { %v4653_v57 = vpop.eup %4652  ;;  %v1006_v15 = vadd.f32 %v1005_v49, %v976_v56 }
 0x388   :  { %891 = vrot.lane.b32.xlu2 %v4653_v57, %s4779_s4 }
 0x389   :  { %v1033_v54 = vadd.f32 %v1032_v53, %v1006_v15 }
 0x38c   :  { %v1065_v47 = vpop.f32.mrf.mxu2 }
 0x38d   :  { %v1066_v6 = vadd.f32 %v1065_v47, %v1033_v54 }
 0x38f   :  { %v1091_v24 = vadd.f32 %v1090_v11, %v1066_v6 }
 0x391   :  { %v1093_v42 = vadd.f32 %v1091_v24, %v426_v46 }
 0x393   :  { %4654 = vtanh.f32 %v1093_v42  ;;  %v1094_v49 = vmul.f32 0.5, %v1093_v42 }
 0x394   :  { %4656 = vtanh.f32 %v884_v30 }
 0x395   :  { %4658 = vtanh.f32 %v1094_v49 }
 0x399   :  { %v4655_v40 = vpop.eup %4654 }
 0x39a   :  { %1101 = vrot.lane.b32.xlu2 %v4655_v40, %s4777_s0  ;;  %v4657_v7 = vpop.eup %4656 }
 0x39b   :  { %v886_v2 = vadd.f32 1.0, %v4657_v7  ;;  %v4659_v48 = vpop.eup %4658 }
 0x39c   :  { %v1096_v62 = vadd.f32 1.0, %v4659_v48 }
 0x39d   :  { %v887_v56 = vmul.f32 0.5, %v886_v2 }
 0x39e   :  { %v1097_v57 = vmul.f32 0.5, %v1096_v62 }
 0x39f   :  { %v889_v15 = vmul.f32 0.0, %v887_v56 }
 0x3a0   :  { %v1099_v53 = vmul.f32 %v1097_v57, %v5086_v1 }
 0x3e2   :  { %v892_v41 = vpop.permute.xlu2 %891 }
 0x3e3   :  { %v894_v43 = vmul.f32 %v892_v41, %v887_v56 }
 0x3e5   :  { %896 = vrot.lane.b32.xlu0 %v894_v43, %s4780_s5 }
 0x3f4   :  { %v1102_v24 = vpop.permute.xlu2 %1101 }
 0x3f5   :  { %v1104_v46 = vmul.f32 %v1102_v24, %v1097_v57 }
 0x3f7   :  { %1106 = vrot.lane.b32.xlu1 %v1104_v46, %s4778_s3 }
 0x457   :  { %v897_v60 = vpop.permute.xlu0 %896 }
 0x458   :  { %v5305_v45 = vadd.f32 %v897_v60, %v889_v15 }
 0x45a   :  { %4660 = vtanh.f32 %v5305_v45 }
 0x460   :  { %v4661_v42 = vpop.eup %4660 }
 0x461   :  { %902 = vrot.lane.b32.xlu2 %v4661_v42, %s4778_s3 }
 0x469   :  { %v1107_v52 = vpop.permute.xlu1 %1106 }
 0x46a   :  { %v5310_v54 = vadd.f32 %v1107_v52, %v1099_v53  ;;  %v6101_v53 = vld [vmem:[#allocation32_spill] sm:$0xff]  ;;  %v6102_v52 = vld [vmem:[#allocation33_spill] sm:$0xff] }
 0x46c   :  { %4662 = vtanh.f32 %v5310_v54 }
 0x472   :  { %v4663_v47 = vpop.eup %4662 }
 0x473   :  { %1112 = vrot.lane.b32.xlu0 %v4663_v47, %s4777_s0 }
 0x4bb   :  { %v903_v6 = vpop.permute.xlu2 %902 }
 0x4bc   :  { %v905_v11 = vmul.f32 %v903_v6, %v887_v56 }
 0x4be   :  { %1121 = vrot.lane.b32.xlu2 %v905_v11, %s4781_s6 }
 0x4e5   :  { %v1113_v40 = vpop.permute.xlu0 %1112 }
 0x4e6   :  { %v1115_v30 = vmul.f32 %v1113_v40, %v1097_v57 }
 0x4e8   :  { %1117 = vrot.lane.b32.xlu1 %v1115_v30, %s4778_s3 }
 0x518   :  { %v1122_v7 = vpop.permute.xlu2 %1121 }
 0x55a   :  { %v1118_v2 = vpop.permute.xlu1 %1117 }
 0x55b   :  { %v1124_v1 = vsel %vm452_vm1, %v1118_v2, %v1122_v7  ;;  %v1361_v49 = vsel %vm452_vm1, %v1118_v2, 0  ;;  %v6103_v2 = vld [vmem:[#allocation17_spill] sm:$0xff] }
 0x55c   :  { %v1126_v41 = vsel %vm669_vm2, %v1124_v1, 0  ;;  %v1383_v43 = vand.u32 4294901760, %v1361_v49  ;;  %v117_v1 = vadd.f32 %v5073_v3, %v6103_v2 }
 0x55d   :  { %v1150_v48 = vand.u32 4294901760, %v1126_v41 }
 0x55e   :  { %v1384_v62 = vsub.f32 %v1361_v49, %v1383_v43 }
 0x55f   :  { %v1151_v24 = vsub.f32 %v1126_v41, %v1150_v48  ;;  %1206 = vmatmul.f32.vlgmr.msrb.gmra.mxu1 %v1150_v48 }
 0x560   :  { %v1385_v56 = vand.u32 4294901760, %v1384_v62  ;;  %1476 = vmatpush.msrb.mxu1 %v4840_v22 }
 0x561   :  { %1240 = vmatmul.f32.vlgmr.msra.gmra.mxu2 %v1151_v24  ;;  %v1152_v57 = vand.u32 4294901760, %v1151_v24 }
 0x562   :  { %1478 = vmatpush.msrb.mxu1 %v4887_v50  ;;  %1505 = vmatpush.msra.mxu2 %v4865_v36  ;;  %v1386_v46 = vsub.f32 %v1384_v62, %v1385_v56 }
 0x563   :  { %1269 = vmatmul.f32.vlgmr.msra.gmra.mxu3 %v1152_v57  ;;  %v1153_v15 = vsub.f32 %v1151_v24, %v1152_v57 }
 0x564   :  { %1480 = vmatpush.msrb.mxu1 %v4938_v8  ;;  %1509 = vmatpush.msra.mxu2 %v4908_v58  ;;  %v1387_v42 = vand.u32 4294901760, %v1386_v46 }
 0x565   :  { %v1154_v60 = vand.u32 4294901760, %v1153_v15  ;;  %1536 = vmatpush.msra.mxu3 %v4840_v22 }
 0x566   :  { %1482 = vmatpush.msrb.mxu1 %v4965_v32  ;;  %1513 = vmatpush.msra.mxu2 %v4950_v14 }
 0x567   :  { %1155 = vmatmul.f32.vlgmr.msrb.gmra.mxu0 %v1154_v60  ;;  %1335 = vmatmul.f32.vlgmr.msra.gmra.mxu1 %v1150_v48  ;;  %v6105_v60 = vld [vmem:[#allocation11_spill] sm:$0xff] }
 0x568   :  { %1538 = vmatpush.msra.mxu3 %v4887_v50  ;;  %1447 = vmatpush.msrb.mxu0 %v4855_v29 }
 0x569   :  { %1388 = vmatmul.f32.vlgmr.msrb.gmra.mxu2 %v1387_v42  ;;  %1629 = vmatpush.msra.mxu1 %v5147_v33 }
 0x56a   :  { %1517 = vmatpush.msra.mxu2 %v4974_v34  ;;  %1540 = vmatpush.msra.mxu3 %v4938_v8 }
 0x56b   :  { %1429 = vmatmul.f32.vlgmr.msrb.gmra.mxu3 %v1383_v43  ;;  %1450 = vmatpush.msrb.mxu0 %v4898_v55 }
 0x56c   :  { %1542 = vmatpush.msra.mxu3 %v4965_v32  ;;  %1635 = vmatpush.msra.mxu1 %v5149_v61 }
 0x56d   :  { %1453 = vmatpush.msrb.mxu0 %v4946_v13  ;;  %1677 = vmatpush.msrb.mxu2 %v5103_v20 }
 0x56e   :  { %1641 = vmatpush.msra.mxu1 %v5159_v18  ;;  %1710 = vmatpush.msrb.mxu3 %v5090_v19 }
 0x56f   :  { %1308 = vmatmul.f32.vlgmr.msra.gmra.mxu0 %v1150_v48  ;;  %1486 = vmatmul.f32.vlgmr.msrb.gmra.mxu1 %v1385_v56 }
 0x570   :  { %1456 = vmatpush.msrb.mxu0 %v4969_v26  ;;  %1647 = vmatpush.msra.mxu1 %v5167_v17 }
 0x571   :  { %1519 = vmatmul.f32.vlgmr.msra.gmra.mxu2 %v1383_v43  ;;  %1712 = vmatpush.msrb.mxu3 %v5092_v23 }
 0x572   :  { %1594 = vmatpush.msra.mxu0 %v5090_v19  ;;  %1680 = vmatpush.msrb.mxu2 %v5106_v35 }
 0x573   :  { %1653 = vmatpush.msra.mxu1 %v5175_v27  ;;  %1544 = vmatmul.f32.vlgmr.msra.gmra.mxu3 %v1383_v43 }
 0x574   :  { %1596 = vmatpush.msra.mxu0 %v5092_v23  ;;  %1683 = vmatpush.msrb.mxu2 %v5109_v4 }
 0x575   :  { %1659 = vmatpush.msra.mxu1 %v5181_v59  ;;  %1714 = vmatpush.msrb.mxu3 %v5094_v25 }
 0x576   :  { %1598 = vmatpush.msra.mxu0 %v5094_v25  ;;  %1686 = vmatpush.msrb.mxu2 %v5114_v5 }
 0x577   :  { %1459 = vmatmul.f32.vlgmr.msrb.gmra.mxu0 %v1384_v62  ;;  %1778 = vmatpush.msrb.mxu1 %v5090_v19  ;;  %v6104_v62 = vld [vmem:[#allocation18_spill] sm:$0xff] }
 0x578   :  { %1689 = vmatpush.msrb.mxu2 %v5117_v39  ;;  %1716 = vmatpush.msrb.mxu3 %v5096_v37  ;;  %v196_v24 = vadd.f32 %v6104_v62, %v117_v1 }
 0x579   :  { %1780 = vmatpush.msrb.mxu1 %v5092_v23  ;;  %1600 = vmatpush.msra.mxu0 %v5096_v37 }
 0x57a   :  { %1692 = vmatpush.msrb.mxu2 %v5130_v12  ;;  %1718 = vmatpush.msrb.mxu3 %v5098_v9  ;;  %v252_v42 = vadd.f32 %v6105_v60, %v196_v24 }
 0x57b   :  { %1782 = vmatpush.msrb.mxu1 %v5094_v25  ;;  %1602 = vmatpush.msra.mxu0 %v5098_v9 }
 0x57c   :  { %1720 = vmatpush.msrb.mxu3 %v5100_v16  ;;  %1831 = vmatpush.msra.mxu2 %v4840_v22 }
 0x57d   :  { %1784 = vmatpush.msrb.mxu1 %v5096_v37  ;;  %1604 = vmatpush.msra.mxu0 %v5100_v16 }
 0x57e   :  { %1833 = vmatpush.msra.mxu2 %v4887_v50  ;;  %1864 = vmatpush.msra.mxu3 %v4891_v51 }
 0x57f   :  { %1741 = vmatpush.msrb.mxu0 %v5120_v10  ;;  %1786 = vmatpush.msrb.mxu1 %v5098_v9 }
 0x580   :  { %1835 = vmatpush.msra.mxu2 %v4938_v8  ;;  %1870 = vmatpush.msra.mxu3 %v4922_v63 }
 0x581   :  { %1745 = vmatpush.msrb.mxu0 %v5123_v0  ;;  %1788 = vmatpush.msrb.mxu1 %v5100_v16 }
 0x582   :  { %1837 = vmatpush.msra.mxu2 %v4965_v32  ;;  %1876 = vmatpush.msra.mxu3 %v4958_v21 }
 0x583   :  { %1749 = vmatpush.msrb.mxu0 %v5126_v31 }
 0x584   :  { %1882 = vmatpush.msra.mxu3 %v4982_v38 }
 0x585   :  { %1753 = vmatpush.msrb.mxu0 %v5134_v28 }
 0x587   :  { %1757 = vmatpush.msrb.mxu0 %v6101_v53 }
 0x589   :  { %1761 = vmatpush.msrb.mxu0 %v6102_v52 }
 0x5dc   :  { %v1207_v47 = vpop.f32.mrf.mxu1 }
 0x5e4   :  { %v1156_v6 = vpop.f32.mrf.mxu0  ;;  %v1241_v11 = vpop.f32.mrf.mxu2 }
 0x5e5   :  { %v1157_v40 = vadd.f32 %v5283_v44, %v1156_v6  ;;  %v1336_v43 = vpop.f32.mrf.mxu1  ;;  %v6106_v44 = vld [vmem:[#allocation12_spill] sm:$0xff] }
 0x5e6   :  { %v1270_v30 = vpop.f32.mrf.mxu3 }
 0x5e7   :  { %v1208_v7 = vadd.f32 %v1207_v47, %v1157_v40  ;;  %v314_v47 = vadd.f32 %v6106_v44, %v252_v42 }
 0x5e9   :  { %v1242_v49 = vadd.f32 %v1241_v11, %v1208_v7  ;;  %v6107_v11 = vld [vmem:[#allocation34_spill] sm:$0xff] }
 0x5eb   :  { %v1271_v41 = vadd.f32 %v1270_v30, %v1242_v49  ;;  %v379_v30 = vadd.f32 %v6107_v11, %v314_v47 }
 0x5ec   :  { %v1309_v48 = vpop.f32.mrf.mxu0  ;;  %v1389_v57 = vpop.f32.mrf.mxu2 }
 0x5ed   :  { %v1310_v56 = vadd.f32 %v1309_v48, %v1271_v41  ;;  %v1487_v53 = vpop.f32.mrf.mxu1  ;;  %v6108_v41 = vld [vmem:[#allocation35_spill] sm:$0xff] }
 0x5ee   :  { %v1430_v15 = vpop.f32.mrf.mxu3 }
 0x5ef   :  { %v1337_v46 = vadd.f32 %v1336_v43, %v1310_v56  ;;  %v1431_v52 = vadd.f32 %v1430_v15, %v1389_v57  ;;  %v430_v43 = vadd.f32 %v6108_v41, %v379_v30 }
 0x5f1   :  { %4664 = vtanh.f32 %v1337_v46  ;;  %v1339_v44 = vmul.f32 0.5, %v1337_v46 }
 0x5f4   :  { %v1460_v6 = vpop.f32.mrf.mxu0  ;;  %v1520_v2 = vpop.f32.mrf.mxu2 }
 0x5f5   :  { %v1461_v40 = vadd.f32 %v1460_v6, %v1431_v52 }
 0x5f6   :  { %v1545_v49 = vpop.f32.mrf.mxu3 }
 0x5f7   :  { %v4665_v3 = vpop.eup %4664  ;;  %v1488_v7 = vadd.f32 %v1487_v53, %v1461_v40 }
 0x5f8   :  { %1346 = vrot.lane.b32.xlu0 %v4665_v3, %s4779_s4 }
 0x5f9   :  { %v1521_v1 = vadd.f32 %v1520_v2, %v1488_v7 }
 0x5fb   :  { %v1546_v48 = vadd.f32 %v1545_v49, %v1521_v1 }
 0x5fd   :  { %v1548_v62 = vadd.f32 %v1546_v48, %v430_v43 }
 0x5ff   :  { %4666 = vtanh.f32 %v1548_v62  ;;  %v1549_v57 = vmul.f32 0.5, %v1548_v62 }
 0x600   :  { %4668 = vtanh.f32 %v1339_v44 }
 0x601   :  { %4670 = vtanh.f32 %v1549_v57 }
 0x605   :  { %v4667_v24 = vpop.eup %4666 }
 0x606   :  { %1556 = vrot.lane.b32.xlu1 %v4667_v24, %s4777_s0  ;;  %v4669_v52 = vpop.eup %4668 }
 0x607   :  { %v1341_v56 = vadd.f32 1.0, %v4669_v52  ;;  %v4671_v42 = vpop.eup %4670 }
 0x608   :  { %v1551_v6 = vadd.f32 1.0, %v4671_v42 }
 0x609   :  { %v1342_v15 = vmul.f32 0.5, %v1341_v56 }
 0x60a   :  { %v1552_v47 = vmul.f32 0.5, %v1551_v6 }
 0x60b   :  { %v1344_v11 = vmul.f32 %v1342_v15, %v5305_v45 }
 0x60c   :  { %v1554_v2 = vmul.f32 %v1552_v47, %v5310_v54 }
 0x66a   :  { %v1347_v53 = vpop.permute.xlu0 %1346 }
 0x66b   :  { %v1349_v60 = vmul.f32 %v1347_v53, %v1342_v15 }
 0x66d   :  { %1351 = vrot.lane.b32.xlu2 %v1349_v60, %s4780_s5 }
 0x678   :  { %v1557_v40 = vpop.permute.xlu1 %1556 }
 0x679   :  { %v1559_v3 = vmul.f32 %v1557_v40, %v1552_v47 }
 0x67b   :  { %1561 = vrot.lane.b32.xlu0 %v1559_v3, %s4778_s3 }
 0x6c7   :  { %v1352_v46 = vpop.permute.xlu2 %1351 }
 0x6c8   :  { %v5392_v30 = vadd.f32 %v1352_v46, %v1344_v11  ;;  %v6109_v46 = vld [vmem:[#allocation32_spill] sm:$0xff] }
 0x6ca   :  { %4672 = vtanh.f32 %v5392_v30 }
 0x6d0   :  { %v4673_v7 = vpop.eup %4672 }
 0x6d1   :  { %1357 = vrot.lane.b32.xlu1 %v4673_v7, %s4778_s3  ;;  %v6110_v7 = vld [vmem:[#allocation33_spill] sm:$0xff] }
 0x6ed   :  { %v1562_v1 = vpop.permute.xlu0 %1561 }
 0x6ee   :  { %v5397_v49 = vadd.f32 %v1562_v1, %v1554_v2 }
 0x6f0   :  { %4674 = vtanh.f32 %v5397_v49 }
 0x6f6   :  { %v4675_v41 = vpop.eup %4674 }
 0x6f7   :  { %1567 = vrot.lane.b32.xlu2 %v4675_v41, %s4777_s0 }
 0x743   :  { %v1358_v43 = vpop.permute.xlu1 %1357 }
 0x744   :  { %v1360_v45 = vmul.f32 %v1358_v43, %v1342_v15  ;;  %v6111_v43 = vld [vmem:[#allocation41_spill] sm:$0xff] }
 0x746   :  { %1576 = vrot.lane.b32.xlu1 %v1360_v45, %s4781_s6 }
 0x751   :  { %v1568_v48 = vpop.permute.xlu2 %1567 }
 0x752   :  { %v1570_v62 = vmul.f32 %v1568_v48, %v1552_v47 }
 0x754   :  { %1572 = vrot.lane.b32.xlu0 %v1570_v62, %s4778_s3 }
 0x7b8   :  { %v1577_v24 = vpop.permute.xlu1 %1576 }
 0x7c6   :  { %v1573_v44 = vpop.permute.xlu0 %1572 }
 0x7c7   :  { %v1579_v54 = vsel %vm452_vm1, %v1573_v44, %v1577_v24  ;;  %v1816_v52 = vsel %vm452_vm1, %v1573_v44, 0  ;;  %v5467_v24 = vld [vmem:[#allocation2 + $0x30] ss:$0 sm:$0xff] }
 0x7c8   :  { %v1581_v56 = vsel %vm669_vm2, %v1579_v54, 0  ;;  %v1838_v57 = vand.u32 4294901760, %v1816_v52  ;;  %v6112_v44 = vld [vmem:[#allocation21_spill] sm:$0xff] }
 0x7c9   :  { %v1605_v53 = vand.u32 4294901760, %v1581_v56  ;;  %v125_v54 = vadd.f32 %v5467_v24, %v6112_v44 }
 0x7ca   :  { %v1839_v60 = vsub.f32 %v1816_v52, %v1838_v57 }
 0x7cb   :  { %v1606_v42 = vsub.f32 %v1581_v56, %v1605_v53  ;;  %1661 = vmatmul.f32.vlgmr.msra.gmra.mxu1 %v1605_v53 }
 0x7cc   :  { %v1840_v15 = vand.u32 4294901760, %v1839_v60  ;;  %1991 = vmatpush.msra.mxu1 %v4840_v22 }
 0x7cd   :  { %1695 = vmatmul.f32.vlgmr.msrb.gmra.mxu2 %v1606_v42  ;;  %v1607_v6 = vand.u32 4294901760, %v1606_v42 }
 0x7ce   :  { %1902 = vmatpush.msrb.mxu2 %v4855_v29  ;;  %1993 = vmatpush.msra.mxu1 %v4887_v50  ;;  %v1841_v47 = vsub.f32 %v1839_v60, %v1840_v15 }
 0x7cf   :  { %1724 = vmatmul.f32.vlgmr.msrb.gmra.mxu3 %v1607_v6  ;;  %v1608_v40 = vsub.f32 %v1606_v42, %v1607_v6 }
 0x7d0   :  { %1905 = vmatpush.msrb.mxu2 %v4898_v55  ;;  %1931 = vmatpush.msrb.mxu3 %v4840_v22  ;;  %v1842_v11 = vand.u32 4294901760, %v1841_v47 }
 0x7d1   :  { %v1609_v3 = vand.u32 4294901760, %v1608_v40  ;;  %1995 = vmatpush.msra.mxu1 %v4938_v8 }
 0x7d2   :  { %1908 = vmatpush.msrb.mxu2 %v4946_v13  ;;  %1933 = vmatpush.msrb.mxu3 %v4887_v50 }
 0x7d3   :  { %1610 = vmatmul.f32.vlgmr.msra.gmra.mxu0 %v1609_v3  ;;  %1790 = vmatmul.f32.vlgmr.msrb.gmra.mxu1 %v1605_v53  ;;  %v6114_v3 = vld [vmem:[#allocation13_spill] sm:$0xff] }
 0x7d4   :  { %1997 = vmatpush.msra.mxu1 %v4965_v32  ;;  %1911 = vmatpush.msrb.mxu2 %v4969_v26 }
 0x7d5   :  { %1843 = vmatmul.f32.vlgmr.msra.gmra.mxu2 %v1842_v11  ;;  %1935 = vmatpush.msrb.mxu3 %v4938_v8 }
 0x7d6   :  { %1960 = vmatpush.msra.mxu0 %v4865_v36  ;;  %2165 = vmatpush.msrb.mxu1 %v5090_v19 }
 0x7d7   :  { %1884 = vmatmul.f32.vlgmr.msra.gmra.mxu3 %v1838_v57  ;;  %2049 = vmatpush.msra.mxu2 %v5090_v19 }
 0x7d8   :  { %1937 = vmatpush.msrb.mxu3 %v4965_v32  ;;  %1964 = vmatpush.msra.mxu0 %v4908_v58 }
 0x7d9   :  { %2167 = vmatpush.msrb.mxu1 %v5092_v23  ;;  %2051 = vmatpush.msra.mxu2 %v5092_v23 }
 0x7da   :  { %2084 = vmatpush.msra.mxu3 %v5147_v33  ;;  %1968 = vmatpush.msra.mxu0 %v4950_v14 }
 0x7db   :  { %1763 = vmatmul.f32.vlgmr.msrb.gmra.mxu0 %v1605_v53  ;;  %1999 = vmatmul.f32.vlgmr.msra.gmra.mxu1 %v1838_v57 }
 0x7dc   :  { %1972 = vmatpush.msra.mxu0 %v4974_v34  ;;  %2090 = vmatpush.msra.mxu3 %v5149_v61 }
 0x7dd   :  { %1914 = vmatmul.f32.vlgmr.msrb.gmra.mxu2 %v1839_v60  ;;  %2169 = vmatpush.msrb.mxu1 %v5094_v25  ;;  %v6113_v60 = vld [vmem:[#allocation23_spill] sm:$0xff] }
 0x7de   :  { %2132 = vmatpush.msrb.mxu0 %v5103_v20  ;;  %2096 = vmatpush.msra.mxu3 %v5159_v18  ;;  %v200_v42 = vadd.f32 %v6113_v60, %v125_v54 }
 0x7df   :  { %1941 = vmatmul.f32.vlgmr.msrb.gmra.mxu3 %v1840_v15  ;;  %2053 = vmatpush.msra.mxu2 %v5094_v25 }
 0x7e0   :  { %2135 = vmatpush.msrb.mxu0 %v5106_v35  ;;  %2102 = vmatpush.msra.mxu3 %v5167_v17  ;;  %v257_v11 = vadd.f32 %v6114_v3, %v200_v42 }
 0x7e1   :  { %2171 = vmatpush.msrb.mxu1 %v5096_v37  ;;  %2055 = vmatpush.msra.mxu2 %v5096_v37 }
 0x7e2   :  { %2138 = vmatpush.msrb.mxu0 %v5109_v4  ;;  %2108 = vmatpush.msra.mxu3 %v5175_v27 }
 0x7e3   :  { %1974 = vmatmul.f32.vlgmr.msra.gmra.mxu0 %v1838_v57  ;;  %2173 = vmatpush.msrb.mxu1 %v5098_v9 }
 0x7e4   :  { %2114 = vmatpush.msra.mxu3 %v5181_v59  ;;  %2141 = vmatpush.msrb.mxu0 %v5114_v5 }
 0x7e5   :  { %2057 = vmatpush.msra.mxu2 %v5098_v9  ;;  %2175 = vmatpush.msrb.mxu1 %v5100_v16 }
 0x7e6   :  { %2233 = vmatpush.msrb.mxu3 %v5090_v19  ;;  %2144 = vmatpush.msrb.mxu0 %v5117_v39 }
 0x7e7   :  { %2059 = vmatpush.msra.mxu2 %v5100_v16  ;;  %2319 = vmatpush.msra.mxu1 %v4891_v51 }
 0x7e8   :  { %2235 = vmatpush.msrb.mxu3 %v5092_v23  ;;  %2147 = vmatpush.msrb.mxu0 %v5130_v12 }
 0x7e9   :  { %2196 = vmatpush.msrb.mxu2 %v5120_v10  ;;  %2325 = vmatpush.msra.mxu1 %v4922_v63 }
 0x7ea   :  { %2237 = vmatpush.msrb.mxu3 %v5094_v25  ;;  %2286 = vmatpush.msra.mxu0 %v4840_v22 }
 0x7eb   :  { %2200 = vmatpush.msrb.mxu2 %v5123_v0  ;;  %2331 = vmatpush.msra.mxu1 %v4958_v21 }
 0x7ec   :  { %2239 = vmatpush.msrb.mxu3 %v5096_v37  ;;  %2288 = vmatpush.msra.mxu0 %v4887_v50 }
 0x7ed   :  { %2204 = vmatpush.msrb.mxu2 %v5126_v31  ;;  %2337 = vmatpush.msra.mxu1 %v4982_v38 }
 0x7ee   :  { %2241 = vmatpush.msrb.mxu3 %v5098_v9  ;;  %2290 = vmatpush.msra.mxu0 %v4938_v8 }
 0x7ef   :  { %2208 = vmatpush.msrb.mxu2 %v5134_v28 }
 0x7f0   :  { %2243 = vmatpush.msrb.mxu3 %v5100_v16  ;;  %2292 = vmatpush.msra.mxu0 %v4965_v32 }
 0x7f1   :  { %2212 = vmatpush.msrb.mxu2 %v6109_v46 }
 0x7f3   :  { %2216 = vmatpush.msrb.mxu2 %v6110_v7 }
 0x848   :  { %v1662_v2 = vpop.f32.mrf.mxu1 }
 0x850   :  { %v1611_v1 = vpop.f32.mrf.mxu0  ;;  %v1696_v41 = vpop.f32.mrf.mxu2 }
 0x851   :  { %v1612_v45 = vadd.f32 %v6111_v43, %v1611_v1  ;;  %v1791_v6 = vpop.f32.mrf.mxu1 }
 0x852   :  { %v1725_v48 = vpop.f32.mrf.mxu3 }
 0x853   :  { %v1663_v62 = vadd.f32 %v1662_v2, %v1612_v45  ;;  %v6115_v45 = vld [vmem:[#allocation14_spill] sm:$0xff] }
 0x854   :  { %v320_v43 = vadd.f32 %v6115_v45, %v257_v11 }
 0x855   :  { %v1697_v52 = vadd.f32 %v1696_v41, %v1663_v62  ;;  %v6116_v41 = vld [vmem:[#allocation36_spill] sm:$0xff] }
 0x857   :  { %v1726_v56 = vadd.f32 %v1725_v48, %v1697_v52  ;;  %v383_v48 = vadd.f32 %v6116_v41, %v320_v43 }
 0x858   :  { %v1764_v57 = vpop.f32.mrf.mxu0  ;;  %v1844_v53 = vpop.f32.mrf.mxu2 }
 0x859   :  { %v1765_v15 = vadd.f32 %v1764_v57, %v1726_v56  ;;  %v2000_v56 = vpop.f32.mrf.mxu1  ;;  %v6117_v57 = vld [vmem:[#allocation37_spill] sm:$0xff] }
 0x85a   :  { %v1885_v47 = vpop.f32.mrf.mxu3  ;;  %v434_v60 = vadd.f32 %v6117_v57, %v383_v48 }
 0x85b   :  { %v1792_v40 = vadd.f32 %v1791_v6, %v1765_v15  ;;  %v1886_v1 = vadd.f32 %v1885_v47, %v1844_v53 }
 0x85d   :  { %4676 = vtanh.f32 %v1792_v40  ;;  %v1794_v6 = vmul.f32 0.5, %v1792_v40 }
 0x860   :  { %v1915_v2 = vpop.f32.mrf.mxu2  ;;  %v1975_v52 = vpop.f32.mrf.mxu0 }
 0x861   :  { %v1916_v7 = vadd.f32 %v1915_v2, %v1886_v1 }
 0x862   :  { %v1942_v46 = vpop.f32.mrf.mxu3 }
 0x863   :  { %v4677_v44 = vpop.eup %4676  ;;  %v1943_v62 = vadd.f32 %v1942_v46, %v1916_v7 }
 0x864   :  { %1801 = vrot.lane.b32.xlu2 %v4677_v44, %s4779_s4 }
 0x865   :  { %v1976_v54 = vadd.f32 %v1975_v52, %v1943_v62 }
 0x867   :  { %v2001_v15 = vadd.f32 %v2000_v56, %v1976_v54 }
 0x869   :  { %v2003_v42 = vadd.f32 %v2001_v15, %v434_v60 }
 0x86b   :  { %4678 = vtanh.f32 %v2003_v42  ;;  %v2004_v7 = vmul.f32 0.5, %v2003_v42 }
 0x86c   :  { %4680 = vtanh.f32 %v1794_v6 }
 0x86d   :  { %4682 = vtanh.f32 %v2004_v7 }
 0x871   :  { %v4679_v53 = vpop.eup %4678 }
 0x872   :  { %2011 = vrot.lane.b32.xlu0 %v4679_v53, %s4777_s0  ;;  %v4681_v47 = vpop.eup %4680 }
 0x873   :  { %v1796_v3 = vadd.f32 1.0, %v4681_v47  ;;  %v4683_v1 = vpop.eup %4682 }
 0x874   :  { %v2006_v2 = vadd.f32 1.0, %v4683_v1 }
 0x875   :  { %v1797_v11 = vmul.f32 0.5, %v1796_v3 }
 0x876   :  { %v2007_v45 = vmul.f32 0.5, %v2006_v2 }
 0x877   :  { %v1799_v48 = vmul.f32 %v1797_v11, %v5392_v30 }
 0x878   :  { %v2009_v54 = vmul.f32 %v2007_v45, %v5397_v49 }
 0x8be   :  { %v1802_v43 = vpop.permute.xlu2 %1801 }
 0x8bf   :  { %v1804_v46 = vmul.f32 %v1802_v43, %v1797_v11 }
 0x8c1   :  { %1806 = vrot.lane.b32.xlu1 %v1804_v46, %s4780_s5 }
 0x8e4   :  { %v2012_v44 = vpop.permute.xlu0 %2011 }
 0x8e5   :  { %v2014_v41 = vmul.f32 %v2012_v44, %v2007_v45 }
 0x8e7   :  { %2016 = vrot.lane.b32.xlu2 %v2014_v41, %s4778_s3 }
 0x933   :  { %v1807_v40 = vpop.permute.xlu1 %1806 }
 0x934   :  { %v5481_v62 = vadd.f32 %v1807_v40, %v1799_v48 }
 0x936   :  { %4684 = vtanh.f32 %v5481_v62 }
 0x93c   :  { %v4685_v52 = vpop.eup %4684 }
 0x93d   :  { %1812 = vrot.lane.b32.xlu0 %v4685_v52, %s4778_s3  ;;  %v6118_v52 = vld [vmem:[#allocation32_spill] sm:$0xff] }
 0x941   :  { %v2017_v56 = vpop.permute.xlu2 %2016 }
 0x942   :  { %v5486_v57 = vadd.f32 %v2017_v56, %v2009_v54  ;;  %v6119_v54 = vld [vmem:[#allocation33_spill] sm:$0xff] }
 0x944   :  { %4686 = vtanh.f32 %v5486_v57 }
 0x94a   :  { %v4687_v60 = vpop.eup %4686 }
 0x94b   :  { %2022 = vrot.lane.b32.xlu1 %v4687_v60, %s4777_s0 }
 0x9af   :  { %v1813_v15 = vpop.permute.xlu0 %1812 }
 0x9b0   :  { %v1815_v30 = vmul.f32 %v1813_v15, %v1797_v11 }
 0x9b2   :  { %2031 = vrot.lane.b32.xlu0 %v1815_v30, %s4781_s6 }
 0x9bd   :  { %v2023_v42 = vpop.permute.xlu1 %2022 }
 0x9be   :  { %v2025_v53 = vmul.f32 %v2023_v42, %v2007_v45 }
 0x9c0   :  { %2027 = vrot.lane.b32.xlu2 %v2025_v53, %s4778_s3  ;;  %v6120_v53 = vld [vmem:[#allocation25_spill] sm:$0xff] }
 0xa1a   :  { %v2028_v6 = vpop.permute.xlu2 %2027 }
 0xa1b   :  { %v2271_v47 = vsel %vm452_vm1, %v2028_v6, 0 }
 0xa1c   :  { %v2293_v49 = vand.u32 4294901760, %v2271_v47 }
 0xa1e   :  { %v2294_v43 = vsub.f32 %v2271_v47, %v2293_v49  ;;  %v6121_v47 = vld [vmem:[#allocation41_spill] sm:$0xff] }
 0xa20   :  { %v2295_v2 = vand.u32 4294901760, %v2294_v43 }
 0xa22   :  { %v2296_v45 = vsub.f32 %v2294_v43, %v2295_v2 }
 0xa24   :  { %v2032_v3 = vpop.permute.xlu0 %2031  ;;  %v2297_v40 = vand.u32 4294901760, %v2296_v45 }
 0xa25   :  { %v2034_v46 = vsel %vm452_vm1, %v2028_v6, %v2032_v3  ;;  %v133_v6 = vadd.f32 %v5467_v24, %v6120_v53 }
 0xa26   :  { %v2036_v7 = vsel %vm669_vm2, %v2034_v46, 0  ;;  %v6122_v46 = vld [vmem:[#allocation28_spill] sm:$0xff] }
 0xa27   :  { %v2060_v1 = vand.u32 4294901760, %v2036_v7 }
 0xa29   :  { %v2061_v44 = vsub.f32 %v2036_v7, %v2060_v1  ;;  %2116 = vmatmul.f32.vlgmr.msra.gmra.mxu3 %v2060_v1  ;;  %v204_v7 = vadd.f32 %v6122_v46, %v133_v6 }
 0xa2a   :  { %2446 = vmatpush.msra.mxu3 %v4840_v22 }
 0xa2b   :  { %2150 = vmatmul.f32.vlgmr.msrb.gmra.mxu0 %v2061_v44  ;;  %v2062_v11 = vand.u32 4294901760, %v2061_v44 }
 0xa2c   :  { %2357 = vmatpush.msrb.mxu0 %v4855_v29  ;;  %2448 = vmatpush.msra.mxu3 %v4887_v50 }
 0xa2d   :  { %v2063_v41 = vsub.f32 %v2061_v44, %v2062_v11  ;;  %2179 = vmatmul.f32.vlgmr.msrb.gmra.mxu1 %v2062_v11 }
 0xa2e   :  { %2360 = vmatpush.msrb.mxu0 %v4898_v55  ;;  %2386 = vmatpush.msrb.mxu1 %v4840_v22 }
 0xa2f   :  { %v2064_v48 = vand.u32 4294901760, %v2063_v41  ;;  %2450 = vmatpush.msra.mxu3 %v4938_v8  ;;  %v6123_v41 = vld [vmem:[#allocation15_spill] sm:$0xff] }
 0xa30   :  { %2363 = vmatpush.msrb.mxu0 %v4946_v13  ;;  %2388 = vmatpush.msrb.mxu1 %v4887_v50 }
 0xa31   :  { %2065 = vmatmul.f32.vlgmr.msra.gmra.mxu2 %v2064_v48  ;;  %2245 = vmatmul.f32.vlgmr.msrb.gmra.mxu3 %v2060_v1  ;;  %v262_v48 = vadd.f32 %v6123_v41, %v204_v7 }
 0xa32   :  { %2452 = vmatpush.msra.mxu3 %v4965_v32  ;;  %2415 = vmatpush.msra.mxu2 %v4865_v36 }
 0xa33   :  { %2298 = vmatmul.f32.vlgmr.msra.gmra.mxu0 %v2297_v40  ;;  %2390 = vmatpush.msrb.mxu1 %v4938_v8 }
 0xa34   :  { %2366 = vmatpush.msrb.mxu0 %v4969_v26  ;;  %2419 = vmatpush.msra.mxu2 %v4908_v58 }
 0xa35   :  { %2339 = vmatmul.f32.vlgmr.msra.gmra.mxu1 %v2293_v49  ;;  %2620 = vmatpush.msrb.mxu3 %v5090_v19 }
 0xa36   :  { %2392 = vmatpush.msrb.mxu1 %v4965_v32  ;;  %2423 = vmatpush.msra.mxu2 %v4950_v14 }
 0xa37   :  { %2504 = vmatpush.msra.mxu0 %v5090_v19  ;;  %2622 = vmatpush.msrb.mxu3 %v5092_v23 }
 0xa38   :  { %2539 = vmatpush.msra.mxu1 %v5147_v33  ;;  %2427 = vmatpush.msra.mxu2 %v4974_v34 }
 0xa39   :  { %2218 = vmatmul.f32.vlgmr.msrb.gmra.mxu2 %v2060_v1  ;;  %2454 = vmatmul.f32.vlgmr.msra.gmra.mxu3 %v2293_v49 }
 0xa3a   :  { %2545 = vmatpush.msra.mxu1 %v5149_v61  ;;  %2587 = vmatpush.msrb.mxu2 %v5103_v20 }
 0xa3b   :  { %2369 = vmatmul.f32.vlgmr.msrb.gmra.mxu0 %v2294_v43  ;;  %2624 = vmatpush.msrb.mxu3 %v5094_v25 }
 0xa3c   :  { %2551 = vmatpush.msra.mxu1 %v5159_v18  ;;  %2590 = vmatpush.msrb.mxu2 %v5106_v35 }
 0xa3d   :  { %2396 = vmatmul.f32.vlgmr.msrb.gmra.mxu1 %v2295_v2  ;;  %2506 = vmatpush.msra.mxu0 %v5092_v23 }
 0xa3e   :  { %2557 = vmatpush.msra.mxu1 %v5167_v17  ;;  %2593 = vmatpush.msrb.mxu2 %v5109_v4 }
 0xa3f   :  { %2508 = vmatpush.msra.mxu0 %v5094_v25  ;;  %2626 = vmatpush.msrb.mxu3 %v5096_v37 }
 0xa40   :  { %2563 = vmatpush.msra.mxu1 %v5175_v27  ;;  %2596 = vmatpush.msrb.mxu2 %v5114_v5 }
 0xa41   :  { %2429 = vmatmul.f32.vlgmr.msra.gmra.mxu2 %v2293_v49  ;;  %2510 = vmatpush.msra.mxu0 %v5096_v37 }
 0xa42   :  { %2569 = vmatpush.msra.mxu1 %v5181_v59  ;;  %2599 = vmatpush.msrb.mxu2 %v5117_v39 }
 0xa43   :  { %2628 = vmatpush.msrb.mxu3 %v5098_v9  ;;  %2512 = vmatpush.msra.mxu0 %v5098_v9 }
 0xa44   :  { %2688 = vmatpush.msrb.mxu1 %v5090_v19  ;;  %2602 = vmatpush.msrb.mxu2 %v5130_v12 }
 0xa45   :  { %2630 = vmatpush.msrb.mxu3 %v5100_v16  ;;  %2514 = vmatpush.msra.mxu0 %v5100_v16 }
 0xa46   :  { %2690 = vmatpush.msrb.mxu1 %v5092_v23  ;;  %2741 = vmatpush.msra.mxu2 %v4840_v22 }
 0xa47   :  { %2774 = vmatpush.msra.mxu3 %v4891_v51  ;;  %2651 = vmatpush.msrb.mxu0 %v5120_v10 }
 0xa48   :  { %2692 = vmatpush.msrb.mxu1 %v5094_v25  ;;  %2743 = vmatpush.msra.mxu2 %v4887_v50 }
 0xa49   :  { %2780 = vmatpush.msra.mxu3 %v4922_v63  ;;  %2655 = vmatpush.msrb.mxu0 %v5123_v0 }
 0xa4a   :  { %2694 = vmatpush.msrb.mxu1 %v5096_v37  ;;  %2745 = vmatpush.msra.mxu2 %v4938_v8 }
 0xa4b   :  { %2786 = vmatpush.msra.mxu3 %v4958_v21  ;;  %2659 = vmatpush.msrb.mxu0 %v5126_v31  ;;  %v6124_v21 = vld [vmem:[#allocation16_spill] sm:$0xff] }
 0xa4c   :  { %2696 = vmatpush.msrb.mxu1 %v5098_v9  ;;  %2747 = vmatpush.msra.mxu2 %v4965_v32  ;;  %v326_v53 = vadd.f32 %v6124_v21, %v262_v48 }
 0xa4d   :  { %2792 = vmatpush.msra.mxu3 %v4982_v38  ;;  %2663 = vmatpush.msrb.mxu0 %v5134_v28 }
 0xa4e   :  { %2698 = vmatpush.msrb.mxu1 %v5100_v16 }
 0xa4f   :  { %2667 = vmatpush.msrb.mxu0 %v6118_v52 }
 0xa51   :  { %2671 = vmatpush.msrb.mxu0 %v6119_v54 }
 0xaa8   :  { %v2151_v56 = vpop.f32.mrf.mxu0 }
 0xaaa   :  { %v2180_v60 = vpop.f32.mrf.mxu1 }
 0xaac   :  { %v2117_v15 = vpop.f32.mrf.mxu3 }
 0xab0   :  { %v2299_v30 = vpop.f32.mrf.mxu0 }
 0xab2   :  { %v2340_v3 = vpop.f32.mrf.mxu1 }
 0xab3   :  { %v2341_v40 = vadd.f32 %v2340_v3, %v2299_v30 }
 0xab4   :  { %v2066_v42 = vpop.f32.mrf.mxu2  ;;  %v2246_v2 = vpop.f32.mrf.mxu3 }
 0xab5   :  { %v2067_v49 = vadd.f32 %v6121_v47, %v2066_v42  ;;  %v6125_v42 = vld [vmem:[#allocation38_spill] sm:$0xff] }
 0xab6   :  { %v387_v47 = vadd.f32 %v6125_v42, %v326_v53 }
 0xab7   :  { %v2118_v43 = vadd.f32 %v2117_v15, %v2067_v49 }
 0xab8   :  { %v2370_v11 = vpop.f32.mrf.mxu0 }
 0xab9   :  { %v2152_v1 = vadd.f32 %v2151_v56, %v2118_v43  ;;  %v2371_v52 = vadd.f32 %v2370_v11, %v2341_v40 }
 0xaba   :  { %v2397_v28 = vpop.f32.mrf.mxu1 }
 0xabb   :  { %v2181_v44 = vadd.f32 %v2180_v60, %v2152_v1  ;;  %v2398_v15 = vadd.f32 %v2397_v28, %v2371_v52  ;;  %v6126_v60 = vld [vmem:[#allocation39_spill] sm:$0xff] }
 0xabc   :  { %v2219_v45 = vpop.f32.mrf.mxu2  ;;  %v2455_v56 = vpop.f32.mrf.mxu3  ;;  %v438_v46 = vadd.f32 %v6126_v60, %v387_v47 }
 0xabd   :  { %v2220_v54 = vadd.f32 %v2219_v45, %v2181_v44 }
 0xabf   :  { %v2247_v38 = vadd.f32 %v2246_v2, %v2220_v54 }
 0xac1   :  { %4688 = vtanh.f32 %v2247_v38  ;;  %v2249_v2 = vmul.f32 0.5, %v2247_v38 }
 0xac4   :  { %v2430_v49 = vpop.f32.mrf.mxu2 }
 0xac5   :  { %v2431_v6 = vadd.f32 %v2430_v49, %v2398_v15 }
 0xac7   :  { %v4689_v43 = vpop.eup %4688  ;;  %v2456_v1 = vadd.f32 %v2455_v56, %v2431_v6 }
 0xac8   :  { %2256 = vrot.lane.b32.xlu1 %v4689_v43, %s4779_s4 }
 0xac9   :  { %v2458_v30 = vadd.f32 %v2456_v1, %v438_v46 }
 0xacb   :  { %4690 = vtanh.f32 %v2458_v30  ;;  %v2459_v54 = vmul.f32 0.5, %v2458_v30 }
 0xacd   :  { %4692 = vtanh.f32 %v2459_v54 }
 0xace   :  { %4694 = vtanh.f32 %v2249_v2 }
 0xad1   :  { %v4691_v3 = vpop.eup %4690 }
 0xad2   :  { %2466 = vrot.lane.b32.xlu2 %v4691_v3, %s4777_s0 }
 0xad3   :  { %v4693_v21 = vpop.eup %4692 }
 0xad4   :  { %v2461_v7 = vadd.f32 1.0, %v4693_v21  ;;  %v4695_v11 = vpop.eup %4694 }
 0xad5   :  { %v2251_v45 = vadd.f32 1.0, %v4695_v11 }
 0xad6   :  { %v2462_v28 = vmul.f32 0.5, %v2461_v7 }
 0xad7   :  { %v2252_v41 = vmul.f32 0.5, %v2251_v45 }
 0xad8   :  { %v2464_v53 = vmul.f32 %v2462_v28, %v5486_v57 }
 0xad9   :  { %v2254_v15 = vmul.f32 %v2252_v41, %v5481_v62 }
 0xb2c   :  { %v2467_v52 = vpop.permute.xlu2 %2466 }
 0xb2d   :  { %v2469_v44 = vmul.f32 %v2467_v52, %v2462_v28 }
 0xb2f   :  { %2471 = vrot.lane.b32.xlu1 %v2469_v44, %s4778_s3 }
 0xb3a   :  { %v2257_v48 = vpop.permute.xlu1 %2256 }
 0xb3b   :  { %v2259_v40 = vmul.f32 %v2257_v48, %v2252_v41 }
 0xb3d   :  { %2261 = vrot.lane.b32.xlu0 %v2259_v40, %s4780_s5  ;;  %v6127_v40 = vld [vmem:[#allocation5_spill] sm:$0xff] }
 0xba1   :  { %v2472_v42 = vpop.permute.xlu1 %2471 }
 0xba2   :  { %v5568_v47 = vadd.f32 %v2472_v42, %v2464_v53  ;;  %v6128_v53 = vld [vmem:[#allocation31_spill] sm:$0xff]  ;;  %v6129_v42 = vld [vmem:[#allocation6_spill] sm:$0xff] }
 0xba4   :  { %4696 = vtanh.f32 %v5568_v47 }
 0xbaa   :  { %v4697_v38 = vpop.eup %4696 }
 0xbab   :  { %2477 = vrot.lane.b32.xlu0 %v4697_v38, %s4777_s0  ;;  %v6130_v38 = vld [vmem:[#allocation32_spill] sm:$0xff] }
 0xbaf   :  { %v2262_v49 = vpop.permute.xlu0 %2261 }
 0xbb0   :  { %v5573_v6 = vadd.f32 %v2262_v49, %v2254_v15  ;;  %v6131_v15 = vld [vmem:[#allocation33_spill] sm:$0xff] }
 0xbb2   :  { %4698 = vtanh.f32 %v5573_v6 }
 0xbb8   :  { %v4699_v56 = vpop.eup %4698 }
 0xbb9   :  { %2267 = vrot.lane.b32.xlu2 %v4699_v56, %s4778_s3 }
 0xc13   :  { %v2268_v43 = vpop.permute.xlu2 %2267 }
 0xc14   :  { %v2270_v57 = vmul.f32 %v2268_v43, %v2252_v41 }
 0xc16   :  { %2486 = vrot.lane.b32.xlu2 %v2270_v57, %s4781_s6  ;;  %v5642_v57 = vld [vmem:[#allocation2 + $0x68] ss:$0 sm:$0xff] }
 0xc17   :  { %6132 = vst [vmem:[#allocation17_spill] sm:$0xff] %v5642_v57 }
 0xc1d   :  { %v2478_v60 = vpop.permute.xlu0 %2477 }
 0xc1e   :  { %v2480_v46 = vmul.f32 %v2478_v60, %v2462_v28 }
 0xc20   :  { %2482 = vrot.lane.b32.xlu1 %v2480_v46, %s4778_s3 }
 0xc70   :  { %v2487_v1 = vpop.permute.xlu2 %2486 }
 0xc92   :  { %v2483_v30 = vpop.permute.xlu1 %2482 }
 0xc93   :  { %v2489_v62 = vsel %vm452_vm1, %v2483_v30, %v2487_v1  ;;  %v2726_v3 = vsel %vm452_vm1, %v2483_v30, 0  ;;  %v6133_v30 = vld [vmem:[#allocation29_spill] sm:$0xff] }
 0xc94   :  { %v2491_v54 = vsel %vm669_vm2, %v2489_v62, 0  ;;  %v2748_v21 = vand.u32 4294901760, %v2726_v3  ;;  %v141_v62 = vadd.f32 %v5467_v24, %v6133_v30 }
 0xc95   :  { %v2515_v7 = vand.u32 4294901760, %v2491_v54 }
 0xc96   :  { %v2749_v2 = vsub.f32 %v2726_v3, %v2748_v21 }
 0xc97   :  { %v2516_v52 = vsub.f32 %v2491_v54, %v2515_v7  ;;  %2571 = vmatmul.f32.vlgmr.msra.gmra.mxu1 %v2515_v7 }
 0xc98   :  { %v2750_v44 = vand.u32 4294901760, %v2749_v2  ;;  %2901 = vmatpush.msra.mxu1 %v4840_v22 }
 0xc99   :  { %v2517_v11 = vand.u32 4294901760, %v2516_v52  ;;  %2605 = vmatmul.f32.vlgmr.msrb.gmra.mxu2 %v2516_v52 }
 0xc9a   :  { %2812 = vmatpush.msrb.mxu2 %v4855_v29  ;;  %2903 = vmatpush.msra.mxu1 %v4887_v50  ;;  %v2751_v45 = vsub.f32 %v2749_v2, %v2750_v44 }
 0xc9b   :  { %v2518_v28 = vsub.f32 %v2516_v52, %v2517_v11  ;;  %2634 = vmatmul.f32.vlgmr.msrb.gmra.mxu3 %v2517_v11 }
 0xc9c   :  { %2815 = vmatpush.msrb.mxu2 %v4898_v55  ;;  %2841 = vmatpush.msrb.mxu3 %v4840_v22  ;;  %v2752_v48 = vand.u32 4294901760, %v2751_v45 }
 0xc9d   :  { %v2519_v41 = vand.u32 4294901760, %v2518_v28  ;;  %2905 = vmatpush.msra.mxu1 %v4938_v8 }
 0xc9e   :  { %2818 = vmatpush.msrb.mxu2 %v4946_v13  ;;  %2843 = vmatpush.msrb.mxu3 %v4887_v50 }
 0xc9f   :  { %2520 = vmatmul.f32.vlgmr.msra.gmra.mxu0 %v2519_v41  ;;  %2700 = vmatmul.f32.vlgmr.msrb.gmra.mxu1 %v2515_v7  ;;  %v6135_v41 = vld [vmem:[#allocation19_spill] sm:$0xff] }
 0xca0   :  { %2907 = vmatpush.msra.mxu1 %v4965_v32  ;;  %2821 = vmatpush.msrb.mxu2 %v4969_v26 }
 0xca1   :  { %2753 = vmatmul.f32.vlgmr.msra.gmra.mxu2 %v2752_v48  ;;  %2845 = vmatpush.msrb.mxu3 %v4938_v8 }
 0xca2   :  { %2870 = vmatpush.msra.mxu0 %v4865_v36  ;;  %3075 = vmatpush.msrb.mxu1 %v5090_v19 }
 0xca3   :  { %2794 = vmatmul.f32.vlgmr.msra.gmra.mxu3 %v2748_v21  ;;  %2959 = vmatpush.msra.mxu2 %v5090_v19 }
 0xca4   :  { %2847 = vmatpush.msrb.mxu3 %v4965_v32  ;;  %2874 = vmatpush.msra.mxu0 %v4908_v58 }
 0xca5   :  { %3077 = vmatpush.msrb.mxu1 %v5092_v23  ;;  %2961 = vmatpush.msra.mxu2 %v5092_v23 }
 0xca6   :  { %2994 = vmatpush.msra.mxu3 %v5147_v33  ;;  %2878 = vmatpush.msra.mxu0 %v4950_v14 }
 0xca7   :  { %2673 = vmatmul.f32.vlgmr.msrb.gmra.mxu0 %v2515_v7  ;;  %2909 = vmatmul.f32.vlgmr.msra.gmra.mxu1 %v2748_v21 }
 0xca8   :  { %2882 = vmatpush.msra.mxu0 %v4974_v34  ;;  %3000 = vmatpush.msra.mxu3 %v5149_v61 }
 0xca9   :  { %2824 = vmatmul.f32.vlgmr.msrb.gmra.mxu2 %v2749_v2  ;;  %3079 = vmatpush.msrb.mxu1 %v5094_v25  ;;  %v6134_v2 = vld [vmem:[#allocation30_spill] sm:$0xff] }
 0xcaa   :  { %3042 = vmatpush.msrb.mxu0 %v5103_v20  ;;  %3006 = vmatpush.msra.mxu3 %v5159_v18  ;;  %v208_v52 = vadd.f32 %v6134_v2, %v141_v62 }
 0xcab   :  { %2851 = vmatmul.f32.vlgmr.msrb.gmra.mxu3 %v2750_v44  ;;  %2963 = vmatpush.msra.mxu2 %v5094_v25 }
 0xcac   :  { %3045 = vmatpush.msrb.mxu0 %v5106_v35  ;;  %3012 = vmatpush.msra.mxu3 %v5167_v17  ;;  %v267_v48 = vadd.f32 %v6135_v41, %v208_v52 }
 0xcad   :  { %3081 = vmatpush.msrb.mxu1 %v5096_v37  ;;  %2965 = vmatpush.msra.mxu2 %v5096_v37 }
 0xcae   :  { %3048 = vmatpush.msrb.mxu0 %v5109_v4  ;;  %3018 = vmatpush.msra.mxu3 %v5175_v27 }
 0xcaf   :  { %2884 = vmatmul.f32.vlgmr.msra.gmra.mxu0 %v2748_v21  ;;  %3083 = vmatpush.msrb.mxu1 %v5098_v9 }
 0xcb0   :  { %3024 = vmatpush.msra.mxu3 %v5181_v59  ;;  %3051 = vmatpush.msrb.mxu0 %v5114_v5 }
 0xcb1   :  { %2967 = vmatpush.msra.mxu2 %v5098_v9  ;;  %3085 = vmatpush.msrb.mxu1 %v5100_v16 }
 0xcb2   :  { %3143 = vmatpush.msrb.mxu3 %v5090_v19  ;;  %3054 = vmatpush.msrb.mxu0 %v5117_v39 }
 0xcb3   :  { %2969 = vmatpush.msra.mxu2 %v5100_v16  ;;  %3229 = vmatpush.msra.mxu1 %v4891_v51 }
 0xcb4   :  { %3145 = vmatpush.msrb.mxu3 %v5092_v23  ;;  %3057 = vmatpush.msrb.mxu0 %v5130_v12 }
 0xcb5   :  { %3106 = vmatpush.msrb.mxu2 %v5120_v10  ;;  %3235 = vmatpush.msra.mxu1 %v4922_v63 }
 0xcb6   :  { %3147 = vmatpush.msrb.mxu3 %v5094_v25  ;;  %3196 = vmatpush.msra.mxu0 %v4840_v22 }
 0xcb7   :  { %3110 = vmatpush.msrb.mxu2 %v5123_v0  ;;  %3241 = vmatpush.msra.mxu1 %v6127_v40 }
 0xcb8   :  { %3149 = vmatpush.msrb.mxu3 %v5096_v37  ;;  %3198 = vmatpush.msra.mxu0 %v4887_v50 }
 0xcb9   :  { %3114 = vmatpush.msrb.mxu2 %v5126_v31  ;;  %3247 = vmatpush.msra.mxu1 %v6129_v42 }
 0xcba   :  { %3151 = vmatpush.msrb.mxu3 %v5098_v9  ;;  %3200 = vmatpush.msra.mxu0 %v4938_v8 }
 0xcbb   :  { %3118 = vmatpush.msrb.mxu2 %v6128_v53 }
 0xcbc   :  { %3153 = vmatpush.msrb.mxu3 %v5100_v16  ;;  %3202 = vmatpush.msra.mxu0 %v4965_v32 }
 0xcbd   :  { %3122 = vmatpush.msrb.mxu2 %v6130_v38 }
 0xcbf   :  { %3126 = vmatpush.msrb.mxu2 %v6131_v15 }
 0xd14   :  { %v2572_v49 = vpop.f32.mrf.mxu1 }
 0xd1c   :  { %v2521_v56 = vpop.f32.mrf.mxu0  ;;  %v2606_v43 = vpop.f32.mrf.mxu2 }
 0xd1d   :  { %v2522_v60 = vadd.f32 %v5642_v57, %v2521_v56  ;;  %v2701_v11 = vpop.f32.mrf.mxu1  ;;  %v6136_v57 = vld [vmem:[#allocation20_spill] sm:$0xff] }
 0xd1e   :  { %v2635_v46 = vpop.f32.mrf.mxu3 }
 0xd1f   :  { %v2573_v1 = vadd.f32 %v2572_v49, %v2522_v60  ;;  %v332_v49 = vadd.f32 %v6136_v57, %v267_v48 }
 0xd21   :  { %v2607_v3 = vadd.f32 %v2606_v43, %v2573_v1  ;;  %v6137_v43 = vld [vmem:[#allocation40_spill] sm:$0xff] }
 0xd23   :  { %v2636_v54 = vadd.f32 %v2635_v46, %v2607_v3  ;;  %v391_v46 = vadd.f32 %v6137_v43, %v332_v49 }
 0xd24   :  { %v2674_v21 = vpop.f32.mrf.mxu0  ;;  %v2754_v7 = vpop.f32.mrf.mxu2 }
 0xd25   :  { %v2675_v44 = vadd.f32 %v2674_v21, %v2636_v54  ;;  %v2910_v54 = vpop.f32.mrf.mxu1  ;;  %v6138_v21 = vld [vmem:[#allocation42_spill] sm:$0xff] }
 0xd26   :  { %v2795_v28 = vpop.f32.mrf.mxu3  ;;  %v442_v2 = vadd.f32 %v6138_v21, %v391_v46 }
 0xd27   :  { %v2702_v45 = vadd.f32 %v2701_v11, %v2675_v44  ;;  %v2796_v15 = vadd.f32 %v2795_v28, %v2754_v7 }
 0xd29   :  { %4700 = vtanh.f32 %v2702_v45  ;;  %v2704_v57 = vmul.f32 0.5, %v2702_v45 }
 0xd2c   :  { %v2825_v56 = vpop.f32.mrf.mxu2  ;;  %v2885_v3 = vpop.f32.mrf.mxu0 }
 0xd2d   :  { %v2826_v60 = vadd.f32 %v2825_v56, %v2796_v15 }
 0xd2e   :  { %v2852_v38 = vpop.f32.mrf.mxu3 }
 0xd2f   :  { %v4701_v30 = vpop.eup %4700  ;;  %v2853_v1 = vadd.f32 %v2852_v38, %v2826_v60 }
 0xd30   :  { %2711 = vrot.lane.b32.xlu0 %v4701_v30, %s4779_s4 }
 0xd31   :  { %v2886_v62 = vadd.f32 %v2885_v3, %v2853_v1 }
 0xd33   :  { %v2911_v44 = vadd.f32 %v2910_v54, %v2886_v62 }
 0xd35   :  { %v2913_v52 = vadd.f32 %v2911_v44, %v442_v2 }
 0xd37   :  { %4702 = vtanh.f32 %v2913_v52  ;;  %v2914_v28 = vmul.f32 0.5, %v2913_v52 }
 0xd38   :  { %4704 = vtanh.f32 %v2704_v57 }
 0xd39   :  { %4706 = vtanh.f32 %v2914_v28 }
 0xd3d   :  { %v4703_v7 = vpop.eup %4702 }
 0xd3e   :  { %2921 = vrot.lane.b32.xlu1 %v4703_v7, %s4777_s0  ;;  %v4705_v15 = vpop.eup %4704 }
 0xd3f   :  { %v2706_v11 = vadd.f32 1.0, %v4705_v15  ;;  %v4707_v56 = vpop.eup %4706 }
 0xd40   :  { %v2916_v49 = vadd.f32 1.0, %v4707_v56 }
 0xd41   :  { %v2707_v41 = vmul.f32 0.5, %v2706_v11 }
 0xd42   :  { %v2917_v60 = vmul.f32 0.5, %v2916_v49 }
 0xd43   :  { %v2709_v46 = vmul.f32 %v2707_v41, %v5573_v6 }
 0xd44   :  { %v2919_v62 = vmul.f32 %v2917_v60, %v5568_v47 }
 0xda2   :  { %v2712_v38 = vpop.permute.xlu0 %2711 }
 0xda3   :  { %v2714_v48 = vmul.f32 %v2712_v38, %v2707_v41 }
 0xda5   :  { %2716 = vrot.lane.b32.xlu2 %v2714_v48, %s4780_s5 }
 0xdb0   :  { %v2922_v30 = vpop.permute.xlu1 %2921 }
 0xdb1   :  { %v2924_v43 = vmul.f32 %v2922_v30, %v2917_v60 }
 0xdb3   :  { %2926 = vrot.lane.b32.xlu0 %v2924_v43, %s4778_s3 }
 0xdff   :  { %v2717_v45 = vpop.permute.xlu2 %2716 }
 0xe00   :  { %v5657_v1 = vadd.f32 %v2717_v45, %v2709_v46 }
 0xe02   :  { %4708 = vtanh.f32 %v5657_v1 }
 0xe08   :  { %v4709_v3 = vpop.eup %4708 }
 0xe09   :  { %2722 = vrot.lane.b32.xlu1 %v4709_v3, %s4778_s3 }
 0xe25   :  { %v2927_v54 = vpop.permute.xlu0 %2926 }
 0xe26   :  { %v5662_v21 = vadd.f32 %v2927_v54, %v2919_v62 }
 0xe28   :  { %4710 = vtanh.f32 %v5662_v21 }
 0xe2e   :  { %v4711_v2 = vpop.eup %4710 }
 0xe2f   :  { %2932 = vrot.lane.b32.xlu2 %v4711_v2, %s4777_s0 }
 0xe7b   :  { %v2723_v44 = vpop.permute.xlu1 %2722 }
 0xe7c   :  { %v2725_v6 = vmul.f32 %v2723_v44, %v2707_v41  ;;  %v6141_v44 = vld [vmem:[#allocation17_spill] sm:$0xff] }
 0xe7e   :  { %2941 = vrot.lane.b32.xlu1 %v2725_v6, %s4781_s6 }
 0xe89   :  { %v2933_v52 = vpop.permute.xlu2 %2932 }
 0xe8a   :  { %v2935_v7 = vmul.f32 %v2933_v52, %v2917_v60 }
 0xe8c   :  { %2937 = vrot.lane.b32.xlu0 %v2935_v7, %s4778_s3  ;;  %v6142_v7 = vld [vmem:[#allocation7_spill] sm:$0xff] }
 0xef0   :  { %v2942_v57 = vpop.permute.xlu1 %2941 }
 0xefe   :  { %v2938_v15 = vpop.permute.xlu0 %2937 }
 0xeff   :  { %v2944_v47 = vsel %vm452_vm1, %v2938_v15, %v2942_v57  ;;  %v3181_v11 = vsel %vm452_vm1, %v2938_v15, 0 }
 0xf00   :  { %v2946_v28 = vsel %vm669_vm2, %v2944_v47, 0  ;;  %v3203_v38 = vand.u32 4294901760, %v3181_v11  ;;  %v6143_v47 = vld [vmem:[#allocation8_spill] sm:$0xff] }
 0xf01   :  { %v2970_v48 = vand.u32 4294901760, %v2946_v28 }
 0xf02   :  { %v3204_v56 = vsub.f32 %v3181_v11, %v3203_v38 }
 0xf03   :  { %v2971_v49 = vsub.f32 %v2946_v28, %v2970_v48  ;;  %3026 = vmatmul.f32.vlgmr.msra.gmra.mxu3 %v2970_v48 }
 0xf04   :  { %v3205_v41 = vand.u32 4294901760, %v3204_v56  ;;  %3356 = vmatpush.msra.mxu3 %v4840_v22 }
 0xf05   :  { %v2972_v30 = vand.u32 4294901760, %v2971_v49  ;;  %3060 = vmatmul.f32.vlgmr.msrb.gmra.mxu0 %v2971_v49 }
 0xf06   :  { %3267 = vmatpush.msrb.mxu0 %v4855_v29  ;;  %3358 = vmatpush.msra.mxu3 %v4887_v50  ;;  %v3206_v43 = vsub.f32 %v3204_v56, %v3205_v41 }
 0xf07   :  { %v2973_v60 = vsub.f32 %v2971_v49, %v2972_v30  ;;  %3089 = vmatmul.f32.vlgmr.msrb.gmra.mxu1 %v2972_v30  ;;  %v6144_v49 = vld [vmem:[#allocation22_spill] sm:$0xff] }
 0xf08   :  { %3270 = vmatpush.msrb.mxu0 %v4898_v55  ;;  %3296 = vmatpush.msrb.mxu1 %v4840_v22  ;;  %v3207_v45 = vand.u32 4294901760, %v3206_v43 }
 0xf09   :  { %v2974_v46 = vand.u32 4294901760, %v2973_v60  ;;  %3360 = vmatpush.msra.mxu3 %v4938_v8 }
 0xf0a   :  { %3273 = vmatpush.msrb.mxu0 %v4946_v13  ;;  %3298 = vmatpush.msrb.mxu1 %v4887_v50 }
 0xf0b   :  { %2975 = vmatmul.f32.vlgmr.msra.gmra.mxu2 %v2974_v46  ;;  %3155 = vmatmul.f32.vlgmr.msrb.gmra.mxu3 %v2970_v48 }
 0xf0c   :  { %3362 = vmatpush.msra.mxu3 %v4965_v32  ;;  %3276 = vmatpush.msrb.mxu0 %v4969_v26 }
 0xf0d   :  { %3208 = vmatmul.f32.vlgmr.msra.gmra.mxu0 %v3207_v45  ;;  %3300 = vmatpush.msrb.mxu1 %v4938_v8 }
 0xf0e   :  { %3325 = vmatpush.msra.mxu2 %v4865_v36  ;;  %3530 = vmatpush.msrb.mxu3 %v5090_v19 }
 0xf0f   :  { %3249 = vmatmul.f32.vlgmr.msra.gmra.mxu1 %v3203_v38  ;;  %3414 = vmatpush.msra.mxu0 %v5090_v19 }
 0xf10   :  { %3302 = vmatpush.msrb.mxu1 %v4965_v32  ;;  %3329 = vmatpush.msra.mxu2 %v4908_v58 }
 0xf11   :  { %3532 = vmatpush.msrb.mxu3 %v5092_v23  ;;  %3416 = vmatpush.msra.mxu0 %v5092_v23 }
 0xf12   :  { %3449 = vmatpush.msra.mxu1 %v5147_v33  ;;  %3333 = vmatpush.msra.mxu2 %v4950_v14 }
 0xf13   :  { %3128 = vmatmul.f32.vlgmr.msrb.gmra.mxu2 %v2970_v48  ;;  %3364 = vmatmul.f32.vlgmr.msra.gmra.mxu3 %v3203_v38 }
 0xf14   :  { %3337 = vmatpush.msra.mxu2 %v4974_v34  ;;  %3455 = vmatpush.msra.mxu1 %v5149_v61 }
 0xf15   :  { %3279 = vmatmul.f32.vlgmr.msrb.gmra.mxu0 %v3204_v56  ;;  %3534 = vmatpush.msrb.mxu3 %v5094_v25 }
 0xf16   :  { %3497 = vmatpush.msrb.mxu2 %v5103_v20  ;;  %3461 = vmatpush.msra.mxu1 %v5159_v18 }
 0xf17   :  { %3306 = vmatmul.f32.vlgmr.msrb.gmra.mxu1 %v3205_v41  ;;  %3418 = vmatpush.msra.mxu0 %v5094_v25 }
 0xf18   :  { %3500 = vmatpush.msrb.mxu2 %v5106_v35  ;;  %3467 = vmatpush.msra.mxu1 %v5167_v17 }
 0xf19   :  { %3536 = vmatpush.msrb.mxu3 %v5096_v37  ;;  %3420 = vmatpush.msra.mxu0 %v5096_v37 }
 0xf1a   :  { %3503 = vmatpush.msrb.mxu2 %v5109_v4  ;;  %3473 = vmatpush.msra.mxu1 %v5175_v27 }
 0xf1b   :  { %3339 = vmatmul.f32.vlgmr.msra.gmra.mxu2 %v3203_v38  ;;  %3538 = vmatpush.msrb.mxu3 %v5098_v9 }
 0xf1c   :  { %3479 = vmatpush.msra.mxu1 %v5181_v59  ;;  %3506 = vmatpush.msrb.mxu2 %v5114_v5 }
 0xf1d   :  { %3422 = vmatpush.msra.mxu0 %v5098_v9  ;;  %3540 = vmatpush.msrb.mxu3 %v5100_v16 }
 0xf1e   :  { %3598 = vmatpush.msrb.mxu1 %v5090_v19  ;;  %3509 = vmatpush.msrb.mxu2 %v5117_v39 }
 0xf1f   :  { %3424 = vmatpush.msra.mxu0 %v5100_v16  ;;  %3684 = vmatpush.msra.mxu3 %v4891_v51  ;;  %v6139_v51 = vld [vmem:[#allocation32_spill] sm:$0xff] }
 0xf20   :  { %3600 = vmatpush.msrb.mxu1 %v5092_v23  ;;  %3512 = vmatpush.msrb.mxu2 %v5130_v12 }
 0xf21   :  { %3561 = vmatpush.msrb.mxu0 %v5120_v10  ;;  %3690 = vmatpush.msra.mxu3 %v4922_v63  ;;  %v6140_v63 = vld [vmem:[#allocation33_spill] sm:$0xff] }
 0xf22   :  { %3602 = vmatpush.msrb.mxu1 %v5094_v25  ;;  %3651 = vmatpush.msra.mxu2 %v4840_v22 }
 0xf23   :  { %3565 = vmatpush.msrb.mxu0 %v5123_v0  ;;  %3696 = vmatpush.msra.mxu3 %v6127_v40 }
 0xf24   :  { %3604 = vmatpush.msrb.mxu1 %v5096_v37  ;;  %3653 = vmatpush.msra.mxu2 %v4887_v50 }
 0xf25   :  { %3569 = vmatpush.msrb.mxu0 %v5126_v31  ;;  %3702 = vmatpush.msra.mxu3 %v6129_v42  ;;  %v149_v42 = vadd.f32 %v5467_v24, %v6142_v7 }
 0xf26   :  { %3606 = vmatpush.msrb.mxu1 %v5098_v9  ;;  %3655 = vmatpush.msra.mxu2 %v4938_v8 }
 0xf27   :  { %3573 = vmatpush.msrb.mxu0 %v6128_v53  ;;  %v212_v11 = vadd.f32 %v6143_v47, %v149_v42 }
 0xf28   :  { %3608 = vmatpush.msrb.mxu1 %v5100_v16  ;;  %3657 = vmatpush.msra.mxu2 %v4965_v32 }
 0xf29   :  { %3577 = vmatpush.msrb.mxu0 %v6139_v51  ;;  %v272_v41 = vadd.f32 %v6144_v49, %v212_v11 }
 0xf2b   :  { %3581 = vmatpush.msrb.mxu0 %v6140_v63  ;;  %v6146_v63 = vld [vmem:[#allocation43_spill] sm:$0xff] }
 0xf82   :  { %v3061_v3 = vpop.f32.mrf.mxu0 }
 0xf84   :  { %v3090_v40 = vpop.f32.mrf.mxu1 }
 0xf86   :  { %v3027_v62 = vpop.f32.mrf.mxu3 }
 0xf8a   :  { %v3209_v54 = vpop.f32.mrf.mxu0 }
 0xf8c   :  { %v3250_v52 = vpop.f32.mrf.mxu1 }
 0xf8d   :  { %v3251_v30 = vadd.f32 %v3250_v52, %v3209_v54 }
 0xf8e   :  { %v2976_v2 = vpop.f32.mrf.mxu2  ;;  %v3156_v28 = vpop.f32.mrf.mxu3 }
 0xf8f   :  { %v2977_v6 = vadd.f32 %v6141_v44, %v2976_v2  ;;  %v6145_v2 = vld [vmem:[#allocation24_spill] sm:$0xff] }
 0xf90   :  { %v338_v44 = vadd.f32 %v6145_v2, %v272_v41 }
 0xf91   :  { %v3028_v57 = vadd.f32 %v3027_v62, %v2977_v6 }
 0xf92   :  { %v3280_v48 = vpop.f32.mrf.mxu0  ;;  %v395_v24 = vadd.f32 %v6146_v63, %v338_v44 }
 0xf93   :  { %v3062_v15 = vadd.f32 %v3061_v3, %v3028_v57  ;;  %v3281_v43 = vadd.f32 %v3280_v48, %v3251_v30 }
 0xf94   :  { %v3307_v45 = vpop.f32.mrf.mxu1 }
 0xf95   :  { %v3091_v38 = vadd.f32 %v3090_v40, %v3062_v15  ;;  %v3308_v62 = vadd.f32 %v3307_v45, %v3281_v43  ;;  %v6147_v40 = vld [vmem:[#allocation44_spill] sm:$0xff] }
 0xf96   :  { %v3129_v56 = vpop.f32.mrf.mxu2  ;;  %v3365_v7 = vpop.f32.mrf.mxu3  ;;  %v446_v57 = vadd.f32 %v6147_v40, %v395_v24 }
 0xf97   :  { %v3130_v60 = vadd.f32 %v3129_v56, %v3091_v38 }
 0xf99   :  { %v3157_v46 = vadd.f32 %v3156_v28, %v3130_v60 }
 0xf9b   :  { %4712 = vtanh.f32 %v3157_v46  ;;  %v3159_v47 = vmul.f32 0.5, %v3157_v46 }
 0xf9e   :  { %v3340_v3 = vpop.f32.mrf.mxu2 }
 0xf9f   :  { %v3341_v6 = vadd.f32 %v3340_v3, %v3308_v62 }
 0xfa1   :  { %v4713_v42 = vpop.eup %4712  ;;  %v3366_v15 = vadd.f32 %v3365_v7, %v3341_v6 }
 0xfa2   :  { %3166 = vrot.lane.b32.xlu2 %v4713_v42, %s4779_s4 }
 0xfa3   :  { %v3368_v54 = vadd.f32 %v3366_v15, %v446_v57 }
 0xfa5   :  { %4714 = vtanh.f32 %v3368_v54  ;;  %v3369_v48 = vmul.f32 0.5, %v3368_v54 }
 0xfa6   :  { %4716 = vtanh.f32 %v3159_v47 }
 0xfa7   :  { %4718 = vtanh.f32 %v3369_v48 }
 0xfab   :  { %v4715_v52 = vpop.eup %4714 }
 0xfac   :  { %3376 = vrot.lane.b32.xlu0 %v4715_v52, %s4777_s0  ;;  %v4717_v11 = vpop.eup %4716 }
 0xfad   :  { %v3161_v28 = vadd.f32 1.0, %v4717_v11  ;;  %v4719_v56 = vpop.eup %4718 }
 0xfae   :  { %v3371_v49 = vadd.f32 1.0, %v4719_v56 }
 0xfaf   :  { %v3162_v63 = vmul.f32 0.5, %v3161_v28 }
 0xfb0   :  { %v3372_v41 = vmul.f32 0.5, %v3371_v49 }
 0xfb1   :  { %v3164_v43 = vmul.f32 %v3162_v63, %v5657_v1 }
 0xfb2   :  { %v3374_v24 = vmul.f32 %v3372_v41, %v5662_v21 }
 0xffc   :  { %v3167_v44 = vpop.permute.xlu2 %3166 }
 0xffd   :  { %v3169_v38 = vmul.f32 %v3167_v44, %v3162_v63 }
 0xfff   :  { %3171 = vrot.lane.b32.xlu1 %v3169_v38, %s4780_s5 }
0x101e   :  { %v3377_v30 = vpop.permute.xlu0 %3376 }
0x101f   :  { %v3379_v60 = vmul.f32 %v3377_v30, %v3372_v41 }
0x1021   :  { %3381 = vrot.lane.b32.xlu2 %v3379_v60, %s4778_s3  ;;  %v6155_v60 = vld [vmem:[#allocation46_spill] sm:$0xff] }
0x1071   :  { %v3172_v46 = vpop.permute.xlu1 %3171 }
0x1072   :  { %v5744_v45 = vadd.f32 %v3172_v46, %v3164_v43 }
0x1074   :  { %4720 = vtanh.f32 %v5744_v45 }
0x107a   :  { %v4721_v2 = vpop.eup %4720 }
0x107b   :  { %3177 = vrot.lane.b32.xlu0 %v4721_v2, %s4778_s3  ;;  %v3382_v62 = vpop.permute.xlu2 %3381 }
0x107c   :  { %v5749_v3 = vadd.f32 %v3382_v62, %v3374_v24 }
0x107e   :  { %4722 = vtanh.f32 %v5749_v3 }
0x1084   :  { %v4723_v6 = vpop.eup %4722 }
0x1085   :  { %3387 = vrot.lane.b32.xlu1 %v4723_v6, %s4777_s0 }
0x10ed   :  { %v3178_v7 = vpop.permute.xlu0 %3177 }
0x10ee   :  { %v3180_v1 = vmul.f32 %v3178_v7, %v3162_v63 }
0x10f0   :  { %3396 = vrot.lane.b32.xlu0 %v3180_v1, %s4781_s6 }
0x10f7   :  { %v3388_v42 = vpop.permute.xlu1 %3387 }
0x10f8   :  { %v3390_v40 = vmul.f32 %v3388_v42, %v3372_v41 }
0x10fa   :  { %3392 = vrot.lane.b32.xlu2 %v3390_v40, %s4778_s3 }
0x1154   :  { %v3393_v57 = vpop.permute.xlu2 %3392 }
0x1155   :  { %v3636_v21 = vsel %vm452_vm1, %v3393_v57, 0 }
0x1156   :  { %v3658_v15 = vand.u32 4294901760, %v3636_v21 }
0x1158   :  { %v3659_v52 = vsub.f32 %v3636_v21, %v3658_v15 }
0x115a   :  { %v3660_v44 = vand.u32 4294901760, %v3659_v52 }
0x115c   :  { %v3661_v48 = vsub.f32 %v3659_v52, %v3660_v44 }
0x115e   :  { %v3662_v41 = vand.u32 4294901760, %v3661_v48 }
0x1162   :  { %v3397_v54 = vpop.permute.xlu0 %3396 }
0x1163   :  { %v3399_v47 = vsel %vm452_vm1, %v3393_v57, %v3397_v54 }
0x1164   :  { %v3401_v11 = vsel %vm669_vm2, %v3399_v47, 0 }
0x1165   :  { %v3425_v28 = vand.u32 4294901760, %v3401_v11 }
0x1167   :  { %v3426_v38 = vsub.f32 %v3401_v11, %v3425_v28  ;;  %3481 = vmatmul.f32.vlgmr.msra.gmra.mxu1 %v3425_v28 }
0x1168   :  { %3811 = vmatpush.msra.mxu1 %v4840_v22 }
0x1169   :  { %v3427_v63 = vand.u32 4294901760, %v3426_v38  ;;  %3515 = vmatmul.f32.vlgmr.msrb.gmra.mxu2 %v3426_v38 }
0x116a   :  { %3722 = vmatpush.msrb.mxu2 %v4855_v29  ;;  %3813 = vmatpush.msra.mxu1 %v4887_v50 }
0x116b   :  { %v3428_v56 = vsub.f32 %v3426_v38, %v3427_v63  ;;  %3544 = vmatmul.f32.vlgmr.msrb.gmra.mxu3 %v3427_v63 }
0x116c   :  { %3725 = vmatpush.msrb.mxu2 %v4898_v55  ;;  %3751 = vmatpush.msrb.mxu3 %v4840_v22  ;;  %v6148_v22 = vld [vmem:[#allocation33_spill] sm:$0xff] }
0x116d   :  { %v3429_v49 = vand.u32 4294901760, %v3428_v56  ;;  %3815 = vmatpush.msra.mxu1 %v4938_v8  ;;  %v6149_v55 = vld [vmem:[#allocation17_spill] sm:$0xff] }
0x116e   :  { %3728 = vmatpush.msrb.mxu2 %v4946_v13  ;;  %3753 = vmatpush.msrb.mxu3 %v4887_v50 }
0x116f   :  { %3430 = vmatmul.f32.vlgmr.msra.gmra.mxu0 %v3429_v49  ;;  %3610 = vmatmul.f32.vlgmr.msrb.gmra.mxu1 %v3425_v28 }
0x1170   :  { %3817 = vmatpush.msra.mxu1 %v4965_v32  ;;  %3731 = vmatpush.msrb.mxu2 %v4969_v26  ;;  %v6150_v26 = vld [vmem:[#allocation9_spill] sm:$0xff] }
0x1171   :  { %3663 = vmatmul.f32.vlgmr.msra.gmra.mxu2 %v3662_v41  ;;  %3755 = vmatpush.msrb.mxu3 %v4938_v8 }
0x1172   :  { %3780 = vmatpush.msra.mxu0 %v4865_v36  ;;  %3985 = vmatpush.msrb.mxu1 %v5090_v19 }
0x1173   :  { %3704 = vmatmul.f32.vlgmr.msra.gmra.mxu3 %v3658_v15  ;;  %3869 = vmatpush.msra.mxu2 %v5090_v19 }
0x1174   :  { %3757 = vmatpush.msrb.mxu3 %v4965_v32  ;;  %3784 = vmatpush.msra.mxu0 %v4908_v58  ;;  %v4746_v32 = vld [vmem:[#allocation2 + $0x30] ss:$0 sm:$0xff] }
0x1175   :  { %3987 = vmatpush.msrb.mxu1 %v5092_v23  ;;  %3871 = vmatpush.msra.mxu2 %v5092_v23 }
0x1176   :  { %3904 = vmatpush.msra.mxu3 %v5147_v33  ;;  %3788 = vmatpush.msra.mxu0 %v4950_v14 }
0x1177   :  { %3583 = vmatmul.f32.vlgmr.msrb.gmra.mxu0 %v3425_v28  ;;  %3819 = vmatmul.f32.vlgmr.msra.gmra.mxu1 %v3658_v15 }
0x1178   :  { %3792 = vmatpush.msra.mxu0 %v4974_v34  ;;  %3910 = vmatpush.msra.mxu3 %v5149_v61  ;;  %v157_v34 = vadd.f32 %v4746_v32, %v6150_v26 }
0x1179   :  { %3734 = vmatmul.f32.vlgmr.msrb.gmra.mxu2 %v3659_v52  ;;  %3989 = vmatpush.msrb.mxu1 %v5094_v25 }
0x117a   :  { %3952 = vmatpush.msrb.mxu0 %v5103_v20  ;;  %3916 = vmatpush.msra.mxu3 %v5159_v18 }
0x117b   :  { %3761 = vmatmul.f32.vlgmr.msrb.gmra.mxu3 %v3660_v44  ;;  %3873 = vmatpush.msra.mxu2 %v5094_v25 }
0x117c   :  { %3955 = vmatpush.msrb.mxu0 %v5106_v35  ;;  %3922 = vmatpush.msra.mxu3 %v5167_v17  ;;  %v6152_v35 = vld [vmem:[#allocation26_spill] sm:$0xff]  ;;  %v6154_v17 = vld [vmem:[#allocation45_spill] sm:$0xff] }
0x117d   :  { %3991 = vmatpush.msrb.mxu1 %v5096_v37  ;;  %3875 = vmatpush.msra.mxu2 %v5096_v37 }
0x117e   :  { %3958 = vmatpush.msrb.mxu0 %v5109_v4  ;;  %3928 = vmatpush.msra.mxu3 %v5175_v27 }
0x117f   :  { %3794 = vmatmul.f32.vlgmr.msra.gmra.mxu0 %v3658_v15  ;;  %3993 = vmatpush.msrb.mxu1 %v5098_v9 }
0x1180   :  { %3934 = vmatpush.msra.mxu3 %v5181_v59  ;;  %3961 = vmatpush.msrb.mxu0 %v5114_v5 }
0x1181   :  { %3877 = vmatpush.msra.mxu2 %v5098_v9  ;;  %3995 = vmatpush.msrb.mxu1 %v5100_v16 }
0x1182   :  { %4053 = vmatpush.msrb.mxu3 %v5090_v19  ;;  %3964 = vmatpush.msrb.mxu0 %v5117_v39 }
0x1183   :  { %3879 = vmatpush.msra.mxu2 %v5100_v16 }
0x1184   :  { %4055 = vmatpush.msrb.mxu3 %v5092_v23  ;;  %3967 = vmatpush.msrb.mxu0 %v5130_v12 }
0x1185   :  { %4016 = vmatpush.msrb.mxu2 %v5120_v10  ;;  %v6153_v10 = vld [vmem:[#allocation27_spill] sm:$0xff] }
0x1186   :  { %4057 = vmatpush.msrb.mxu3 %v5094_v25 }
0x1187   :  { %4020 = vmatpush.msrb.mxu2 %v5123_v0 }
0x1188   :  { %4059 = vmatpush.msrb.mxu3 %v5096_v37 }
0x1189   :  { %4024 = vmatpush.msrb.mxu2 %v5126_v31 }
0x118a   :  { %4061 = vmatpush.msrb.mxu3 %v5098_v9  ;;  %v6151_v9 = vld [vmem:[#allocation10_spill] sm:$0xff] }
0x118b   :  { %4028 = vmatpush.msrb.mxu2 %v6128_v53 }
0x118c   :  { %4063 = vmatpush.msrb.mxu3 %v5100_v16  ;;  %v216_v16 = vadd.f32 %v6151_v9, %v157_v34 }
0x118d   :  { %4032 = vmatpush.msrb.mxu2 %v6139_v51 }
0x118e   :  { %v277_v4 = vadd.f32 %v6152_v35, %v216_v16 }
0x118f   :  { %4036 = vmatpush.msrb.mxu2 %v6148_v22 }
0x1190   :  { %v344_v0 = vadd.f32 %v6153_v10, %v277_v4 }
0x1192   :  { %v399_v27 = vadd.f32 %v6154_v17, %v344_v0 }
0x1194   :  { %v450_v43 = vadd.f32 %v6155_v60, %v399_v27 }
0x11e4   :  { %v3482_v29 = vpop.f32.mrf.mxu1 }
0x11ec   :  { %v3431_v36 = vpop.f32.mrf.mxu0  ;;  %v3516_v50 = vpop.f32.mrf.mxu2 }
0x11ed   :  { %v3432_v58 = vadd.f32 %v6149_v55, %v3431_v36  ;;  %v3611_v25 = vpop.f32.mrf.mxu1 }
0x11ee   :  { %v3545_v8 = vpop.f32.mrf.mxu3 }
0x11ef   :  { %v3483_v13 = vadd.f32 %v3482_v29, %v3432_v58 }
0x11f1   :  { %v3517_v14 = vadd.f32 %v3516_v50, %v3483_v13 }
0x11f3   :  { %v3546_v18 = vadd.f32 %v3545_v8, %v3517_v14 }
0x11f4   :  { %v3584_v61 = vpop.f32.mrf.mxu0  ;;  %v3664_v19 = vpop.f32.mrf.mxu2 }
0x11f5   :  { %v3585_v23 = vadd.f32 %v3584_v61, %v3546_v18  ;;  %v3820_v30 = vpop.f32.mrf.mxu1 }
0x11f6   :  { %v3705_v37 = vpop.f32.mrf.mxu3 }
0x11f7   :  { %v3612_v20 = vadd.f32 %v3611_v25, %v3585_v23  ;;  %v3706_v5 = vadd.f32 %v3705_v37, %v3664_v19 }
0x11f9   :  { %4724 = vtanh.f32 %v3612_v20  ;;  %v3614_v7 = vmul.f32 0.5, %v3612_v20 }
0x11fc   :  { %v3735_v39 = vpop.f32.mrf.mxu2  ;;  %v3795_v53 = vpop.f32.mrf.mxu0 }
0x11fd   :  { %v3736_v31 = vadd.f32 %v3735_v39, %v3706_v5 }
0x11fe   :  { %v3762_v12 = vpop.f32.mrf.mxu3 }
0x11ff   :  { %v4725_v33 = vpop.eup %4724  ;;  %v3763_v59 = vadd.f32 %v3762_v12, %v3736_v31 }
0x1200   :  { %3621 = vrot.lane.b32.xlu1 %v4725_v33, %s4779_s4 }
0x1201   :  { %v3796_v51 = vadd.f32 %v3795_v53, %v3763_v59 }
0x1203   :  { %v3821_v46 = vadd.f32 %v3820_v30, %v3796_v51  ;;  %v4092_v30 = vld [vmem:[#allocation2 + $0x78] sm:$0xff] }
0x1204   :  { %v4131_v60 = vand.u32 4294901760, %v4092_v30 }
0x1205   :  { %v3823_v2 = vadd.f32 %v3821_v46, %v450_v43  ;;  %v4091_v43 = vld [vmem:[#allocation2 + $0x70] sm:$0xff] }
0x1206   :  { %v4159_v46 = vsub.f32 %v4092_v30, %v4131_v60  ;;  %4132 = vmatpush.msra.mxu0 %v4131_v60 }
0x1207   :  { %4726 = vtanh.f32 %v3823_v2  ;;  %v3824_v62 = vmul.f32 0.5, %v3823_v2  ;;  %v4133_v2 = vand.u32 4294901760, %v4091_v43 }
0x1209   :  { %4728 = vtanh.f32 %v3824_v62  ;;  %v4165_v62 = vsub.f32 %v4091_v43, %v4133_v2  ;;  %4134 = vmatpush.msra.mxu0 %v4133_v2  ;;  %v4100_v43 = vld [vmem:[#allocation2 + $0xb8] sm:$0xff] }
0x120a   :  { %4730 = vtanh.f32 %v3614_v7 }
0x120b   :  { %v4166_v7 = vand.u32 4294901760, %v4165_v62 }
0x120d   :  { %v4727_v24 = vpop.eup %4726 }
0x120e   :  { %3831 = vrot.lane.b32.xlu2 %v4727_v24, %s4777_s0  ;;  %v4160_v24 = vand.u32 4294901760, %v4159_v46 }
0x120f   :  { %v4729_v6 = vpop.eup %4728 }
0x1210   :  { %v3826_v1 = vadd.f32 1.0, %v4729_v6  ;;  %v4731_v21 = vpop.eup %4730  ;;  %v4161_v6 = vsub.f32 %v4159_v46, %v4160_v24 }
0x1211   :  { %v3616_v15 = vadd.f32 1.0, %v4731_v21  ;;  %v4108_v21 = vld [vmem:[#allocation2 + $0xf8] sm:$0xff] }
0x1212   :  { %v3827_v42 = vmul.f32 0.5, %v3826_v1  ;;  %v4162_v1 = vand.u32 4294901760, %v4161_v6 }
0x1213   :  { %v3617_v54 = vmul.f32 0.5, %v3616_v15  ;;  %v4107_v15 = vld [vmem:[#allocation2 + $0xf0] sm:$0xff] }
0x1214   :  { %v3829_v11 = vmul.f32 %v3827_v42, %v5749_v3  ;;  %4163 = vmatpush.msra.mxu1 %v4162_v1 }
0x1215   :  { %v3619_v63 = vmul.f32 %v3617_v54, %v5744_v45 }
0x1268   :  { %v3832_v40 = vpop.permute.xlu2 %3831 }
0x1269   :  { %v3834_v57 = vmul.f32 %v3832_v40, %v3827_v42 }
0x126b   :  { %3836 = vrot.lane.b32.xlu1 %v3834_v57, %s4778_s3  ;;  %v4109_v57 = vld [vmem:[#allocation2 + $0x100] sm:$0xff] }
0x1272   :  { %v3622_v52 = vpop.permute.xlu1 %3621 }
0x1273   :  { %v3624_v47 = vmul.f32 %v3622_v52, %v3617_v54  ;;  %v5835_v52 = vand.u32 4294901760, %v4108_v21 }
0x1275   :  { %3626 = vrot.lane.b32.xlu0 %v3624_v47, %s4780_s5  ;;  %v5837_v47 = vand.u32 4294901760, %v4107_v15 }
0x12dd   :  { %v3837_v28 = vpop.permute.xlu1 %3836 }
0x12de   :  { %v3839_v44 = vadd.f32 %v3837_v28, %v3829_v11  ;;  %v4106_v11 = vld [vmem:[#allocation2 + $0xe8] sm:$0xff]  ;;  %v4105_v28 = vld [vmem:[#allocation2 + $0xe0] sm:$0xff] }
0x12e0   :  { %4732 = vtanh.f32 %v3839_v44 }
0x12e6   :  { %v4733_v38 = vpop.eup %4732 }
0x12e7   :  { %v3627_v48 = vpop.permute.xlu0 %3626  ;;  %3842 = vrot.lane.b32.xlu0 %v4733_v38, %s4777_s0  ;;  %v5843_v38 = vsub.f32 %v4108_v21, %v5835_v52 }
0x12e8   :  { %v3629_v56 = vadd.f32 %v3627_v48, %v3619_v63  ;;  %v5845_v63 = vand.u32 4294901760, %v4106_v11  ;;  %v4104_v48 = vld [vmem:[#allocation2 + $0xd8] sm:$0xff] }
0x12ea   :  { %4734 = vtanh.f32 %v3629_v56 }
0x12f0   :  { %v4735_v49 = vpop.eup %4734 }
0x12f1   :  { %3632 = vrot.lane.b32.xlu2 %v4735_v49, %s4778_s3  ;;  %v5850_v49 = vsub.f32 %v4107_v15, %v5837_v47 }
0x134b   :  { %v3633_v41 = vpop.permute.xlu2 %3632 }
0x134c   :  { %v3635_v22 = vmul.f32 %v3633_v41, %v3617_v54  ;;  %v5833_v54 = vand.u32 4294901760, %v4109_v57  ;;  %v5852_v41 = vand.u32 4294901760, %v4105_v28 }
0x134e   :  { %3851 = vrot.lane.b32.xlu2 %v3635_v22, %s4781_s6  ;;  %v5840_v44 = vsub.f32 %v4109_v57, %v5833_v54  ;;  %v4103_v22 = vld [vmem:[#allocation2 + $0xd0] sm:$0xff] }
0x1359   :  { %v3843_v29 = vpop.permute.xlu0 %3842 }
0x135a   :  { %v3845_v3 = vmul.f32 %v3843_v29, %v3827_v42  ;;  %v4167_v42 = vsub.f32 %v4165_v62, %v4166_v7  ;;  %v4330_v29 = vand.u32 4294901760, %v5843_v38 }
0x135c   :  { %3847 = vrot.lane.b32.xlu1 %v3845_v3, %s4778_s3  ;;  %v4168_v40 = vand.u32 4294901760, %v4167_v42  ;;  %v5858_v3 = vsub.f32 %v4106_v11, %v5845_v63 }
0x135e   :  { %4169 = vmatpush.msra.mxu1 %v4168_v40  ;;  %v4098_v40 = vld [vmem:[#allocation2 + $0xa8] sm:$0xff] }
0x13a8   :  { %v3852_v36 = vpop.permute.xlu2 %3851 }
0x13ce   :  { %v3848_v50 = vpop.permute.xlu1 %3847 }
0x13cf   :  { %v3854_v45 = vsel %vm452_vm1, %v3848_v50, %v3852_v36  ;;  %v5860_v36 = vand.u32 4294901760, %v4104_v48  ;;  %v5864_v50 = vand.u32 4294901760, %v4103_v22 }
0x13d0   :  { %v3856_v58 = vsel %vm669_vm2, %v3854_v45, 0 }
0x13d1   :  { %v3880_v8 = vand.u32 4294901760, %v3856_v58 }
0x13d3   :  { %v3881_v13 = vsub.f32 %v3856_v58, %v3880_v8  ;;  %3936 = vmatmul.f32.vlgmr.msra.gmra.mxu3 %v3880_v8  ;;  %v4336_v58 = vand.u32 4294901760, %v5850_v49 }
0x13d4   :  { %4268 = vmatpush.msra.mxu3 %v4131_v60 }
0x13d5   :  { %v3882_v14 = vand.u32 4294901760, %v3881_v13  ;;  %3970 = vmatmul.f32.vlgmr.msrb.gmra.mxu0 %v3881_v13 }
0x13d6   :  { %4270 = vmatpush.msra.mxu3 %v4133_v2  ;;  %4191 = vmatpush.msrb.mxu0 %v4159_v46 }
0x13d7   :  { %v3883_v32 = vsub.f32 %v3881_v13, %v3882_v14  ;;  %3999 = vmatmul.f32.vlgmr.msrb.gmra.mxu1 %v3882_v14  ;;  %v4331_v13 = vsub.f32 %v5843_v38, %v4330_v29  ;;  %v4342_v14 = vand.u32 4294901760, %v5858_v3 }
0x13d8   :  { %4194 = vmatpush.msrb.mxu0 %v4165_v62  ;;  %4216 = vmatpush.msrb.mxu1 %v4131_v60  ;;  %v4099_v62 = vld [vmem:[#allocation2 + $0xb0] sm:$0xff] }
0x13d9   :  { %v3884_v26 = vand.u32 4294901760, %v3883_v32  ;;  %v5880_v32 = vsub.f32 %v4104_v48, %v5860_v36  ;;  %v5943_v42 = vand.u32 4294901760, %v4099_v62  ;;  %v4097_v48 = vld [vmem:[#allocation2 + $0xa0] sm:$0xff] }
0x13da   :  { %4218 = vmatpush.msrb.mxu1 %v4133_v2 }
0x13db   :  { %3885 = vmatmul.f32.vlgmr.msra.gmra.mxu2 %v3884_v26  ;;  %4065 = vmatmul.f32.vlgmr.msrb.gmra.mxu3 %v3880_v8  ;;  %v5953_v11 = vsub.f32 %v4099_v62, %v5943_v42 }
0x13dc   :  { %4243 = vmatpush.msra.mxu2 %v4160_v24  ;;  %4478 = vmatpush.msrb.mxu3 %v5833_v54  ;;  %v5931_v24 = vand.u32 4294901760, %v4100_v43 }
0x13de   :  { %4247 = vmatpush.msra.mxu2 %v4166_v7  ;;  %4480 = vmatpush.msrb.mxu3 %v5835_v52  ;;  %v5941_v1 = vsub.f32 %v4100_v43, %v5931_v24 }
0x13e0   :  { %4482 = vmatpush.msrb.mxu3 %v5837_v47  ;;  %v4378_v15 = vand.u32 4294901760, %v5941_v1 }
0x13e2   :  { %4484 = vmatpush.msrb.mxu3 %v5845_v63 }
0x13e3   :  { %4038 = vmatmul.f32.vlgmr.msrb.gmra.mxu2 %v3880_v8  ;;  %v5871_v8 = vsub.f32 %v4105_v28, %v5852_v41  ;;  %v5957_v28 = vand.u32 4294901760, %v4098_v40 }
0x13e4   :  { %4425 = vmatpush.msrb.mxu2 %v5840_v44  ;;  %4486 = vmatpush.msrb.mxu3 %v5852_v41 }
0x13e6   :  { %4428 = vmatpush.msrb.mxu2 %v5843_v38  ;;  %4488 = vmatpush.msrb.mxu3 %v5860_v36 }
0x13e8   :  { %4431 = vmatpush.msrb.mxu2 %v5850_v49  ;;  %4490 = vmatpush.msrb.mxu3 %v5864_v50 }
0x13ea   :  { %4434 = vmatpush.msrb.mxu2 %v5858_v3 }
0x13ec   :  { %4437 = vmatpush.msrb.mxu2 %v5871_v8 }
0x13ee   :  { %4440 = vmatpush.msrb.mxu2 %v5880_v32 }
0x1452   :  { %v3971_v23 = vpop.f32.mrf.mxu0 }
0x1454   :  { %v4000_v37 = vpop.f32.mrf.mxu1 }
0x1456   :  { %v3937_v34 = vpop.f32.mrf.mxu3 }
0x145e   :  { %v3886_v18 = vpop.f32.mrf.mxu2  ;;  %v4066_v35 = vpop.f32.mrf.mxu3 }
0x145f   :  { %v3887_v61 = vadd.f32 %v6149_v55, %v3886_v18 }
0x1461   :  { %v3938_v19 = vadd.f32 %v3937_v34, %v3887_v61  ;;  %v5885_v34 = vsub.f32 %v4103_v22, %v5864_v50 }
0x1463   :  { %v3972_v25 = vadd.f32 %v3971_v23, %v3938_v19  ;;  %v4337_v19 = vsub.f32 %v5850_v49, %v4336_v58  ;;  %v4348_v23 = vand.u32 4294901760, %v5871_v8  ;;  %4443 = vmatpush.msrb.mxu2 %v5885_v34 }
0x1465   :  { %v4001_v9 = vadd.f32 %v4000_v37, %v3972_v25  ;;  %v4332_v37 = vand.u32 4294901760, %v4331_v13  ;;  %v4384_v13 = vand.u32 4294901760, %v5953_v11 }
0x1466   :  { %v4039_v16 = vpop.f32.mrf.mxu2 }
0x1467   :  { %v4040_v20 = vadd.f32 %v4039_v16, %v4001_v9  ;;  %v4343_v9 = vsub.f32 %v5858_v3, %v4342_v14  ;;  %v4354_v16 = vand.u32 4294901760, %v5880_v32 }
0x1469   :  { %v4067_v4 = vadd.f32 %v4066_v35, %v4040_v20  ;;  %v4338_v35 = vand.u32 4294901760, %v4337_v19 }
0x146b   :  { %4736 = vtanh.f32 %v4067_v4  ;;  %v4069_v39 = vmul.f32 0.5, %v4067_v4  ;;  %v4349_v4 = vsub.f32 %v5871_v8, %v4348_v23 }
0x146d   :  { %4738 = vtanh.f32 %v4069_v39 }
0x1471   :  { %v4737_v5 = vpop.eup %4736 }
0x1472   :  { %4076 = vrot.lane.b32.xlu0 %v4737_v5, %s4779_s4  ;;  %v4360_v5 = vand.u32 4294901760, %v5885_v34 }
0x1473   :  { %v4739_v10 = vpop.eup %4738 }
0x1474   :  { %v4071_v0 = vadd.f32 1.0, %v4739_v10  ;;  %v4344_v10 = vand.u32 4294901760, %v4343_v9 }
0x1476   :  { %v4072_v31 = vmul.f32 0.5, %v4071_v0  ;;  %v4355_v0 = vsub.f32 %v5880_v32, %v4354_v16 }
0x1478   :  { %v4074_v33 = vmul.f32 %v4072_v31, %v3629_v56  ;;  %v4324_v56 = vand.u32 4294901760, %v5840_v44 }
0x147a   :  { %v4325_v45 = vsub.f32 %v5840_v44, %v4324_v56 }
0x147c   :  { %v4326_v61 = vand.u32 4294901760, %v4325_v45  ;;  %v4379_v45 = vsub.f32 %v5941_v1, %v4378_v15 }
0x147e   :  { %v4380_v19 = vand.u32 4294901760, %v4379_v45 }
0x14e4   :  { %v4077_v12 = vpop.permute.xlu0 %4076 }
0x14e5   :  { %v4079_v55 = vmul.f32 %v4077_v12, %v4072_v31  ;;  %v4350_v12 = vand.u32 4294901760, %v4349_v4 }
0x14e7   :  { %4081 = vrot.lane.b32.xlu1 %v4079_v55, %s4780_s5  ;;  %v4361_v55 = vsub.f32 %v5885_v34, %v4360_v5 }
0x1559   :  { %v4082_v17 = vpop.permute.xlu1 %4081 }
0x155a   :  { %v4084_v27 = vadd.f32 %v4082_v17, %v4074_v33  ;;  %v4356_v17 = vand.u32 4294901760, %v4355_v0 }
0x155c   :  { %4740 = vtanh.f32 %v4084_v27  ;;  %v4362_v27 = vand.u32 4294901760, %v4361_v55 }
0x1562   :  { %v4741_v59 = vpop.eup %4740 }
0x1563   :  { %4087 = vrot.lane.b32.xlu2 %v4741_v59, %s4778_s3  ;;  %v4102_v59 = vld [vmem:[#allocation2 + $0xc8] sm:$0xff] }
0x15bd   :  { %v4088_v53 = vpop.permute.xlu2 %4087 }
0x15be   :  { %v4090_v51 = vmul.f32 %v4088_v53, %v4072_v31  ;;  %v5918_v53 = vand.u32 4294901760, %v4102_v59 }
0x15c0   :  { %4113 = vrot.lane.b32.xlu0 %v4090_v51, %s4782_s7  ;;  %v4101_v51 = vld [vmem:[#allocation2 + $0xc0] sm:$0xff]  ;;  %v5921_v30 = vsub.f32 %v4102_v59, %v5918_v53  ;;  %4492 = vmatpush.msrb.mxu3 %v5918_v53 }
0x15c1   :  { %v5923_v60 = vand.u32 4294901760, %v4101_v51 }
0x15c2   :  { %v4366_v46 = vand.u32 4294901760, %v5921_v30  ;;  %4446 = vmatpush.msrb.mxu2 %v5921_v30 }
0x15c3   :  { %v5929_v2 = vsub.f32 %v4101_v51, %v5923_v60  ;;  %4494 = vmatpush.msrb.mxu3 %v5923_v60 }
0x15c4   :  { %v4367_v6 = vsub.f32 %v5921_v30, %v4366_v46  ;;  %v4645_v30 = vld [vmem:[#allocation2 + $0x108] ss:$0 sm:$0xff] }
0x15c5   :  { %v4372_v7 = vand.u32 4294901760, %v5929_v2  ;;  %4449 = vmatpush.msrb.mxu2 %v5929_v2  ;;  %4496 = vmatpush.msrb.mxu3 %v5931_v24 }
0x15c6   :  { %v4368_v57 = vand.u32 4294901760, %v4367_v6 }
0x15c7   :  { %v4373_v21 = vsub.f32 %v5929_v2, %v4372_v7  ;;  %4452 = vmatpush.msrb.mxu2 %v5941_v1  ;;  %4498 = vmatpush.msrb.mxu3 %v5943_v42 }
0x15c9   :  { %v4374_v22 = vand.u32 4294901760, %v4373_v21  ;;  %4455 = vmatpush.msrb.mxu2 %v5953_v11  ;;  %4500 = vmatpush.msrb.mxu3 %v5957_v28 }
0x1632   :  { %v4114_v26 = vpop.permute.xlu0 %4113 }
0x1633   :  { %v4115_v18 = vsel %vm51_vm0, %v4114_v26, 0  ;;  %v5964_v26 = vand.u32 4294901760, %v4097_v48 }
0x1634   :  { %v4135_v25 = vand.u32 4294901760, %v4115_v18 }
0x1635   :  { %4502 = vmatpush.msrb.mxu3 %v5964_v26 }
0x1636   :  { %v4136_v20 = vsub.f32 %v4115_v18, %v4135_v25  ;;  %4171 = vmatmul.f32.vlgmr.msra.gmra.mxu1 %v4135_v25  ;;  %4249 = vmatmul.f32.vlgmr.msra.gmra.mxu2 %v4135_v25  ;;  %v5968_v18 = vsub.f32 %v4098_v40, %v5957_v28 }
0x1637   :  { %4272 = vmatmul.f32.vlgmr.msra.gmra.mxu3 %v4135_v25  ;;  %4327 = vmatpush.msra.mxu1 %v4326_v61  ;;  %v4096_v61 = vld [vmem:[#allocation2 + $0x98] sm:$0xff]  ;;  %v4385_v25 = vsub.f32 %v5953_v11, %v4384_v13 }
0x1638   :  { %v4137_v39 = vand.u32 4294901760, %v4136_v20  ;;  %v5978_v9 = vand.u32 4294901760, %v4096_v61  ;;  %4458 = vmatpush.msrb.mxu2 %v5968_v18 }
0x1639   :  { %4333 = vmatpush.msra.mxu1 %v4332_v37  ;;  %v5976_v37 = vsub.f32 %v4097_v48, %v5964_v26  ;;  %v4386_v4 = vand.u32 4294901760, %v4385_v25 }
0x163a   :  { %v4138_v31 = vsub.f32 %v4136_v20, %v4137_v39  ;;  %4504 = vmatpush.msrb.mxu3 %v5978_v9 }
0x163b   :  { %4339 = vmatpush.msra.mxu1 %v4338_v35  ;;  %v4095_v35 = vld [vmem:[#allocation2 + $0x90] sm:$0xff]  ;;  %4461 = vmatpush.msrb.mxu2 %v5976_v37 }
0x163c   :  { %v4139_v33 = vand.u32 4294901760, %v4138_v31  ;;  %v5985_v0 = vand.u32 4294901760, %v4095_v35 }
0x163d   :  { %4345 = vmatpush.msra.mxu1 %v4344_v10  ;;  %v4401_v10 = vsub.f32 %v4096_v61, %v5978_v9 }
0x163e   :  { %4140 = vmatmul.f32.vlgmr.msra.gmra.mxu0 %v4139_v33  ;;  %4222 = vmatmul.f32.vlgmr.msrb.gmra.mxu1 %v4137_v39  ;;  %v4396_v39 = vand.u32 4294901760, %v5976_v37 }
0x163f   :  { %4282 = vmatpush.msra.mxu0 %v5833_v54  ;;  %4351 = vmatpush.msra.mxu1 %v4350_v12  ;;  %v4094_v12 = vld [vmem:[#allocation2 + $0x88] sm:$0xff]  ;;  %v4402_v33 = vand.u32 4294901760, %v4401_v10 }
0x1640   :  { %v4397_v55 = vsub.f32 %v5976_v37, %v4396_v39  ;;  %4464 = vmatpush.msrb.mxu2 %v4401_v10  ;;  %4506 = vmatpush.msrb.mxu3 %v5985_v0 }
0x1641   :  { %4284 = vmatpush.msra.mxu0 %v5835_v52  ;;  %4357 = vmatpush.msra.mxu1 %v4356_v17  ;;  %v4407_v17 = vsub.f32 %v4095_v35, %v5985_v0  ;;  %v4403_v43 = vsub.f32 %v4401_v10, %v4402_v33 }
0x1642   :  { %v4398_v51 = vand.u32 4294901760, %v4397_v55 }
0x1643   :  { %4286 = vmatpush.msra.mxu0 %v5837_v47  ;;  %4363 = vmatpush.msra.mxu1 %v4362_v27  ;;  %v5993_v27 = vand.u32 4294901760, %v4094_v12  ;;  %v4408_v62 = vand.u32 4294901760, %v4407_v17  ;;  %v4404_v40 = vand.u32 4294901760, %v4403_v43 }
0x1644   :  { %4467 = vmatpush.msrb.mxu2 %v4407_v17 }
0x1645   :  { %4288 = vmatpush.msra.mxu0 %v5845_v63  ;;  %4369 = vmatpush.msra.mxu1 %v4368_v57  ;;  %v4413_v6 = vsub.f32 %v4094_v12, %v5993_v27  ;;  %v4409_v57 = vsub.f32 %v4407_v17, %v4408_v62 }
0x1646   :  { %4197 = vmatmul.f32.vlgmr.msrb.gmra.mxu0 %v4136_v20  ;;  %v4390_v20 = vand.u32 4294901760, %v5968_v18  ;;  %4508 = vmatpush.msrb.mxu3 %v5993_v27 }
0x1647   :  { %4290 = vmatpush.msra.mxu0 %v5852_v41  ;;  %4375 = vmatpush.msra.mxu1 %v4374_v22  ;;  %v4414_v21 = vand.u32 4294901760, %v4413_v6  ;;  %v4410_v48 = vand.u32 4294901760, %v4409_v57 }
0x1648   :  { %v4391_v31 = vsub.f32 %v5968_v18, %v4390_v20  ;;  %4470 = vmatpush.msrb.mxu2 %v4413_v6 }
0x1649   :  { %4292 = vmatpush.msra.mxu0 %v5860_v36  ;;  %4381 = vmatpush.msra.mxu1 %v4380_v19  ;;  %v4415_v22 = vsub.f32 %v4413_v6, %v4414_v21 }
0x164a   :  { %v4392_v59 = vand.u32 4294901760, %v4391_v31 }
0x164b   :  { %4294 = vmatpush.msra.mxu0 %v5864_v50  ;;  %4387 = vmatpush.msra.mxu1 %v4386_v4  ;;  %v4416_v45 = vand.u32 4294901760, %v4415_v22 }
0x164d   :  { %4296 = vmatpush.msra.mxu0 %v5918_v53  ;;  %4393 = vmatpush.msra.mxu1 %v4392_v59 }
0x164f   :  { %4298 = vmatpush.msra.mxu0 %v5923_v60  ;;  %4399 = vmatpush.msra.mxu1 %v4398_v51 }
0x1651   :  { %4300 = vmatpush.msra.mxu0 %v5931_v24  ;;  %4405 = vmatpush.msra.mxu1 %v4404_v40 }
0x1653   :  { %4302 = vmatpush.msra.mxu0 %v5943_v42  ;;  %4411 = vmatpush.msra.mxu1 %v4410_v48 }
0x1655   :  { %4304 = vmatpush.msra.mxu0 %v5957_v28  ;;  %4417 = vmatpush.msra.mxu1 %v4416_v45 }
0x1657   :  { %4306 = vmatpush.msra.mxu0 %v5964_v26  ;;  %4586 = vmatpush.msrb.mxu1 %v5833_v54  ;;  %v4644_v54 = vld [vmem:[#allocation2 + $0x80] ss:$0 sm:$0xff] }
0x1659   :  { %4308 = vmatpush.msra.mxu0 %v5978_v9  ;;  %4588 = vmatpush.msrb.mxu1 %v5835_v52 }
0x165b   :  { %4310 = vmatpush.msra.mxu0 %v5985_v0  ;;  %4590 = vmatpush.msrb.mxu1 %v5837_v47 }
0x165d   :  { %4312 = vmatpush.msra.mxu0 %v5993_v27  ;;  %4592 = vmatpush.msrb.mxu1 %v5845_v63 }
0x165f   :  { %4519 = vmatpush.msrb.mxu0 %v4324_v56  ;;  %4594 = vmatpush.msrb.mxu1 %v5852_v41 }
0x1661   :  { %4523 = vmatpush.msrb.mxu0 %v4330_v29  ;;  %4596 = vmatpush.msrb.mxu1 %v5860_v36 }
0x1663   :  { %4527 = vmatpush.msrb.mxu0 %v4336_v58  ;;  %4598 = vmatpush.msrb.mxu1 %v5864_v50 }
0x1665   :  { %4531 = vmatpush.msrb.mxu0 %v4342_v14  ;;  %4600 = vmatpush.msrb.mxu1 %v5918_v53 }
0x1667   :  { %4535 = vmatpush.msrb.mxu0 %v4348_v23  ;;  %4602 = vmatpush.msrb.mxu1 %v5923_v60 }
0x1669   :  { %4539 = vmatpush.msrb.mxu0 %v4354_v16  ;;  %4604 = vmatpush.msrb.mxu1 %v5931_v24 }
0x166b   :  { %4543 = vmatpush.msrb.mxu0 %v4360_v5  ;;  %4606 = vmatpush.msrb.mxu1 %v5943_v42 }
0x166d   :  { %4547 = vmatpush.msrb.mxu0 %v4366_v46  ;;  %4608 = vmatpush.msrb.mxu1 %v5957_v28 }
0x166f   :  { %4551 = vmatpush.msrb.mxu0 %v4372_v7  ;;  %4610 = vmatpush.msrb.mxu1 %v5964_v26 }
0x1671   :  { %4555 = vmatpush.msrb.mxu0 %v4378_v15  ;;  %4612 = vmatpush.msrb.mxu1 %v5978_v9 }
0x1673   :  { %4559 = vmatpush.msrb.mxu0 %v4384_v13  ;;  %4614 = vmatpush.msrb.mxu1 %v5985_v0 }
0x1675   :  { %4563 = vmatpush.msrb.mxu0 %v4390_v20  ;;  %4616 = vmatpush.msrb.mxu1 %v5993_v27 }
0x1677   :  { %4567 = vmatpush.msrb.mxu0 %v4396_v39 }
0x1679   :  { %4571 = vmatpush.msrb.mxu0 %v4402_v33 }
0x167b   :  { %4575 = vmatpush.msrb.mxu0 %v4408_v62 }
0x167d   :  { %4579 = vmatpush.msrb.mxu0 %v4414_v21 }
0x16b3   :  { %v4172_v52 = vpop.f32.mrf.mxu1 }
0x16b9   :  { %v4250_v29 = vpop.f32.mrf.mxu2 }
0x16ba   :  { %v4273_v36 = vpop.f32.mrf.mxu3 }
0x16bb   :  { %v4141_v47 = vpop.f32.mrf.mxu0  ;;  %v4223_v49 = vpop.f32.mrf.mxu1 }
0x16bc   :  { %v4142_v44 = vadd.f32 %v4644_v54, %v4141_v47 }
0x16be   :  { %v4173_v38 = vadd.f32 %v4172_v52, %v4142_v44 }
0x16c3   :  { %v4198_v63 = vpop.f32.mrf.mxu0 }
0x16c4   :  { %v4199_v56 = vadd.f32 %v4198_v63, %v4173_v38 }
0x16c6   :  { %v4224_v41 = vadd.f32 %v4223_v49, %v4199_v56 }
0x16c8   :  { %v4251_v3 = vadd.f32 %v4250_v29, %v4224_v41 }
0x16ca   :  { %v4274_v50 = vadd.f32 %v4273_v36, %v4251_v3 }
0x16cc   :  { %v4276_v58 = vmul.f32 0.5, %v4274_v50 }
0x16ce   :  { %4742 = vtanh.f32 %v4276_v58 }
0x16d4   :  { %v4743_v8 = vpop.eup %4742 }
0x16d5   :  { %v4278_v14 = vadd.f32 1.0, %v4743_v8 }
0x16d7   :  { %v4279_v32 = vmul.f32 0.5, %v4278_v14 }
0x16d9   :  { %v4313_v34 = vand.u32 4294901760, %v4279_v32 }
0x16db   :  { %v4314_v23 = vsub.f32 %v4279_v32, %v4313_v34  ;;  %4419 = vmatmul.f32.vlgmr.msra.gmra.mxu1 %v4313_v34 }
0x16dd   :  { %4473 = vmatmul.f32.vlgmr.msrb.gmra.mxu2 %v4314_v23  ;;  %v4315_v16 = vand.u32 4294901760, %v4314_v23 }
0x16df   :  { %4512 = vmatmul.f32.vlgmr.msrb.gmra.mxu3 %v4315_v16  ;;  %v4316_v5 = vsub.f32 %v4314_v23, %v4315_v16 }
0x16e1   :  { %v4317_v53 = vand.u32 4294901760, %v4316_v5 }
0x16e3   :  { %4318 = vmatmul.f32.vlgmr.msra.gmra.mxu0 %v4317_v53  ;;  %4618 = vmatmul.f32.vlgmr.msrb.gmra.mxu1 %v4313_v34 }
0x16eb   :  { %4581 = vmatmul.f32.vlgmr.msrb.gmra.mxu0 %v4313_v34 }
0x1758   :  { %v4420_v60 = vpop.f32.mrf.mxu1 }
0x1760   :  { %v4319_v46 = vpop.f32.mrf.mxu0  ;;  %v4474_v7 = vpop.f32.mrf.mxu2 }
0x1761   :  { %v4320_v2 = vadd.f32 %v4645_v30, %v4319_v46  ;;  %v4619_v13 = vpop.f32.mrf.mxu1 }
0x1762   :  { %v4513_v42 = vpop.f32.mrf.mxu3 }
0x1763   :  { %v4421_v24 = vadd.f32 %v4420_v60, %v4320_v2 }
0x1765   :  { %v4475_v1 = vadd.f32 %v4474_v7, %v4421_v24 }
0x1767   :  { %v4514_v15 = vadd.f32 %v4513_v42, %v4475_v1 }
0x1768   :  { %v4582_v11 = vpop.f32.mrf.mxu0 }
0x1769   :  { %v4583_v28 = vadd.f32 %v4582_v11, %v4514_v15 }
0x176b   :  { %v4620_v26 = vadd.f32 %v4619_v13, %v4583_v28 }
0x176d   :  { %4622 = vst [vmem:[%s6044_s2] sm:$0xff] %v4620_v26 }
0x176e   :  { %4627 = vsyncpa [#allocation3], 1 }

</bundles_post_ra>
